<compile_context>
chip_gen: v5e
topology: v5e:2x2
jax: 0.10.0
libtpu: 0.0.40
codegen_flags: <defaults>
</compile_context>

<pallas_src>
import functools
import numpy as np
import jax
import jax.numpy as jnp
from jax.experimental import pallas as pl
from jax.experimental.pallas import tpu as pltpu

HIGH = jax.lax.Precision.HIGHEST
LANE = 128


# ----------------------- plain-JAX glue (sampling / grouping) -----------------
# TODO(synk): FPS / kNN / index_points are data-dependent gathers with no clean
# BlockSpec equivalent; they stay in plain JAX (XLA) and feed the kernels.
def square_distance(src, dst):
    d = -2.0 * jnp.einsum("bnc,bmc->bnm", src, dst, precision=HIGH)
    d = d + jnp.sum(src ** 2, -1)[:, :, None]
    d = d + jnp.sum(dst ** 2, -1)[:, None, :]
    return d


def farthest_point_sample(xyz, npoint):
    # NOTE: the PyTorch version starts from torch.randint; we use index 0 for determinism.
    B, N, _ = xyz.shape
    centroids = jnp.zeros((B, npoint), dtype=jnp.int32)
    distance = jnp.full((B, N), 1e10, dtype=xyz.dtype)
    farthest = jnp.zeros((B,), dtype=jnp.int32)

    def body(i, carry):
        centroids, distance, farthest = carry
        centroids = centroids.at[:, i].set(farthest)
        centroid = jnp.take_along_axis(xyz, farthest[:, None, None], axis=1)
        dist = jnp.sum((xyz - centroid) ** 2, -1)
        distance = jnp.minimum(distance, dist)
        farthest = jnp.argmax(distance, -1).astype(jnp.int32)
        return centroids, distance, farthest

    centroids, _, _ = jax.lax.fori_loop(0, npoint, body,
                                        (centroids, distance, farthest))
    return centroids


def index_points(points, idx):
    return jax.vmap(lambda p, i: p[i])(points, idx)


def knn(origin_xyz, center_xyz, k):
    d2 = square_distance(center_xyz, origin_xyz)
    idx = jnp.argsort(d2, axis=-1)[:, :, :k]
    dist = jnp.take_along_axis(d2, idx, axis=-1)
    return idx, dist


def sample_and_group(xyz, points, npoint, K_num):
    fps_idx = farthest_point_sample(xyz, npoint)
    center_xyz = index_points(xyz, fps_idx)
    center_points = index_points(points, fps_idx)
    knn_idx, knn_dist = knn(xyz, center_xyz, K_num)
    grouped_xyz = index_points(xyz, knn_idx)
    grouped_points = index_points(points, knn_idx)
    return (center_xyz, center_points, grouped_xyz, grouped_points,
            fps_idx, knn_idx, knn_dist)


# ------------------------------ Pallas kernels ---------------------------------
def feat_nei_kernel(K, feat16_ref, gpts_ref,
                    w1_ref, b1_ref, w2_ref, b2_ref, wqkv_ref, bqkv_ref,
                    feat_ref, nei_ref):
    """Pos-embedding + neighbour (intra-group) self-attention for one S tile."""
    TSK = feat16_ref.shape[0]
    TS = TSK // K
    Q = gpts_ref.shape[-1]
    P = w2_ref.shape[1]
    Dpad = P + Q
    D8p = (wqkv_ref.shape[1] - Dpad) // 2
    bf = jnp.bfloat16

    def mm(x_bf16, w_ref, b_ref):
        # bf16 x bf16 -> f32 accumulation on the MXU (no HIGHEST multi-pass).
        return jnp.dot(x_bf16, w_ref[...],
                       preferred_element_type=jnp.float32) + b_ref[...]

    # ---- PosEmbeding (BN folded): [center|neighbor|relative|dist] padded to 16 ----
    h = jnp.maximum(mm(feat16_ref[...], w1_ref, b1_ref), 0.0)
    pos = jnp.maximum(mm(h.astype(bf), w2_ref, b2_ref), 0.0)            # [TSK, P]

    # ---- feat = [pos || grouped point features]; both halves 128-lane aligned ----
    feat2 = jnp.concatenate([pos.astype(bf), gpts_ref[...]], axis=-1)   # [TSK, Dpad]
    feat_ref[...] = feat2

    # ---- Neighbor_SA_New: fused q/k/v projection (one MXU pass), then
    #      self-attention over the K points of each group ----
    qkv = mm(feat2, wqkv_ref, bqkv_ref)                                 # [TSK, 2*D8p+Dpad] f32
    q = qkv[:, :D8p].astype(bf).reshape(TS, K, D8p)
    k = qkv[:, D8p:2 * D8p].astype(bf).reshape(TS, K, D8p)
    v = qkv[:, 2 * D8p:].astype(bf).reshape(TS, K, Dpad)
    # TODO(synk): on v6e/v7x, packing G groups into one masked [G*K, G*K] QK^T
    # (instead of per-group KxK matmuls) may better utilize the 256x256 MXU;
    # profile both at production K=24.
    energy = jnp.einsum("sqd,spd->sqp", q, k,
                        preferred_element_type=jnp.float32)             # [TS, K, K]
    energy = energy - jnp.max(energy, axis=-1, keepdims=True)
    e = jnp.exp(energy)
    att = e * pl.reciprocal(jnp.sum(e, axis=-1, keepdims=True), approx=True)
    nei = jnp.einsum("sqp,spd->sqd", att.astype(bf), v,
                     preferred_element_type=jnp.float32)                # [TS, K, Dpad]
    nei_ref[...] = nei.astype(bf).reshape(TSK, Dpad)


def gam_combine_kernel(flatkv_ref, feat_ref, nei_ref, gpts_ref,
                       wcat_ref, bc1_ref, wc2_ref, bc2_ref, ws_ref, bs_ref,
                       out_ref):
    """Group attention over S + fused cated/shortcut MLPs + K max-pool (one S tile)."""
    S = flatkv_ref.shape[0]
    TS, Op = out_ref.shape
    TSK, Dpad = feat_ref.shape
    K = TSK // TS
    bf = jnp.bfloat16

    # ---- GAM_Module: attention between the S groups.  Keys/values = the whole
    #      [S, K*Dpad] slab (resident once per batch element); queries = this tile.
    # TODO(synk): for very large S*K*Dpad the key slab should move to a
    # flash-style two-pass reduction over S_kv tiles instead of full residency.
    flat_kv = flatkv_ref[...]                                           # [S, K*Dpad] bf16
    q0 = pl.multiple_of(pl.program_id(1) * TS, TS)
    flat_q = flatkv_ref[pl.ds(q0, TS), :]                               # [TS, K*Dpad] bf16
    e2 = jnp.einsum("qc,sc->qs", flat_q, flat_kv,
                    preferred_element_type=jnp.float32)                 # [TS, S]
    e2 = e2 - jnp.max(e2, axis=-1, keepdims=True)
    p2 = jnp.exp(e2)
    att2 = p2 * pl.reciprocal(jnp.sum(p2, axis=-1, keepdims=True), approx=True)
    grp = jnp.dot(att2.astype(bf), flat_kv,
                  preferred_element_type=jnp.float32)                   # [TS, K*Dpad] f32
    grp2 = grp.astype(bf).reshape(TSK, Dpad)                            # single bf16 relayout

    # ---- cated_mlp: the 2*(D_in+D_pos)-wide concat and the gamma residuals are
    #      folded into ONE matmul: h1 = relu([nei|grp|feat] @ vstack(wc1n,wc1g,wc1f) + b)
    lhs = jnp.concatenate([nei_ref[...], grp2, feat_ref[...]], axis=-1)  # [TSK, 3*Dpad]
    h1 = jnp.maximum(
        jnp.dot(lhs, wcat_ref[...], preferred_element_type=jnp.float32)
        + bc1_ref[...], 0.0)
    h2 = jnp.dot(h1.astype(bf), wc2_ref[...],
                 preferred_element_type=jnp.float32) + bc2_ref[...]      # [TSK, Op]

    # ---- shortcut_mlp on grouped_points + residual add + relu + K max-pool ----
    res = jnp.maximum(
        jnp.dot(gpts_ref[...], ws_ref[...], preferred_element_type=jnp.float32)
        + bs_ref[...], 0.0)
    newp = jnp.maximum(h2 + res, 0.0).reshape(TS, K, Op)
    out_ref[...] = jnp.max(newp, axis=1).astype(out_ref.dtype)           # [TS, Op] bf16


# --------------------------- weight padding / folding --------------------------
def _roundup(n, m):
    return ((n + m - 1) // m) * m


def prepare_kernel_params(p, D_in, D_pos, lane=LANE):
    """Pad / split / fold the (already BN-folded) StageBlock weights into the
    lane-dense fused layout the kernels consume.  Zero padding is exact: padded
    input channels are zero so padded weight rows never contribute, and padded
    weight columns / biases are zero so padded output channels stay zero."""
    D = D_in + D_pos
    D8 = p["wq"].shape[1]
    F = 16                                   # feat10 channels padded 10 -> 16
    H1 = p["w1"].shape[1]                    # D_pos // 2
    H1p = _roundup(H1, lane)
    P = _roundup(D_pos, lane)
    Q = _roundup(D_in, lane)
    Dpad = P + Q
    # TODO(synk): D8p = roundup(D//8, 128) pads the q/k width (1->128 at demo,
    # 136->256 at prod); fixing the attention width to exactly 128 in the model
    # would halve the zero-FLOP MXU work on the score path.
    D8p = _roundup(D8, lane)
    C1p = _roundup(2 * D, lane)
    Op = _roundup(p["ws"].shape[1], lane)

    # real feature channels of feat = [pos | grouped_points] inside the padded layout
    r = jnp.concatenate([jnp.arange(D_pos), P + jnp.arange(D_in)])

    def pad_rc(w, rpad, cpad):
        return jnp.pad(w, ((0, rpad - w.shape[0]), (0, cpad - w.shape[1])))

    def pad_bias(b, cpad):
        return jnp.pad(b, ((0, 0), (0, cpad - b.shape[1])))

    def embed_rows(w, cpad):                 # scatter the D real rows into Dpad rows
        wz = jnp.zeros((Dpad, cpad), w.dtype)
        return wz.at[r].set(jnp.pad(w, ((0, 0), (0, cpad - w.shape[1]))))

    bf = jnp.bfloat16
    g1, g2 = p["gammas"][0], p["gammas"][1]
    A, Bw = p["wc1"][:D], p["wc1"][D:]       # split the 2D-wide cated conv
    wv_p = jnp.zeros((Dpad, Dpad), p["wv"].dtype).at[r[:, None], r[None, :]].set(p["wv"])
    bv_p = jnp.zeros((1, Dpad), p["bv"].dtype).at[0, r].set(p["bv"][0])

    w = dict(
        w1=pad_rc(p["w1"], F, H1p).astype(bf), b1=pad_bias(p["b1"], H1p),
        w2=pad_rc(p["w2"], H1p, P).astype(bf), b2=pad_bias(p["b2"], P),
        # fused q/k/v projection: [Dpad, D8p | D8p | Dpad]
        wqkv=jnp.concatenate([embed_rows(p["wq"], D8p), embed_rows(p["wk"], D8p),
                              wv_p], axis=1).astype(bf),
        bqkv=jnp.concatenate([pad_bias(p["bq"], D8p), pad_bias(p["bk"], D8p),
                              bv_p], axis=1),
        # fused cated conv1 over [nei | grp | feat] with gammas folded in
        wcat=jnp.concatenate([embed_rows(g1 * A, C1p),     # gamma_neighbor path
                              embed_rows(g2 * Bw, C1p),    # gamma_group path
                              embed_rows(A + Bw, C1p)],    # feat residual path
                             axis=0).astype(bf),
        bc1=pad_bias(p["bc1"], C1p),
        wc2=pad_rc(p["wc2"], C1p, Op).astype(bf), bc2=pad_bias(p["bc2"], Op),
        ws=pad_rc(p["ws"], Q, Op).astype(bf),     bs=pad_bias(p["bs"], Op),
    )
    return w, dict(F=F, P=P, Q=Q, Dpad=Dpad, Op=Op)


# ------------------------- generation-aware knobs / helpers ---------------------
def _vmem_limit_bytes():
    """Leave headroom on 64-MiB-VMEM parts (v7x); use more of 128-MiB parts."""
    try:
        cap = int(pltpu.get_tpu_info().vmem_capacity_bytes)
    except Exception:
        try:
            kind = jax.devices()[0].device_kind.lower()
            cap = 64 * 2 ** 20 if "v7" in kind else 128 * 2 ** 20
        except Exception:
            cap = 128 * 2 ** 20
    return 40 * 2 ** 20 if cap <= 64 * 2 ** 20 else 96 * 2 ** 20


def _pick_s_tile(S, vmem_limit):
    """S tile: whole-S when small; otherwise 64 on 64-MiB-VMEM parts, 128 on
    128-MiB parts (larger tiles amortize the ~0.35us per-grid-step overhead)."""
    target = 64 if vmem_limit <= 48 * 2 ** 20 else 128
    if S <= target:
        return S
    ts = target
    while ts > 8 and S % ts:
        ts //= 2
    return ts if S % ts == 0 else S


_WEIGHT_MODE_CACHE = []   # [] = undecided; [mode] once probed in this process


def _weight_spec(shape, mode):
    """Grid-constant weight operand; single-buffered when supported."""
    if mode is None:
        return pl.BlockSpec(shape, lambda b, s: (0, 0))
    return pl.BlockSpec(shape, lambda b, s: (0, 0), pipeline_mode=mode)


def _call_with_single_buffered_weights(build):
    """build(weight_mode) -> result.  Try pl.Buffered(1) for grid-constant
    weights (default double buffering wastes VMEM on weights DMA'd once);
    fall back silently if this Pallas version rejects it."""
    if _WEIGHT_MODE_CACHE:
        return build(_WEIGHT_MODE_CACHE[0])
    try:
        out = jax.block_until_ready(build(pl.Buffered(1)))
        _WEIGHT_MODE_CACHE.append(pl.Buffered(1))
        return out
    except Exception:
        _WEIGHT_MODE_CACHE.append(None)
        return build(None)


# ------------------------------ forward wrapper --------------------------------
def stage_block_forward(xyz, points, params, npoint, K_num):
    (center_xyz, _cpts, grouped_xyz, grouped_points,
     _fps_idx, _knn_idx, knn_dist) = sample_and_group(xyz, points, npoint, K_num)

    B, S, K, D_in = grouped_points.shape
    D_pos = params["w2"].shape[1]
    D_out = params["ws"].shape[1]

    # PosEmbeding input built on the XLA side (fuses with the gathers):
    # 10 real channels [center | neighbor | relative | dist], zero-padded to 16.
    center = jnp.broadcast_to(center_xyz[:, :, None, :], grouped_xyz.shape)
    feat10 = jnp.concatenate(
        [center, grouped_xyz, grouped_xyz - center, knn_dist[..., None]], axis=-1)

    w, dims = prepare_kernel_params(params, D_in, D_pos)
    F, Q, Dpad, Op = dims["F"], dims["Q"], dims["Dpad"], dims["Op"]

    feat16 = jnp.pad(feat10, ((0, 0), (0, 0), (0, 0), (0, F - 10))
                     ).astype(jnp.bfloat16).reshape(B, S * K, F)
    gpts = jnp.pad(grouped_points, ((0, 0), (0, 0), (0, 0), (0, Q - D_in))
                   ).astype(jnp.bfloat16).reshape(B, S * K, Q)

    vmem_limit = _vmem_limit_bytes()
    TS = _pick_s_tile(S, vmem_limit)
    assert S % TS == 0 and (TS * K) % 8 == 0
    n_s = S // TS
    cparams = pltpu.CompilerParams(
        dimension_semantics=("parallel", "parallel"),
        vmem_limit_bytes=vmem_limit)

    def tile_spec(rows, cols):
        return pl.BlockSpec((pl.Squeezed(), rows, cols), lambda b, s: (b, s, 0))

    # ---- kernel 1: pos-embed + feat + neighbour self-attention, per S tile ----
    k1_w = [w["w1"], w["b1"], w["w2"], w["b2"], w["wqkv"], w["bqkv"]]

    def run_kernel1(mode):
        return pl.pallas_call(
            functools.partial(feat_nei_kernel, K),
            out_shape=(jax.ShapeDtypeStruct((B, S * K, Dpad), jnp.bfloat16),
                       jax.ShapeDtypeStruct((B, S * K, Dpad), jnp.bfloat16)),
            grid=(B, n_s),
            in_specs=[tile_spec(TS * K, F), tile_spec(TS * K, Q)]
                     + [_weight_spec(a.shape, mode) for a in k1_w],
            out_specs=(tile_spec(TS * K, Dpad), tile_spec(TS * K, Dpad)),
            compiler_params=cparams,
        )(feat16, gpts, *k1_w)

    feat_flat, nei_flat = _call_with_single_buffered_weights(run_kernel1)

    # ---- kernel 2: GAM over S + fused cated/shortcut MLPs + K max-pool ----
    flat_kv = feat_flat.reshape(B, S, K * Dpad)      # contiguous (free) HBM reshape
    k2_w = [w["wcat"], w["bc1"], w["wc2"], w["bc2"], w["ws"], w["bs"]]

    def run_kernel2(mode):
        return pl.pallas_call(
            gam_combine_kernel,
            out_shape=jax.ShapeDtypeStruct((B, S, Op), jnp.bfloat16),
            grid=(B, n_s),
            in_specs=[pl.BlockSpec((pl.Squeezed(), S, K * Dpad),
                                   lambda b, s: (b, 0, 0)),   # per-batch key slab
                      tile_spec(TS * K, Dpad),                # feat tile
                      tile_spec(TS * K, Dpad),                # nei tile
                      tile_spec(TS * K, Q)]                   # grouped points tile
                     + [_weight_spec(a.shape, mode) for a in k2_w],
            out_specs=tile_spec(TS, Op),
            compiler_params=cparams,
        )(flat_kv, feat_flat, nei_flat, gpts, *k2_w)

    out_padded = _call_with_single_buffered_weights(run_kernel2)

    # Output stays bf16 (halved writeback; downstream stages feed matmuls);
    # slice away the lane padding here.
    return center_xyz, out_padded[:, :, :D_out]


# --------------------------- parameter construction ----------------------------
def make_params(key, D_in, D_out, D_pos):
    D = D_in + D_pos
    D8 = D // 8
    keys = iter(jax.random.split(key, 64))

    def lin(cin, cout):
        w = jax.random.normal(next(keys), (cin, cout), jnp.float32) / np.sqrt(cin)
        b = 0.1 * jax.random.normal(next(keys), (1, cout), jnp.float32)
        return w, b

    def bn(c):
        g = 1.0 + 0.1 * jax.random.normal(next(keys), (c,), jnp.float32)
        be = 0.1 * jax.random.normal(next(keys), (c,), jnp.float32)
        mu = 0.1 * jax.random.normal(next(keys), (c,), jnp.float32)
        var = 0.5 + jnp.abs(jax.random.normal(next(keys), (c,), jnp.float32))
        return g, be, mu, var

    def fold(w, b, bn_p, eps=1e-5):
        g, be, mu, var = bn_p
        s = g / jnp.sqrt(var + eps)
        return w * s[None, :], (b - mu[None, :]) * s[None, :] + be[None, :]

    p = {}
    w, b = lin(10, D_pos // 2); p["w1"], p["b1"] = fold(w, b, bn(D_pos // 2))
    w, b = lin(D_pos // 2, D_pos); p["w2"], p["b2"] = fold(w, b, bn(D_pos))
    p["wq"], p["bq"] = lin(D, D8)
    p["wk"], p["bk"] = lin(D, D8)
    p["wv"], p["bv"] = lin(D, D)
    w, b = lin(2 * D, 2 * D); p["wc1"], p["bc1"] = fold(w, b, bn(2 * D))
    w, b = lin(2 * D, D_out); p["wc2"], p["bc2"] = fold(w, b, bn(D_out))
    w, b = lin(D_in, D_out); p["ws"], p["bs"] = fold(w, b, bn(D_out))
    # gamma params (torch inits them to 0; nonzero here so the attention paths are exercised)
    p["gammas"] = jnp.array([0.5, 0.3], jnp.float32)
    return p


# --------------------------- plain-JAX reference --------------------------------
def reference_new_points(grouped_xyz, center_xyz, knn_dist, grouped_points, p):
    """Plain-JAX reference of the StageBlock math with the original (unpadded,
    un-fused) weights.  Matmuls use bf16 operands with f32 accumulation to
    mirror the kernel's MXU-native precision; the cated_mlp input is written in
    the algebraically identical distributed form of concat(nei_out,grp_out)@wc1."""
    bf = jnp.bfloat16

    def mm(x, w, b):
        return jnp.dot(x.astype(bf), w.astype(bf),
                       preferred_element_type=jnp.float32) + b

    g1, g2 = p["gammas"][0], p["gammas"][1]
    B, S, K, _ = grouped_xyz.shape
    center = jnp.broadcast_to(center_xyz[:, :, None, :], grouped_xyz.shape)
    f10 = jnp.concatenate([center, grouped_xyz, grouped_xyz - center,
                           knn_dist[..., None]], -1)
    h = jax.nn.relu(mm(f10, p["w1"], p["b1"]))
    pos = jax.nn.relu(mm(h, p["w2"], p["b2"]))
    feat = jnp.concatenate([pos, grouped_points], -1)
    D = feat.shape[-1]

    q = mm(feat, p["wq"], p["bq"])
    k = mm(feat, p["wk"], p["bk"])
    v = mm(feat, p["wv"], p["bv"])
    att = jax.nn.softmax(
        jnp.einsum("bsqd,bspd->bsqp", q.astype(bf), k.astype(bf),
                   preferred_element_type=jnp.float32), -1)
    nei = jnp.einsum("bsqp,bspd->bsqd", att.astype(bf), v.astype(bf),
                     preferred_element_type=jnp.float32)

    flat = feat.reshape(B, S, K * D)
    att2 = jax.nn.softmax(
        jnp.einsum("bsc,btc->bst", flat.astype(bf), flat.astype(bf),
                   preferred_element_type=jnp.float32), -1)
    grp = jnp.einsum("bst,btc->bsc", att2.astype(bf), flat.astype(bf),
                     preferred_element_type=jnp.float32).reshape(B, S, K, D)

    A, Bw = p["wc1"][:D], p["wc1"][D:]
    h1 = jax.nn.relu(
        g1 * jnp.dot(nei.astype(bf), A.astype(bf), preferred_element_type=jnp.float32)
        + g2 * jnp.dot(grp.astype(bf), Bw.astype(bf), preferred_element_type=jnp.float32)
        + jnp.dot(feat.astype(bf), (A + Bw).astype(bf), preferred_element_type=jnp.float32)
        + p["bc1"])
    h2 = mm(h1, p["wc2"], p["bc2"])
    res = jax.nn.relu(mm(grouped_points, p["ws"], p["bs"]))
    return jnp.max(jax.nn.relu(h2 + res), axis=2)


# ------------------------------------ main --------------------------------------
if __name__ == "__main__":
    key = jax.random.PRNGKey(0)
    B, N, D_in = 2, 32, 4
    D_pos, D_out, npoint, K_num = 8, 16, 8, 8
    k1, k2, k3 = jax.random.split(key, 3)
    xyz = jax.random.normal(k1, (B, N, 3), jnp.float32)
    points = jax.random.normal(k2, (B, N, D_in), jnp.float32)
    params = make_params(k3, D_in, D_out, D_pos)

    center_xyz, new_points = stage_block_forward(xyz, points, params, npoint, K_num)
    new_points = jax.block_until_ready(new_points)
    assert center_xyz.shape == (B, npoint, 3)
    assert new_points.shape == (B, npoint, D_out)
    assert bool(jnp.all(jnp.isfinite(new_points.astype(jnp.float32))))

    # Sanity check against a plain-JAX reference of the same math.  The kernels
    # run bf16 matmuls (MXU native), fold gammas into the fused cated weights
    # before the bf16 cast, use an approximate softmax reciprocal and emit a
    # bf16 output, so allow a modest tolerance (observed differences ~1e-3).
    (_, _, gxyz, gpts, _, _, kdist) = sample_and_group(xyz, points, npoint, K_num)
    ref = reference_new_points(gxyz, center_xyz, kdist, gpts, params)
    np.testing.assert_allclose(np.asarray(new_points.astype(jnp.float32)),
                               np.asarray(ref), rtol=2e-2, atol=2e-2)

    print("KERNEL_OK")
</pallas_src>

<mosaic_0001>
module attributes {stable_mosaic.version = 11 : i64} {
  func.func @feat_nei_kernel(%arg0: i32, %arg1: i32, %arg2: memref<1x64x16xbf16, #tpu.memory_space<vmem>>, %arg3: memref<1x64x128xbf16, #tpu.memory_space<vmem>>, %arg4: memref<16x128xbf16, #tpu.memory_space<vmem>>, %arg5: memref<1x128xf32, #tpu.memory_space<vmem>>, %arg6: memref<128x128xbf16, #tpu.memory_space<vmem>>, %arg7: memref<1x128xf32, #tpu.memory_space<vmem>>, %arg8: memref<256x512xbf16, #tpu.memory_space<vmem>>, %arg9: memref<1x512xf32, #tpu.memory_space<vmem>>, %arg10: memref<1x64x256xbf16, #tpu.memory_space<vmem>>, %arg11: memref<1x64x256xbf16, #tpu.memory_space<vmem>>) attributes {dimension_semantics = [#tpu.dimension_semantics<parallel>, #tpu.dimension_semantics<parallel>], iteration_bounds = array<i64: 2, 1>, scalar_prefetch = 0 : i64, scratch_operands = 0 : i64, tpu.core_type = #tpu.core_type<tc>, window_params = [{transform_indices = @transform_0, window_bounds = array<i64: 1, 64, 16>}, {transform_indices = @transform_1, window_bounds = array<i64: 1, 64, 128>}, {pipeline_mode = #tpu.pipeline_mode<synchronous>, transform_indices = @transform_2, window_bounds = array<i64: 16, 128>}, {pipeline_mode = #tpu.pipeline_mode<synchronous>, transform_indices = @transform_3, window_bounds = array<i64: 1, 128>}, {pipeline_mode = #tpu.pipeline_mode<synchronous>, transform_indices = @transform_4, window_bounds = array<i64: 128, 128>}, {pipeline_mode = #tpu.pipeline_mode<synchronous>, transform_indices = @transform_5, window_bounds = array<i64: 1, 128>}, {pipeline_mode = #tpu.pipeline_mode<synchronous>, transform_indices = @transform_6, window_bounds = array<i64: 256, 512>}, {pipeline_mode = #tpu.pipeline_mode<synchronous>, transform_indices = @transform_7, window_bounds = array<i64: 1, 512>}, {transform_indices = @transform_8, window_bounds = array<i64: 1, 64, 256>}, {transform_indices = @transform_9, window_bounds = array<i64: 1, 64, 256>}]} {
    %c0 = arith.constant 0 : index
    %c0_0 = arith.constant 0 : index
    %c0_1 = arith.constant 0 : index
    %0 = vector.load %arg2[%c0, %c0_0, %c0_1] : memref<1x64x16xbf16, #tpu.memory_space<vmem>>, vector<1x64x16xbf16>
    %1 = vector.shape_cast %0 : vector<1x64x16xbf16> to vector<64x16xbf16>
    %c0_2 = arith.constant 0 : index
    %c0_3 = arith.constant 0 : index
    %2 = vector.load %arg4[%c0_2, %c0_3] : memref<16x128xbf16, #tpu.memory_space<vmem>>, vector<16x128xbf16>
    %cst = arith.constant dense<0.000000e+00> : vector<64x128xf32>
    %3 = tpu.matmul %1, %2, %cst {dimension_numbers = #tpu.dot_dimension_numbers<[1], [0], [0], [1], [0, 0, 1, 1], [], []>} : vector<64x16xbf16>, vector<16x128xbf16>, vector<64x128xf32> -> vector<64x128xf32>
    %c0_4 = arith.constant 0 : index
    %c0_5 = arith.constant 0 : index
    %4 = vector.load %arg5[%c0_4, %c0_5] : memref<1x128xf32, #tpu.memory_space<vmem>>, vector<1x128xf32>
    %5 = vector.broadcast %4 : vector<1x128xf32> to vector<64x128xf32>
    %6 = arith.addf %3, %5 : vector<64x128xf32>
    %cst_6 = arith.constant 0.000000e+00 : f32
    %7 = vector.broadcast %cst_6 : f32 to vector<64x128xf32>
    %8 = arith.maximumf %6, %7 : vector<64x128xf32>
    %9 = arith.truncf %8 : vector<64x128xf32> to vector<64x128xbf16>
    %c0_7 = arith.constant 0 : index
    %c0_8 = arith.constant 0 : index
    %10 = vector.load %arg6[%c0_7, %c0_8] : memref<128x128xbf16, #tpu.memory_space<vmem>>, vector<128x128xbf16>
    %cst_9 = arith.constant dense<0.000000e+00> : vector<64x128xf32>
    %11 = tpu.matmul %9, %10, %cst_9 {dimension_numbers = #tpu.dot_dimension_numbers<[1], [0], [0], [1], [0, 0, 1, 1], [], []>} : vector<64x128xbf16>, vector<128x128xbf16>, vector<64x128xf32> -> vector<64x128xf32>
    %c0_10 = arith.constant 0 : index
    %c0_11 = arith.constant 0 : index
    %12 = vector.load %arg7[%c0_10, %c0_11] : memref<1x128xf32, #tpu.memory_space<vmem>>, vector<1x128xf32>
    %13 = vector.broadcast %12 : vector<1x128xf32> to vector<64x128xf32>
    %14 = arith.addf %11, %13 : vector<64x128xf32>
    %cst_12 = arith.constant 0.000000e+00 : f32
    %15 = vector.broadcast %cst_12 : f32 to vector<64x128xf32>
    %16 = arith.maximumf %14, %15 : vector<64x128xf32>
    %17 = arith.truncf %16 : vector<64x128xf32> to vector<64x128xbf16>
    %c0_13 = arith.constant 0 : index
    %c0_14 = arith.constant 0 : index
    %c0_15 = arith.constant 0 : index
    %18 = vector.load %arg3[%c0_13, %c0_14, %c0_15] : memref<1x64x128xbf16, #tpu.memory_space<vmem>>, vector<1x64x128xbf16>
    %19 = vector.shape_cast %18 : vector<1x64x128xbf16> to vector<64x128xbf16>
    %20 = tpu.concatenate %17, %19 in 1 : vector<64x128xbf16>, vector<64x128xbf16> -> vector<64x256xbf16>
    %c0_16 = arith.constant 0 : index
    %c0_17 = arith.constant 0 : index
    %c0_18 = arith.constant 0 : index
    %21 = vector.load %arg10[%c0_16, %c0_17, %c0_18] : memref<1x64x256xbf16, #tpu.memory_space<vmem>>, vector<1x64x256xbf16>
    %22 = vector.shape_cast %21 : vector<1x64x256xbf16> to vector<64x256xbf16>
    %23 = vector.shape_cast %20 : vector<64x256xbf16> to vector<1x64x256xbf16>
    tpu.vector_store %arg10[%c0_16, %c0_17, %c0_18], %23 {strides = array<i32>} : memref<1x64x256xbf16, #tpu.memory_space<vmem>>, vector<1x64x256xbf16>,
    %c0_19 = arith.constant 0 : index
    %c0_20 = arith.constant 0 : index
    %24 = vector.load %arg8[%c0_19, %c0_20] : memref<256x512xbf16, #tpu.memory_space<vmem>>, vector<256x512xbf16>
    %cst_21 = arith.constant dense<0.000000e+00> : vector<64x512xf32>
    %25 = tpu.matmul %20, %24, %cst_21 {dimension_numbers = #tpu.dot_dimension_numbers<[1], [0], [0], [1], [0, 0, 1, 1], [], []>} : vector<64x256xbf16>, vector<256x512xbf16>, vector<64x512xf32> -> vector<64x512xf32>
    %c0_22 = arith.constant 0 : index
    %c0_23 = arith.constant 0 : index
    %26 = vector.load %arg9[%c0_22, %c0_23] : memref<1x512xf32, #tpu.memory_space<vmem>>, vector<1x512xf32>
    %27 = vector.broadcast %26 : vector<1x512xf32> to vector<64x512xf32>
    %28 = arith.addf %25, %27 : vector<64x512xf32>
    %29 = vector.extract_strided_slice %28 {offsets = [0, 0], sizes = [64, 128], strides = [1, 1]} : vector<64x512xf32> to vector<64x128xf32>
    %30 = arith.truncf %29 : vector<64x128xf32> to vector<64x128xbf16>
    %31 = vector.shape_cast %30 : vector<64x128xbf16> to vector<8x8x128xbf16>
    %32 = vector.extract_strided_slice %28 {offsets = [0, 128], sizes = [64, 128], strides = [1, 1]} : vector<64x512xf32> to vector<64x128xf32>
    %33 = arith.truncf %32 : vector<64x128xf32> to vector<64x128xbf16>
    %34 = vector.shape_cast %33 : vector<64x128xbf16> to vector<8x8x128xbf16>
    %35 = vector.extract_strided_slice %28 {offsets = [0, 256], sizes = [64, 256], strides = [1, 1]} : vector<64x512xf32> to vector<64x256xf32>
    %36 = arith.truncf %35 : vector<64x256xf32> to vector<64x256xbf16>
    %37 = vector.shape_cast %36 : vector<64x256xbf16> to vector<8x8x256xbf16>
    "tpu.trace_start"() <{level = 10 : i32, message = "sqd,spd->sqp"}> : () -> ()
    %cst_24 = arith.constant dense<0.000000e+00> : vector<8x8x8xf32>
    %38 = tpu.matmul %31, %34, %cst_24 {dimension_numbers = #tpu.dot_dimension_numbers<[2], [2], [1], [1], [0, 0, 0, 1, 1, 1], [0], [0]>} : vector<8x8x128xbf16>, vector<8x8x128xbf16>, vector<8x8x8xf32> -> vector<8x8x8xf32>
    "tpu.trace_stop"() : () -> ()
    %cst_25 = arith.constant dense<0xFF800000> : vector<8x8xf32>
    %39 = vector.multi_reduction <maximumf>, %38, %cst_25 [2] : vector<8x8x8xf32> to vector<8x8xf32>
    %40 = vector.shape_cast %39 : vector<8x8xf32> to vector<8x8x1xf32>
    %41 = vector.broadcast %40 : vector<8x8x1xf32> to vector<8x8x8xf32>
    %42 = arith.subf %38, %41 : vector<8x8x8xf32>
    %43 = math.exp %42 : vector<8x8x8xf32>
    %cst_26 = arith.constant dense<0.000000e+00> : vector<8x8xf32>
    %44 = vector.multi_reduction <add>, %43, %cst_26 [2] : vector<8x8x8xf32> to vector<8x8xf32>
    %45 = vector.shape_cast %44 : vector<8x8xf32> to vector<8x8x1xf32>
    %46 = tpu.reciprocal %45 {approx = true} : vector<8x8x1xf32> -> vector<8x8x1xf32>
    %47 = vector.broadcast %46 : vector<8x8x1xf32> to vector<8x8x8xf32>
    %48 = arith.mulf %43, %47 : vector<8x8x8xf32>
    %49 = arith.truncf %48 : vector<8x8x8xf32> to vector<8x8x8xbf16>
    "tpu.trace_start"() <{level = 10 : i32, message = "sqp,spd->sqd"}> : () -> ()
    %cst_27 = arith.constant dense<0.000000e+00> : vector<8x8x256xf32>
    %50 = tpu.matmul %49, %37, %cst_27 {dimension_numbers = #tpu.dot_dimension_numbers<[2], [1], [1], [2], [0, 0, 0, 1, 1, 2], [0], [0]>} : vector<8x8x8xbf16>, vector<8x8x256xbf16>, vector<8x8x256xf32> -> vector<8x8x256xf32>
    "tpu.trace_stop"() : () -> ()
    %51 = arith.truncf %50 : vector<8x8x256xf32> to vector<8x8x256xbf16>
    %52 = vector.shape_cast %51 : vector<8x8x256xbf16> to vector<64x256xbf16>
    %c0_28 = arith.constant 0 : index
    %c0_29 = arith.constant 0 : index
    %c0_30 = arith.constant 0 : index
    %53 = vector.load %arg11[%c0_28, %c0_29, %c0_30] : memref<1x64x256xbf16, #tpu.memory_space<vmem>>, vector<1x64x256xbf16>
    %54 = vector.shape_cast %53 : vector<1x64x256xbf16> to vector<64x256xbf16>
    %55 = vector.shape_cast %52 : vector<64x256xbf16> to vector<1x64x256xbf16>
    tpu.vector_store %arg11[%c0_28, %c0_29, %c0_30], %55 {strides = array<i32>} : memref<1x64x256xbf16, #tpu.memory_space<vmem>>, vector<1x64x256xbf16>,
    return
  }
  func.func @transform_0(%arg0: i32, %arg1: i32) -> (i32, i32, i32) {
    %c0_i32 = arith.constant 0 : i32
    %c0_i32_0 = arith.constant 0 : i32
    return %arg0, %arg1, %c0_i32 : i32, i32, i32
  }
  func.func @transform_1(%arg0: i32, %arg1: i32) -> (i32, i32, i32) {
    %c0_i32 = arith.constant 0 : i32
    %c0_i32_0 = arith.constant 0 : i32
    return %arg0, %arg1, %c0_i32 : i32, i32, i32
  }
  func.func @transform_2(%arg0: i32, %arg1: i32) -> (i32, i32) {
    %c0_i32 = arith.constant 0 : i32
    %c0_i32_0 = arith.constant 0 : i32
    %c0_i32_1 = arith.constant 0 : i32
    return %c0_i32, %c0_i32_0 : i32, i32
  }
  func.func @transform_3(%arg0: i32, %arg1: i32) -> (i32, i32) {
    %c0_i32 = arith.constant 0 : i32
    %c0_i32_0 = arith.constant 0 : i32
    %c0_i32_1 = arith.constant 0 : i32
    return %c0_i32, %c0_i32_0 : i32, i32
  }
  func.func @transform_4(%arg0: i32, %arg1: i32) -> (i32, i32) {
    %c0_i32 = arith.constant 0 : i32
    %c0_i32_0 = arith.constant 0 : i32
    %c0_i32_1 = arith.constant 0 : i32
    return %c0_i32, %c0_i32_0 : i32, i32
  }
  func.func @transform_5(%arg0: i32, %arg1: i32) -> (i32, i32) {
    %c0_i32 = arith.constant 0 : i32
    %c0_i32_0 = arith.constant 0 : i32
    %c0_i32_1 = arith.constant 0 : i32
    return %c0_i32, %c0_i32_0 : i32, i32
  }
  func.func @transform_6(%arg0: i32, %arg1: i32) -> (i32, i32) {
    %c0_i32 = arith.constant 0 : i32
    %c0_i32_0 = arith.constant 0 : i32
    %c0_i32_1 = arith.constant 0 : i32
    return %c0_i32, %c0_i32_0 : i32, i32
  }
  func.func @transform_7(%arg0: i32, %arg1: i32) -> (i32, i32) {
    %c0_i32 = arith.constant 0 : i32
    %c0_i32_0 = arith.constant 0 : i32
    %c0_i32_1 = arith.constant 0 : i32
    return %c0_i32, %c0_i32_0 : i32, i32
  }
  func.func @transform_8(%arg0: i32, %arg1: i32) -> (i32, i32, i32) {
    %c0_i32 = arith.constant 0 : i32
    %c0_i32_0 = arith.constant 0 : i32
    return %arg0, %arg1, %c0_i32 : i32, i32, i32
  }
  func.func @transform_9(%arg0: i32, %arg1: i32) -> (i32, i32, i32) {
    %c0_i32 = arith.constant 0 : i32
    %c0_i32_0 = arith.constant 0 : i32
    return %arg0, %arg1, %c0_i32 : i32, i32, i32
  }
}

module attributes {stable_mosaic.version = 11 : i64} {
  func.func @feat_nei_kernel(%arg0: i32, %arg1: i32, %arg2: memref<1x64x16xbf16, #tpu.memory_space<vmem>>, %arg3: memref<1x64x128xbf16, #tpu.memory_space<vmem>>, %arg4: memref<16x128xbf16, #tpu.memory_space<vmem>>, %arg5: memref<1x128xf32, #tpu.memory_space<vmem>>, %arg6: memref<128x128xbf16, #tpu.memory_space<vmem>>, %arg7: memref<1x128xf32, #tpu.memory_space<vmem>>, %arg8: memref<256x512xbf16, #tpu.memory_space<vmem>>, %arg9: memref<1x512xf32, #tpu.memory_space<vmem>>, %arg10: memref<1x64x256xbf16, #tpu.memory_space<vmem>>, %arg11: memref<1x64x256xbf16, #tpu.memory_space<vmem>>) attributes {dimension_semantics = [#tpu.dimension_semantics<parallel>, #tpu.dimension_semantics<parallel>], iteration_bounds = array<i64: 2, 1>, scalar_prefetch = 0 : i64, scratch_operands = 0 : i64, tpu.core_type = #tpu.core_type<tc>, window_params = [{transform_indices = @transform_0, window_bounds = array<i64: 1, 64, 16>}, {transform_indices = @transform_1, window_bounds = array<i64: 1, 64, 128>}, {pipeline_mode = #tpu.pipeline_mode<synchronous>, transform_indices = @transform_2, window_bounds = array<i64: 16, 128>}, {pipeline_mode = #tpu.pipeline_mode<synchronous>, transform_indices = @transform_3, window_bounds = array<i64: 1, 128>}, {pipeline_mode = #tpu.pipeline_mode<synchronous>, transform_indices = @transform_4, window_bounds = array<i64: 128, 128>}, {pipeline_mode = #tpu.pipeline_mode<synchronous>, transform_indices = @transform_5, window_bounds = array<i64: 1, 128>}, {pipeline_mode = #tpu.pipeline_mode<synchronous>, transform_indices = @transform_6, window_bounds = array<i64: 256, 512>}, {pipeline_mode = #tpu.pipeline_mode<synchronous>, transform_indices = @transform_7, window_bounds = array<i64: 1, 512>}, {transform_indices = @transform_8, window_bounds = array<i64: 1, 64, 256>}, {transform_indices = @transform_9, window_bounds = array<i64: 1, 64, 256>}]} {
    %c0 = arith.constant 0 : index
    %c0_0 = arith.constant 0 : index
    %c0_1 = arith.constant 0 : index
    %0 = vector.load %arg2[%c0, %c0_0, %c0_1] : memref<1x64x16xbf16, #tpu.memory_space<vmem>>, vector<1x64x16xbf16>
    %1 = vector.shape_cast %0 : vector<1x64x16xbf16> to vector<64x16xbf16>
    %c0_2 = arith.constant 0 : index
    %c0_3 = arith.constant 0 : index
    %2 = vector.load %arg4[%c0_2, %c0_3] : memref<16x128xbf16, #tpu.memory_space<vmem>>, vector<16x128xbf16>
    %cst = arith.constant dense<0.000000e+00> : vector<64x128xf32>
    %3 = tpu.matmul %1, %2, %cst {dimension_numbers = #tpu.dot_dimension_numbers<[1], [0], [0], [1], [0, 0, 1, 1], [], []>} : vector<64x16xbf16>, vector<16x128xbf16>, vector<64x128xf32> -> vector<64x128xf32>
    %c0_4 = arith.constant 0 : index
    %c0_5 = arith.constant 0 : index
    %4 = vector.load %arg5[%c0_4, %c0_5] : memref<1x128xf32, #tpu.memory_space<vmem>>, vector<1x128xf32>
    %5 = vector.broadcast %4 : vector<1x128xf32> to vector<64x128xf32>
    %6 = arith.addf %3, %5 : vector<64x128xf32>
    %cst_6 = arith.constant 0.000000e+00 : f32
    %7 = vector.broadcast %cst_6 : f32 to vector<64x128xf32>
    %8 = arith.maximumf %6, %7 : vector<64x128xf32>
    %9 = arith.truncf %8 : vector<64x128xf32> to vector<64x128xbf16>
    %c0_7 = arith.constant 0 : index
    %c0_8 = arith.constant 0 : index
    %10 = vector.load %arg6[%c0_7, %c0_8] : memref<128x128xbf16, #tpu.memory_space<vmem>>, vector<128x128xbf16>
    %cst_9 = arith.constant dense<0.000000e+00> : vector<64x128xf32>
    %11 = tpu.matmul %9, %10, %cst_9 {dimension_numbers = #tpu.dot_dimension_numbers<[1], [0], [0], [1], [0, 0, 1, 1], [], []>} : vector<64x128xbf16>, vector<128x128xbf16>, vector<64x128xf32> -> vector<64x128xf32>
    %c0_10 = arith.constant 0 : index
    %c0_11 = arith.constant 0 : index
    %12 = vector.load %arg7[%c0_10, %c0_11] : memref<1x128xf32, #tpu.memory_space<vmem>>, vector<1x128xf32>
    %13 = vector.broadcast %12 : vector<1x128xf32> to vector<64x128xf32>
    %14 = arith.addf %11, %13 : vector<64x128xf32>
    %cst_12 = arith.constant 0.000000e+00 : f32
    %15 = vector.broadcast %cst_12 : f32 to vector<64x128xf32>
    %16 = arith.maximumf %14, %15 : vector<64x128xf32>
    %17 = arith.truncf %16 : vector<64x128xf32> to vector<64x128xbf16>
    %c0_13 = arith.constant 0 : index
    %c0_14 = arith.constant 0 : index
    %c0_15 = arith.constant 0 : index
    %18 = vector.load %arg3[%c0_13, %c0_14, %c0_15] : memref<1x64x128xbf16, #tpu.memory_space<vmem>>, vector<1x64x128xbf16>
    %19 = vector.shape_cast %18 : vector<1x64x128xbf16> to vector<64x128xbf16>
    %20 = tpu.concatenate %17, %19 in 1 : vector<64x128xbf16>, vector<64x128xbf16> -> vector<64x256xbf16>
    %c0_16 = arith.constant 0 : index
    %c0_17 = arith.constant 0 : index
    %c0_18 = arith.constant 0 : index
    %21 = vector.load %arg10[%c0_16, %c0_17, %c0_18] : memref<1x64x256xbf16, #tpu.memory_space<vmem>>, vector<1x64x256xbf16>
    %22 = vector.shape_cast %21 : vector<1x64x256xbf16> to vector<64x256xbf16>
    %23 = vector.shape_cast %20 : vector<64x256xbf16> to vector<1x64x256xbf16>
    tpu.vector_store %arg10[%c0_16, %c0_17, %c0_18], %23 {strides = array<i32>} : memref<1x64x256xbf16, #tpu.memory_space<vmem>>, vector<1x64x256xbf16>,
    %c0_19 = arith.constant 0 : index
    %c0_20 = arith.constant 0 : index
    %24 = vector.load %arg8[%c0_19, %c0_20] : memref<256x512xbf16, #tpu.memory_space<vmem>>, vector<256x512xbf16>
    %cst_21 = arith.constant dense<0.000000e+00> : vector<64x512xf32>
    %25 = tpu.matmul %20, %24, %cst_21 {dimension_numbers = #tpu.dot_dimension_numbers<[1], [0], [0], [1], [0, 0, 1, 1], [], []>} : vector<64x256xbf16>, vector<256x512xbf16>, vector<64x512xf32> -> vector<64x512xf32>
    %c0_22 = arith.constant 0 : index
    %c0_23 = arith.constant 0 : index
    %26 = vector.load %arg9[%c0_22, %c0_23] : memref<1x512xf32, #tpu.memory_space<vmem>>, vector<1x512xf32>
    %27 = vector.broadcast %26 : vector<1x512xf32> to vector<64x512xf32>
    %28 = arith.addf %25, %27 : vector<64x512xf32>
    %29 = vector.extract_strided_slice %28 {offsets = [0, 0], sizes = [64, 128], strides = [1, 1]} : vector<64x512xf32> to vector<64x128xf32>
    %30 = arith.truncf %29 : vector<64x128xf32> to vector<64x128xbf16>
    %31 = vector.shape_cast %30 : vector<64x128xbf16> to vector<8x8x128xbf16>
    %32 = vector.extract_strided_slice %28 {offsets = [0, 128], sizes = [64, 128], strides = [1, 1]} : vector<64x512xf32> to vector<64x128xf32>
    %33 = arith.truncf %32 : vector<64x128xf32> to vector<64x128xbf16>
    %34 = vector.shape_cast %33 : vector<64x128xbf16> to vector<8x8x128xbf16>
    %35 = vector.extract_strided_slice %28 {offsets = [0, 256], sizes = [64, 256], strides = [1, 1]} : vector<64x512xf32> to vector<64x256xf32>
    %36 = arith.truncf %35 : vector<64x256xf32> to vector<64x256xbf16>
    %37 = vector.shape_cast %36 : vector<64x256xbf16> to vector<8x8x256xbf16>
    "tpu.trace_start"() <{level = 10 : i32, message = "sqd,spd->sqp"}> : () -> ()
    %cst_24 = arith.constant dense<0.000000e+00> : vector<8x8x8xf32>
    %38 = tpu.matmul %31, %34, %cst_24 {dimension_numbers = #tpu.dot_dimension_numbers<[2], [2], [1], [1], [0, 0, 0, 1, 1, 1], [0], [0]>} : vector<8x8x128xbf16>, vector<8x8x128xbf16>, vector<8x8x8xf32> -> vector<8x8x8xf32>
    "tpu.trace_stop"() : () -> ()
    %cst_25 = arith.constant dense<0xFF800000> : vector<8x8xf32>
    %39 = vector.multi_reduction <maximumf>, %38, %cst_25 [2] : vector<8x8x8xf32> to vector<8x8xf32>
    %40 = vector.shape_cast %39 : vector<8x8xf32> to vector<8x8x1xf32>
    %41 = vector.broadcast %40 : vector<8x8x1xf32> to vector<8x8x8xf32>
    %42 = arith.subf %38, %41 : vector<8x8x8xf32>
    %43 = math.exp %42 : vector<8x8x8xf32>
    %cst_26 = arith.constant dense<0.000000e+00> : vector<8x8xf32>
    %44 = vector.multi_reduction <add>, %43, %cst_26 [2] : vector<8x8x8xf32> to vector<8x8xf32>
    %45 = vector.shape_cast %44 : vector<8x8xf32> to vector<8x8x1xf32>
    %46 = tpu.reciprocal %45 {approx = true} : vector<8x8x1xf32> -> vector<8x8x1xf32>
    %47 = vector.broadcast %46 : vector<8x8x1xf32> to vector<8x8x8xf32>
    %48 = arith.mulf %43, %47 : vector<8x8x8xf32>
    %49 = arith.truncf %48 : vector<8x8x8xf32> to vector<8x8x8xbf16>
    "tpu.trace_start"() <{level = 10 : i32, message = "sqp,spd->sqd"}> : () -> ()
    %cst_27 = arith.constant dense<0.000000e+00> : vector<8x8x256xf32>
    %50 = tpu.matmul %49, %37, %cst_27 {dimension_numbers = #tpu.dot_dimension_numbers<[2], [1], [1], [2], [0, 0, 0, 1, 1, 2], [0], [0]>} : vector<8x8x8xbf16>, vector<8x8x256xbf16>, vector<8x8x256xf32> -> vector<8x8x256xf32>
    "tpu.trace_stop"() : () -> ()
    %51 = arith.truncf %50 : vector<8x8x256xf32> to vector<8x8x256xbf16>
    %52 = vector.shape_cast %51 : vector<8x8x256xbf16> to vector<64x256xbf16>
    %c0_28 = arith.constant 0 : index
    %c0_29 = arith.constant 0 : index
    %c0_30 = arith.constant 0 : index
    %53 = vector.load %arg11[%c0_28, %c0_29, %c0_30] : memref<1x64x256xbf16, #tpu.memory_space<vmem>>, vector<1x64x256xbf16>
    %54 = vector.shape_cast %53 : vector<1x64x256xbf16> to vector<64x256xbf16>
    %55 = vector.shape_cast %52 : vector<64x256xbf16> to vector<1x64x256xbf16>
    tpu.vector_store %arg11[%c0_28, %c0_29, %c0_30], %55 {strides = array<i32>} : memref<1x64x256xbf16, #tpu.memory_space<vmem>>, vector<1x64x256xbf16>,
    return
  }
  func.func @transform_0(%arg0: i32, %arg1: i32) -> (i32, i32, i32) {
    %c0_i32 = arith.constant 0 : i32
    %c0_i32_0 = arith.constant 0 : i32
    return %arg0, %arg1, %c0_i32 : i32, i32, i32
  }
  func.func @transform_1(%arg0: i32, %arg1: i32) -> (i32, i32, i32) {
    %c0_i32 = arith.constant 0 : i32
    %c0_i32_0 = arith.constant 0 : i32
    return %arg0, %arg1, %c0_i32 : i32, i32, i32
  }
  func.func @transform_2(%arg0: i32, %arg1: i32) -> (i32, i32) {
    %c0_i32 = arith.constant 0 : i32
    %c0_i32_0 = arith.constant 0 : i32
    %c0_i32_1 = arith.constant 0 : i32
    return %c0_i32, %c0_i32_0 : i32, i32
  }
  func.func @transform_3(%arg0: i32, %arg1: i32) -> (i32, i32) {
    %c0_i32 = arith.constant 0 : i32
    %c0_i32_0 = arith.constant 0 : i32
    %c0_i32_1 = arith.constant 0 : i32
    return %c0_i32, %c0_i32_0 : i32, i32
  }
  func.func @transform_4(%arg0: i32, %arg1: i32) -> (i32, i32) {
    %c0_i32 = arith.constant 0 : i32
    %c0_i32_0 = arith.constant 0 : i32
    %c0_i32_1 = arith.constant 0 : i32
    return %c0_i32, %c0_i32_0 : i32, i32
  }
  func.func @transform_5(%arg0: i32, %arg1: i32) -> (i32, i32) {
    %c0_i32 = arith.constant 0 : i32
    %c0_i32_0 = arith.constant 0 : i32
    %c0_i32_1 = arith.constant 0 : i32
    return %c0_i32, %c0_i32_0 : i32, i32
  }
  func.func @transform_6(%arg0: i32, %arg1: i32) -> (i32, i32) {
    %c0_i32 = arith.constant 0 : i32
    %c0_i32_0 = arith.constant 0 : i32
    %c0_i32_1 = arith.constant 0 : i32
    return %c0_i32, %c0_i32_0 : i32, i32
  }
  func.func @transform_7(%arg0: i32, %arg1: i32) -> (i32, i32) {
    %c0_i32 = arith.constant 0 : i32
    %c0_i32_0 = arith.constant 0 : i32
    %c0_i32_1 = arith.constant 0 : i32
    return %c0_i32, %c0_i32_0 : i32, i32
  }
  func.func @transform_8(%arg0: i32, %arg1: i32) -> (i32, i32, i32) {
    %c0_i32 = arith.constant 0 : i32
    %c0_i32_0 = arith.constant 0 : i32
    return %arg0, %arg1, %c0_i32 : i32, i32, i32
  }
  func.func @transform_9(%arg0: i32, %arg1: i32) -> (i32, i32, i32) {
    %c0_i32 = arith.constant 0 : i32
    %c0_i32_0 = arith.constant 0 : i32
    return %arg0, %arg1, %c0_i32 : i32, i32, i32
  }
}

</mosaic_0001>

<bundles_post_ra>
// kernel: tpu_custom_call.1
= control target key start
LH: loop header
LB: loop body
LE: loop exit
PB: predicated region body
PF: predicated region fallthrough
CT: control target
= control target key end

     0   :  { %s3331_s0 = inlined_call_operand.vmem [shape: bf16[2,64,16], index: 0, kind: input, shape index: {}]   ;;  %s3332_s1 = inlined_call_operand.vmem [shape: bf16[2,64,128], index: 1, kind: input, shape index: {}]   ;;  %s3333_s2 = inlined_call_operand.vmem [shape: bf16[16,128], index: 2, kind: input, shape index: {}]   ;;  %s3334_s3 = inlined_call_operand.vmem [shape: f32[1,128], index: 3, kind: input, shape index: {}]   ;;  %s3335_s4 = inlined_call_operand.hbm [shape: bf16[128,128], index: 4, kind: input, shape index: {}]   ;;  %s3336_s5 = inlined_call_operand.vmem [shape: f32[1,128], index: 5, kind: input, shape index: {}]   ;;  %s3337_s6 = inlined_call_operand.hbm [shape: bf16[256,512], index: 6, kind: input, shape index: {}]   ;;  %s3338_s7 = inlined_call_operand.vmem [shape: f32[1,512], index: 7, kind: input, shape index: {}]   ;;  %s3339_s8 = inlined_call_operand.hbm [shape: bf16[2,64,256], index: 8, kind: output, shape index: {0}]   ;;  %s3340_s9 = inlined_call_operand.hbm [shape: bf16[2,64,256], index: 9, kind: output, shape index: {1}]  }
   0x1   :  { %3344 = sst [smem:[#allocation16_spill]] %s3331_s0 }
   0x2   :  { %3345 = sst [smem:[#allocation17_spill]] %s3332_s1 }
   0x3   :  { %3346 = sst [smem:[#allocation18_spill]] %s3335_s4 }
   0x4   :  { %15 = vsyncpa [#allocation3], 0 }
   0x5   :  { %16 = vsyncpa [#allocation6], 0 }
   0x6   :  { %17 = vsyncpa [#allocation4], 0 }
   0x7   :  { %19 = vsyncpa [#allocation4 + $0x1], 0 }
   0x8   :  { %20 = vsyncpa [#allocation9], 0 }
   0x9   :  { %22 = vsyncpa [#allocation9 + $0x1], 0  ;;  %s2931_s30 = smov 0   ;;  %s2933_s10 = smov 0  }
   0xa   :  { %s2935_s11 = smov 0   ;;  %s2937_s12 = smov 0  }
   0xb   :  { %s2939_s13 = smov 0   ;;  %s2941_s14 = smov 0  }
   0xc LB: > { %3347 = sst [smem:[#allocation14_spill]] %s2867_s13  ;;  %s2121_s15 = sadd.s32 4294967295, %s2871_s14   ;;  %s2871_s14 = sphi %s2941_s14, %s28_s14   ;;  %s2867_s13 = sphi %s2939_s13, %s3358_s13   ;;  %s2863_s12 = sphi %s2937_s12, %s3357_s12   ;;  %s2859_s11 = sphi %s2935_s11, %s3361_s11   ;;  %s2855_s10 = sphi %s2933_s10, %s3360_s10   ;;  %s2851_s30 = sphi %s2931_s30, %s3359_s30  }
   0xd   : > { %s2122_s16 = sadd.s32 4294967294, %s2871_s14   ;;  %s40_s17 = sadd.s32 1, %s2867_s13 }
   0xe   : > { %s231_s18 = sadd.s32 1, %s2859_s11  ;;  %p42_p0 = scmp.ge.s32.totalorder %s40_s17, 2 }
   0xf   : > { %p241_p1 = scmp.ne.s32.totalorder %s2859_s11, %s2855_s10  ;;  %p242_p2 = scmp.eq.s32.totalorder %s2121_s15, 1 }
  0x10   : > { %p247_p3 = scmp.ne.s32.totalorder %s2855_s10, %s2851_s30  ;;  %s3363_s17 = smov (%p42_p0, %s40_s17), 0 }
  0x11   : > { %3348 = sst [smem:[#allocation15_spill]] %s3363_s17  ;;  %p2971_p4 = por %p242_p2, %p241_p1 }
  0x12   : > { %p248_p5 = scmp.eq.s32.totalorder %s2122_s16, 1  ;;  %s226_s20 = ssub.s32 %s2867_s13, %s3363_s17 }
  0x13   : > { %p2123_p6 = scmp.ge.s32.totalorder %s2871_s14, 1  ;;  %p229_p7 = scmp.eq.s32.totalorder %s226_s20, 0 }
  0x14   : > { %p2978_p8 = por %p248_p5, %p247_p3  ;;  %p283_p9 = scmp.lt.s32.totalorder %s2871_s14, 3 }
  0x15   : > { %s2984_s22 = scalar_select %p229_p7, %s2859_s11, %s231_s18  }
  0x16   : > { %p2986_p10 = pnand %p2123_p6, %p283_p9  ;;  %p2990_p11 = scmp.eq.s32.totalorder %s2121_s15, 0 }
  0x17   : > { %s3353_s4 = sld [smem:[#allocation18_spill]]  ;;  %s2873_s28 = smov [#allocation2]  }
  0x18   : > { %p2584_p12 = pneg %p2986_p10  ;;  %s302_s29 = sshll.u32 %s2873_s28, 4  ;;  %s303_s29 = int_to_ptr.vmem [resolvable:$true] %s302_s29 }
  0x19   : > { %s317_s15 = sshll.u32 %s3337_s6, 4  ;;  %s2874_s20 = smov 64   ;;  %s318_s15 = int_to_ptr.hbm [resolvable:$true] %s317_s15 }
  0x1a   : > { %p2585_p13 = pnand %p2990_p11, %p2584_p12  ;;  %s2875_s17 = smov 4  }
  0x1b   : > { %s2876_s13 = smov [#allocation5]   ;;  %s2877_s26 = smov 256  }
  0x1c   : > { %s319_s25 = sshll.u32 %s2876_s13, 4  ;;  %364 = sbr.rel (%p2986_p10) target bundleno = 1051 (0x41b), region = 52  ;;  %s320_s25 = int_to_ptr.vmem [resolvable:$true] %s319_s25 }
  0x1d   : > { %s300_s27 = sshll.u32 %s3353_s4, 4  ;;  %s2878_s4 = smov 16   ;;  %s301_s27 = int_to_ptr.hbm [resolvable:$true] %s300_s27 }
  0x1e   : > { %2587 = dma.hbm_to_vmem [thread:$0]  (!%p2585_p13), %s301_s27, 1024, %s303_s29, [#allocation3], %s2874_s20, %s2874_s20, %s2875_s17  }
  0x1f   : > { %2590 = dma.hbm_to_vmem [thread:$0]  (!%p2585_p13), %s318_s15, 8192, %s320_s25, [#allocation6], %s2877_s26, %s2877_s26, %s2878_s4  }
  0x21   : > { %2834 = dma.done.wait (%p2990_p11), [#allocation3], 1024  }
  0x22   : > { %2836 = vsyncadd (%p2990_p11), [#allocation3], 4294966272 }
  0x23   : > { %2838 = dma.done.wait (%p2990_p11), [#allocation6], 8192  }
  0x24   : > { %2840 = vsyncadd (%p2990_p11), [#allocation6], 4294959104  ;;  %p425_p0 = scmp.lt.s32.totalorder %s2863_s12, 1  ;;  %s3354_s0 = sld [smem:[#allocation16_spill]]  ;;  %v2478_v0 = vld [vmem:[%s3333_s2] sm:$0xff]  ;;  %vm487_vm0 = vcmask 130048  }
  0x25   : > { %507 = vmatpush.bf16.msra.mxu0 %v2478_v0  ;;  %v2486_v3 = vld [vmem:[#allocation2 + $0x38] sm:$0xff]  ;;  %v2485_v4 = vld [vmem:[#allocation2 + $0x30] sm:$0xff]  ;;  %v2484_v5 = vld [vmem:[#allocation2 + $0x28] sm:$0xff]  ;;  %s3355_s1 = sld [smem:[#allocation17_spill]]  ;;  %vm1593_vm1 = vcmask 1043456   ;;  %vm1488_vm2 = vcmask 64512  }
  0x26   : > { %s3016_s13 = scalar_select %p425_p0, %s2863_s12, 1  ;;  %609 = vmatpush.bf16.msra.mxu1 %v2486_v3  ;;  %v2483_v6 = vld [vmem:[#allocation2 + $0x20] sm:$0xff]  ;;  %v2482_v9 = vld [vmem:[#allocation2 + $0x18] sm:$0xff]  ;;  %v2481_v10 = vld [vmem:[#allocation2 + $0x10] sm:$0xff] }
  0x27   : > { %v2480_v11 = vld [vmem:[#allocation2 + $0x8] sm:$0xff]  ;;  %v2479_v12 = vld [vmem:[#allocation2] sm:$0xff]  ;;  %v2436_v29 = vld [vmem:[#allocation5 + $0x1f0] sm:$0xf0]  ;;  %s2551_s28 = sshll.u32 %s2863_s12, 6 }
  0x28   : > { %s2472_s4 = sshll.u32 %s3016_s13, 5  ;;  %v3030_v14 = vld [vmem:[%s3334_s3] ss:$0 sm:$0xff]  ;;  %v2547_v28 = vld [vmem:[#allocation5 + $0x1e4] sm:$0xf]  ;;  %s3064_s13 = sand.u32 1, %s2855_s10  }
  0x29   : > { %v2543_v30 = vld [vmem:[#allocation5 + $0x1c4] sm:$0xf]  ;;  %v2439_v32 = vor.u32 %v2547_v28, %v2436_v29  ;;  %v2420_v33 = vld [vmem:[#allocation5 + $0x1d0] sm:$0xf0]  ;;  %v2306_v34 = vld [vmem:[#allocation5 + $0xe0] sm:$0xf]  ;;  %s1942_s16 = scalar_lea.hbm %s3339_s8, %s2551_s28 }
  0x2a   : > { %s432_s27 = scalar_lea.vmem %s3354_s0, %s2472_s4  ;;  %610 = vmatpush.bf16.msra.mxu1 %v2485_v4  ;;  %v2517_v35 = vld [vmem:[#allocation5 + $0xec] sm:$0xf0]  ;;  %v2515_v37 = vld [vmem:[#allocation5 + $0xe4] sm:$0xf]  ;;  %v2308_v38 = vld [vmem:[#allocation5 + $0xf0] sm:$0xf0]  ;;  %v2423_v40 = vor.u32 %v2543_v30, %v2420_v33 }
  0x2b   : > { %v2474_v1 = vld [vmem:[%s432_s27] sm:$0xff]  ;;  %v2475_v2 = vld [vmem:[%s432_s27 + $0x8] sm:$0xff]  ;;  %v2476_v7 = vld [vmem:[%s432_s27 + $0x10] sm:$0xff]  ;;  %v2307_v36 = vor.u32 %v2517_v35, %v2306_v34  ;;  %v2311_v41 = vor.u32 %v2515_v37, %v2308_v38  ;;  %s3045_s20 = scalar_lea.vmem %s3355_s1, %s2472_s4  ;;  %s3343_s4 = sshll.u32 %s3064_s13, 6 }
  0x2c   : > { %2156 = vmatmul.msk.bf16.vlgmr.msra.gmra.mxu0 %vm487_vm0, %v2474_v1  ;;  %v2477_v8 = vld [vmem:[%s432_s27 + $0x18] sm:$0xff]  ;;  %v2434_v39 = vld [vmem:[#allocation5 + $0x1e0] sm:$0xf]  ;;  %v2549_v42 = vld [vmem:[#allocation5 + $0x1ec] sm:$0xf0]  ;;  %s3071_s17 = scalar_lea.vmem [#allocation7], %s3343_s4 }
  0x2d   : > { %v2539_v43 = vld [vmem:[#allocation5 + $0x1a4] sm:$0xf]  ;;  %1128 = vmatpush.bf16.msra.mxu2 %v2307_v36  ;;  %v2435_v44 = vor.u32 %v2549_v42, %v2434_v39  ;;  %v2404_v45 = vld [vmem:[#allocation5 + $0x1b0] sm:$0xf0]  ;;  %v2290_v46 = vld [vmem:[#allocation5 + $0xc0] sm:$0xf]  ;;  %1186 = vmatpush.bf16.msrb.mxu0 %v2311_v41 }
  0x2e   : > { %611 = vmatpush.bf16.msra.mxu1 %v2484_v5  ;;  %v2513_v47 = vld [vmem:[#allocation5 + $0xcc] sm:$0xf0]  ;;  %v2511_v49 = vld [vmem:[#allocation5 + $0xc4] sm:$0xf]  ;;  %v2292_v50 = vld [vmem:[#allocation5 + $0xd0] sm:$0xf0]  ;;  %v2407_v56 = vor.u32 %v2539_v43, %v2404_v45 }
  0x2f   : > { %v2291_v48 = vor.u32 %v2513_v47, %v2290_v46  ;;  %v2418_v51 = vld [vmem:[#allocation5 + $0x1c0] sm:$0xf]  ;;  %1157 = vmatpush.bf16.msra.mxu3 %v2435_v44  ;;  %v2295_v52 = vor.u32 %v2511_v49, %v2292_v50  ;;  %v2545_v53 = vld [vmem:[#allocation5 + $0x1cc] sm:$0xf0]  ;;  %v2535_v54 = vld [vmem:[#allocation5 + $0x184] sm:$0xf] }
  0x30   : > { %v2388_v55 = vld [vmem:[#allocation5 + $0x190] sm:$0xf0]  ;;  %v2419_v57 = vor.u32 %v2545_v53, %v2418_v51  ;;  %v2274_v58 = vld [vmem:[#allocation5 + $0xa0] sm:$0xf]  ;;  %v2509_v59 = vld [vmem:[#allocation5 + $0xac] sm:$0xf0] }
  0x31   : > { %v2507_v60 = vld [vmem:[#allocation5 + $0xa4] sm:$0xf]  ;;  %1129 = vmatpush.bf16.msra.mxu2 %v2291_v48  ;;  %v2275_v62 = vor.u32 %v2509_v59, %v2274_v58  ;;  %v2276_v63 = vld [vmem:[#allocation5 + $0xb0] sm:$0xf0]  ;;  %v2402_v0 = vld [vmem:[#allocation5 + $0x1a0] sm:$0xf]  ;;  %1187 = vmatpush.bf16.msrb.mxu0 %v2295_v52 }
  0x32   : > { %612 = vmatpush.bf16.msra.mxu1 %v2483_v6  ;;  %v2541_v1 = vld [vmem:[#allocation5 + $0x1ac] sm:$0xf0]  ;;  %v2279_v3 = vor.u32 %v2507_v60, %v2276_v63  ;;  %v2391_v6 = vor.u32 %v2535_v54, %v2388_v55  ;;  %v2503_v28 = vld [vmem:[#allocation5 + $0x84] sm:$0xf]  ;;  %v2356_v34 = vld [vmem:[#allocation5 + $0x150] sm:$0xf0] }
  0x33   : > { %1158 = vmatpush.bf16.msra.mxu3 %v2419_v57  ;;  %v2403_v5 = vor.u32 %v2541_v1, %v2402_v0  ;;  %v2527_v33 = vld [vmem:[#allocation5 + $0x144] sm:$0xf]  ;;  %v2354_v35 = vld [vmem:[#allocation5 + $0x140] sm:$0xf]  ;;  %v2529_v36 = vld [vmem:[#allocation5 + $0x14c] sm:$0xf0] }
  0x34   : > { %v2242_v37 = vld [vmem:[#allocation5 + $0x60] sm:$0xf]  ;;  %v2501_v38 = vld [vmem:[#allocation5 + $0x6c] sm:$0xf0]  ;;  %v2499_v39 = vld [vmem:[#allocation5 + $0x64] sm:$0xf] }
  0x35   : > { %1130 = vmatpush.bf16.msra.mxu2 %v2275_v62  ;;  %1188 = vmatpush.bf16.msrb.mxu0 %v2279_v3  ;;  %v2243_v41 = vor.u32 %v2501_v38, %v2242_v37  ;;  %v2244_v42 = vld [vmem:[#allocation5 + $0x70] sm:$0xf0]  ;;  %v2523_v44 = vld [vmem:[#allocation5 + $0x124] sm:$0xf]  ;;  %v2338_v47 = vld [vmem:[#allocation5 + $0x120] sm:$0xf] }
  0x36   : > { %613 = vmatpush.bf16.msra.mxu1 %v2482_v9  ;;  %v2531_v9 = vld [vmem:[#allocation5 + $0x164] sm:$0xf]  ;;  %v2247_v43 = vor.u32 %v2499_v39, %v2244_v42  ;;  %v2340_v45 = vld [vmem:[#allocation5 + $0x130] sm:$0xf0]  ;;  %v2525_v48 = vld [vmem:[#allocation5 + $0x12c] sm:$0xf0] }
  0x37   : > { %1159 = vmatpush.bf16.msra.mxu3 %v2403_v5  ;;  %v2343_v46 = vor.u32 %v2523_v44, %v2340_v45  ;;  %v2226_v49 = vld [vmem:[#allocation5 + $0x40] sm:$0xf]  ;;  %v2497_v50 = vld [vmem:[#allocation5 + $0x4c] sm:$0xf0]  ;;  %v2339_v51 = vor.u32 %v2525_v48, %v2338_v47  ;;  %v2495_v53 = vld [vmem:[#allocation5 + $0x44] sm:$0xf] }
  0x38   : > { %v2227_v52 = vor.u32 %v2497_v50, %v2226_v49  ;;  %v2228_v54 = vld [vmem:[#allocation5 + $0x50] sm:$0xf0]  ;;  %v2322_v59 = vld [vmem:[#allocation5 + $0x100] sm:$0xf]  ;;  %v2521_v60 = vld [vmem:[#allocation5 + $0x10c] sm:$0xf0] }
  0x39   : > { %v2231_v55 = vor.u32 %v2495_v53, %v2228_v54  ;;  %v2324_v57 = vld [vmem:[#allocation5 + $0x110] sm:$0xf0]  ;;  %v2493_v62 = vld [vmem:[#allocation5 + $0x2c] sm:$0xf0]  ;;  %v2491_v63 = vld [vmem:[#allocation5 + $0x24] sm:$0xf]  ;;  %v2323_v0 = vor.u32 %v2521_v60, %v2322_v59 }
  0x3a   : > { %614 = vmatpush.bf16.msra.mxu1 %v2481_v10  ;;  %v2372_v10 = vld [vmem:[#allocation5 + $0x170] sm:$0xf0]  ;;  %v2194_v5 = vld [vmem:[#allocation5] sm:$0xf]  ;;  %v2442_v38 = vld [vmem:[#allocation5 + $0x1e8] sm:$0xf] }
  0x3b   : > { %v2550_v39 = vld [vmem:[#allocation5 + $0x1f4] sm:$0xf0]  ;;  %v2444_v42 = vld [vmem:[#allocation5 + $0x1f8] sm:$0xf0]  ;;  %v2512_v49 = vld [vmem:[#allocation5 + $0xcc] sm:$0xf] }
  0x3c   : > { %2157 = vmatmul.msk.bf16.gmra.mxu0 %vm487_vm0, %v2475_v2  ;;  %v2514_v47 = vld [vmem:[#allocation5 + $0xd4] sm:$0xf0]  ;;  %v2300_v50 = vld [vmem:[#allocation5 + $0xd8] sm:$0xf0]  ;;  %v2426_v53 = vld [vmem:[#allocation5 + $0x1c8] sm:$0xf] }
  0x3d   : > { %v2546_v54 = vld [vmem:[#allocation5 + $0x1d4] sm:$0xf0]  ;;  %s1943_s18 = sshll.u32 %s3071_s17, 4  ;;  %s1945_s15 = sshll.u32 %s1942_s16, 4  ;;  %s1944_s18 = int_to_ptr.vmem [resolvable:$true] %s1943_s18  ;;  %s1946_s15 = int_to_ptr.hbm [resolvable:$true] %s1945_s15 }
  0x3e   : > { %615 = vmatpush.bf16.msra.mxu1 %v2480_v11  ;;  %s2767_s25 = sshra.s32 %s1946_s15, 4  ;;  %s2773_s4 = scalar_lea.hbm %s3339_s8, 128  ;;  %s2768_s25 = int_to_ptr.hbm [resolvable:$true] %s2767_s25 }
  0x3f   : > { %s2769_s26 = scalar_lea.hbm %s2768_s25, 64  ;;  %p2774_p5 = scmp.lt.s32.totalorder %s2768_s25, %s3339_s8 }
  0x40   : > { %p2770_p1 = scmp.ne.s32.totalorder %s2768_s25, %s2769_s26  ;;  %p2775_p6 = scmp.lt.s32.totalorder %s2773_s4, %s2769_s26 }
  0x42   : > { %616 = vmatpush.bf16.msra.mxu1 %v2479_v12  ;;  %v2375_v12 = vor.u32 %v2531_v9, %v2372_v10  ;;  %v2196_v9 = vld [vmem:[#allocation5 + $0x10] sm:$0xf0]  ;;  %p2771_p2 = pnand %p2770_p1, %p2971_p4  ;;  %p2776_p7 = por %p2775_p6, %p2774_p5 }
  0x44   : > { %p2772_p3 = pneg %p2771_p2 }
  0x46   : > { %1215 = vmatpush.bf16.msrb.mxu1 %v2439_v32  ;;  %p2777_p9 = pnand %p2776_p7, %p2772_p3 }
  0x4a   : > { %1216 = vmatpush.bf16.msrb.mxu1 %v2423_v40  ;;  %v2355_v40 = vor.u32 %v2529_v36, %v2354_v35  ;;  %v2316_v35 = vld [vmem:[#allocation5 + $0xf8] sm:$0xf0] }
  0x4c   : > { %2158 = vmatmul.msk.bf16.gmra.mxu0 %vm487_vm0, %v2476_v7 }
  0x4e   : > { %1217 = vmatpush.bf16.msrb.mxu1 %v2407_v56  ;;  %v2519_v56 = vld [vmem:[#allocation5 + $0x104] sm:$0xf] }
  0x4f   : > { %v2327_v58 = vor.u32 %v2519_v56, %v2324_v57  ;;  %v2427_v57 = vor.u32 %v2546_v54, %v2426_v53  ;;  %v2496_v53 = vld [vmem:[#allocation5 + $0x4c] sm:$0xf]  ;;  %v2236_v54 = vld [vmem:[#allocation5 + $0x58] sm:$0xf0] }
  0x52   : > { %1218 = vmatpush.bf16.msrb.mxu1 %v2391_v6  ;;  %v2489_v6 = vld [vmem:[#allocation5 + $0xc] sm:$0xf0] }
  0x56   : > { %1219 = vmatpush.bf16.msrb.mxu1 %v2375_v12  ;;  %v3058_v12 = vld [vmem:[%s3336_s5] ss:$0 sm:$0xff] }
  0x5c   : > { %2159 = vmatmul.msk.bf16.gmra.mxu0 %vm487_vm0, %v2477_v8 }
  0xa9   : > { %v509_v13 = vpop.f32.mrf.mxu0 }
  0xaa   : > { %v510_v15 = vadd.f32 %v3030_v14, %v509_v13 }
  0xac   : > { %v529_v18 = vmax.f32 %v510_v15, 0.0 }
  0xb1   : > { %v511_v16 = vpop.f32.mrf.mxu0 }
  0xb2   : > { %v512_v17 = vadd.f32 %v3030_v14, %v511_v16 }
  0xb4   : > { %v530_v19 = vmax.f32 %v512_v17, 0.0 }
  0xb6   : > { %v537_v20 = vpack.c.bf16 %v530_v19, %v529_v18 }
  0xb8   : > { %617 = vmatmul.bf16.vlgmr.msra.gmra.mxu1 %v537_v20 }
  0xb9   : > { %v514_v21 = vpop.f32.mrf.mxu0 }
  0xba   : > { %v515_v22 = vadd.f32 %v3030_v14, %v514_v21  ;;  %v2386_v21 = vld [vmem:[#allocation5 + $0x180] sm:$0xf] }
  0xbc   : > { %v531_v25 = vmax.f32 %v515_v22, 0.0  ;;  %v2537_v22 = vld [vmem:[#allocation5 + $0x18c] sm:$0xf0] }
  0xc1   : > { %v516_v23 = vpop.f32.mrf.mxu0 }
  0xc2   : > { %v517_v24 = vadd.f32 %v3030_v14, %v516_v23  ;;  %v2387_v23 = vor.u32 %v2537_v22, %v2386_v21 }
  0xc4   : > { %v532_v26 = vmax.f32 %v517_v24, 0.0  ;;  %1160 = vmatpush.bf16.msra.mxu3 %v2387_v23  ;;  %v2370_v24 = vld [vmem:[#allocation5 + $0x160] sm:$0xf] }
  0xc6   : > { %v538_v27 = vpack.c.bf16 %v532_v26, %v531_v25  ;;  %v2533_v25 = vld [vmem:[#allocation5 + $0x16c] sm:$0xf0]  ;;  %v2258_v26 = vld [vmem:[#allocation5 + $0x80] sm:$0xf] }
  0xc7   : > { %v2371_v29 = vor.u32 %v2533_v25, %v2370_v24  ;;  %v3075_v24 = vld [vmem:[%s3045_s20 + $0x10] sm:$0xff]  }
  0xc8   : > { %622 = vmatmul.bf16.gmra.mxu1 %v538_v27  ;;  %v2505_v27 = vld [vmem:[#allocation5 + $0x8c] sm:$0xf0] }
  0xc9   : > { %v519_v31 = vpop.f32.mrf.mxu0  ;;  %v2259_v30 = vor.u32 %v2505_v27, %v2258_v26  ;;  %1161 = vmatpush.bf16.msra.mxu3 %v2371_v29 }
  0xca   : > { %v520_v61 = vadd.f32 %v3030_v14, %v519_v31  ;;  %v2260_v31 = vld [vmem:[#allocation5 + $0x90] sm:$0xf0] }
  0xcb   : > { %v2263_v32 = vor.u32 %v2503_v28, %v2260_v31  ;;  %1131 = vmatpush.bf16.msra.mxu2 %v2259_v30 }
  0xcc   : > { %v533_v7 = vmax.f32 %v520_v61, 0.0  ;;  %v2210_v61 = vld [vmem:[#allocation5 + $0x20] sm:$0xf] }
  0xcd   : > { %1189 = vmatpush.bf16.msrb.mxu0 %v2263_v32  ;;  %1162 = vmatpush.bf16.msra.mxu3 %v2355_v40  ;;  %v2211_v1 = vor.u32 %v2493_v62, %v2210_v61  ;;  %v2314_v32 = vld [vmem:[#allocation5 + $0xe8] sm:$0xf]  ;;  %v2443_v40 = vor.u32 %v2550_v39, %v2442_v38  ;;  %v2500_v38 = vld [vmem:[#allocation5 + $0x6c] sm:$0xf] }
  0xce   : > { %v2282_v62 = vld [vmem:[#allocation5 + $0xa8] sm:$0xf] }
  0xcf   : > { %1132 = vmatpush.bf16.msra.mxu2 %v2243_v41  ;;  %v2548_v41 = vld [vmem:[#allocation5 + $0x1ec] sm:$0xf] }
  0xd0   : > { %v2447_v45 = vor.u32 %v2548_v41, %v2444_v42 }
  0xd1   : > { %v521_v2 = vpop.f32.mrf.mxu0  ;;  %1190 = vmatpush.bf16.msrb.mxu0 %v2247_v43  ;;  %1163 = vmatpush.bf16.msra.mxu3 %v2339_v51 }
  0xd2   : > { %v522_v4 = vadd.f32 %v3030_v14, %v521_v2  ;;  %v2212_v2 = vld [vmem:[#allocation5 + $0x30] sm:$0xf0] }
  0xd3   : > { %1133 = vmatpush.bf16.msra.mxu2 %v2227_v52  ;;  %v2215_v3 = vor.u32 %v2491_v63, %v2212_v2  ;;  %v2303_v52 = vor.u32 %v2512_v49, %v2300_v50  ;;  %v2510_v63 = vld [vmem:[#allocation5 + $0xb4] sm:$0xf0]  ;;  %v2284_v2 = vld [vmem:[#allocation5 + $0xb8] sm:$0xf0]  ;;  %v2563_v50 = vunpack.c.l.b16 %v3075_v24 }
  0xd4   : > { %v534_v8 = vmax.f32 %v522_v4, 0.0  ;;  %v3048_v4 = vld [vmem:[%s3045_s20] sm:$0xff]  }
  0xd5   : > { %1191 = vmatpush.bf16.msrb.mxu0 %v2231_v55  ;;  %1164 = vmatpush.bf16.msra.mxu3 %v2323_v0  ;;  %v2556_v26 = vunpack.c.h.b16 %v3048_v4  ;;  %v2544_v55 = vld [vmem:[#allocation5 + $0x1cc] sm:$0xf] }
  0xd6   : > { %v539_v11 = vpack.c.bf16 %v534_v8, %v533_v7  ;;  %v2487_v7 = vld [vmem:[#allocation5 + $0x4] sm:$0xf]  ;;  %v2195_v8 = vor.u32 %v2489_v6, %v2194_v5  ;;  %v2508_v0 = vld [vmem:[#allocation5 + $0xac] sm:$0xf]  ;;  %v2410_v6 = vld [vmem:[#allocation5 + $0x1a8] sm:$0xf] }
  0xd7   : > { %1134 = vmatpush.bf16.msra.mxu2 %v2211_v1  ;;  %v2199_v10 = vor.u32 %v2487_v7, %v2196_v9  ;;  %v2283_v1 = vor.u32 %v2510_v63, %v2282_v62  ;;  %v2287_v5 = vor.u32 %v2508_v0, %v2284_v2  ;;  %v2542_v7 = vld [vmem:[#allocation5 + $0x1b4] sm:$0xf0]  ;;  %v2364_v62 = vld [vmem:[#allocation5 + $0x158] sm:$0xf0]  ;;  %v2218_v63 = vld [vmem:[#allocation5 + $0x28] sm:$0xf] }
  0xd8   : > { %627 = vmatmul.bf16.gmra.mxu1 %v539_v11  ;;  %1165 = vmatmul.bf16.vlgmr.msra.gmra.mxu3 %v3048_v4  ;;  %v3053_v11 = vld [vmem:[%s3045_s20 + $0x8] sm:$0xff]   ;;  %v2411_v9 = vor.u32 %v2542_v7, %v2410_v6  ;;  %v2494_v0 = vld [vmem:[#allocation5 + $0x34] sm:$0xf0]  ;;  %v2220_v6 = vld [vmem:[#allocation5 + $0x38] sm:$0xf0] }
  0xd9   : > { %v524_v13 = vpop.f32.mrf.mxu0  ;;  %1192 = vmatpush.bf16.msrb.mxu0 %v2215_v3  ;;  %v2559_v44 = vunpack.c.l.b16 %v3053_v11  ;;  %1273 = vmatpush.bf16.msrb.mxu3 %v2443_v40  ;;  %v2252_v40 = vld [vmem:[#allocation5 + $0x78] sm:$0xf0]  ;;  %v2346_v7 = vld [vmem:[#allocation5 + $0x128] sm:$0xf] }
  0xda   : > { %v525_v15 = vadd.f32 %v3030_v14, %v524_v13  ;;  %v2255_v42 = vor.u32 %v2500_v38, %v2252_v40 }
  0xdb   : > { %1135 = vmatpush.bf16.msra.mxu2 %v2195_v8  ;;  %v3093_v8 = vld [vmem:[%s3045_s20 + $0x18] sm:$0xff]   ;;  %s1923_s20 = scalar_lea.sflag [#allocation4], %s3064_s13 }
  0xdc   : > { %v535_v18 = vmax.f32 %v525_v15, 0.0 }
  0xdd   : > { %1193 = vmatpush.bf16.msrb.mxu0 %v2199_v10  ;;  %1274 = vmatpush.bf16.msrb.mxu3 %v2427_v57  ;;  %v2540_v10 = vld [vmem:[#allocation5 + $0x1ac] sm:$0xf]  ;;  %v2362_v57 = vld [vmem:[#allocation5 + $0x148] sm:$0xf] }
  0xe1   : > { %v526_v16 = vpop.f32.mrf.mxu0  ;;  %1275 = vmatpush.bf16.msrb.mxu3 %v2411_v9 }
  0xe2   : > { %v527_v17 = vadd.f32 %v3030_v14, %v526_v16  ;;  %v2359_v14 = vor.u32 %v2527_v33, %v2356_v34  ;;  %v2518_v33 = vld [vmem:[#allocation5 + $0xf4] sm:$0xf0]  ;;  %v2516_v34 = vld [vmem:[#allocation5 + $0xec] sm:$0xf] }
  0xe3   : > { %v2319_v37 = vor.u32 %v2516_v34, %v2316_v35 }
  0xe4   : > { %v536_v19 = vmax.f32 %v527_v17, 0.0  ;;  %1220 = vmatpush.bf16.msrb.mxu1 %v2359_v14  ;;  %v2315_v14 = vor.u32 %v2518_v33, %v2314_v32  ;;  %v2396_v32 = vld [vmem:[#allocation5 + $0x198] sm:$0xf0] }
  0xe5   : > { %1302 = vmatpush.bf16.msra.mxu0 %v2319_v37  ;;  %v2502_v37 = vld [vmem:[#allocation5 + $0x74] sm:$0xf0] }
  0xe6   : > { %v540_v20 = vpack.c.bf16 %v536_v19, %v535_v18  ;;  %v2555_v18 = vunpack.c.l.b16 %v3048_v4  ;;  %1244 = vmatpush.bf16.msrb.mxu2 %v2315_v14 }
  0xe8   : > { %632 = vmatmul.bf16.gmra.mxu1 %v540_v20  ;;  %1170 = vmatmul.bf16.gmra.mxu3 %v3053_v11 }
  0xe9   : > { %1221 = vmatpush.bf16.msrb.mxu1 %v2343_v46  ;;  %v2298_v46 = vld [vmem:[#allocation5 + $0xc8] sm:$0xf]  ;;  %1303 = vmatpush.bf16.msra.mxu0 %v2303_v52  ;;  %v2498_v52 = vld [vmem:[#allocation5 + $0x54] sm:$0xf0] }
  0xea   : > { %v2299_v48 = vor.u32 %v2514_v47, %v2298_v46  ;;  %v2532_v46 = vld [vmem:[#allocation5 + $0x16c] sm:$0xf]  ;;  %v2380_v47 = vld [vmem:[#allocation5 + $0x178] sm:$0xf0] }
  0xec   : > { %1245 = vmatpush.bf16.msrb.mxu2 %v2299_v48  ;;  %v2234_v48 = vld [vmem:[#allocation5 + $0x48] sm:$0xf] }
  0xed   : > { %1222 = vmatpush.bf16.msrb.mxu1 %v2327_v58  ;;  %v2428_v58 = vld [vmem:[#allocation5 + $0x1d8] sm:$0xf0]  ;;  %1304 = vmatpush.bf16.msra.mxu0 %v2287_v5  ;;  %v2492_v5 = vld [vmem:[#allocation5 + $0x2c] sm:$0xf] }
  0xee   : > { %v2431_v61 = vor.u32 %v2544_v55, %v2428_v58  ;;  %v2235_v55 = vor.u32 %v2498_v52, %v2234_v48  ;;  %v2530_v58 = vld [vmem:[#allocation5 + $0x154] sm:$0xf0] }
  0xf0   : > { %1246 = vmatpush.bf16.msrb.mxu2 %v2283_v1 }
  0xf1   : > { %1331 = vmatpush.bf16.msra.mxu1 %v2447_v45 }
  0xf5   : > { %1332 = vmatpush.bf16.msra.mxu1 %v2431_v61  ;;  %v2363_v61 = vor.u32 %v2530_v58, %v2362_v57 }
  0xf8   : > { %1223 = vmatmul.bf16.vlgmr.msrb.gmra.mxu1 %v3048_v4  ;;  %1175 = vmatmul.bf16.gmra.mxu3 %v3075_v24 }
 0x108   : > { %1228 = vmatmul.bf16.gmra.mxu1 %v3053_v11  ;;  %1180 = vmatmul.bf16.gmra.mxu3 %v3093_v8 }
 0x118   : > { %1233 = vmatmul.bf16.gmra.mxu1 %v3075_v24 }
 0x128   : > { %1238 = vmatmul.bf16.gmra.mxu1 %v3093_v8 }
 0x135   : > { %v618_v13 = vpop.f32.mrf.mxu1 }
 0x136   : > { %v619_v15 = vadd.f32 %v3058_v12, %v618_v13  ;;  %v2412_v13 = vld [vmem:[#allocation5 + $0x1b8] sm:$0xf0] }
 0x138   : > { %v638_v16 = vmax.f32 %v619_v15, 0.0 }
 0x13a   : > { %v646_v17 = vpack.c.bf16 %v638_v16, %v638_v16  ;;  %v2560_v16 = vunpack.c.h.b16 %v3053_v11 }
 0x13c   : > { %v670_v19 = vunpack.c.l.b16 %v646_v17  ;;  %v2415_v17 = vor.u32 %v2540_v10, %v2412_v13  ;;  %v2223_v13 = vor.u32 %v2492_v5, %v2220_v6 }
 0x13d   : > { %v620_v20 = vpop.f32.mrf.mxu1 }
 0x13e   : > { %v710_v21 = vpack.c.b16 %v2555_v18, %v670_v19  ;;  %v621_v22 = vadd.f32 %v3058_v12, %v620_v20  ;;  %v2266_v18 = vld [vmem:[#allocation5 + $0x88] sm:$0xf]  ;;  %v2504_v20 = vld [vmem:[#allocation5 + $0x8c] sm:$0xf]  ;;  %1333 = vmatpush.bf16.msra.mxu1 %v2415_v17  ;;  %v2348_v17 = vld [vmem:[#allocation5 + $0x138] sm:$0xf0] }
 0x140   : > { %726 = vst [vmem:[%s3071_s17] sm:$0xff] %v710_v21  ;;  %v639_v23 = vmax.f32 %v621_v22, 0.0  ;;  %v2268_v22 = vld [vmem:[#allocation5 + $0x98] sm:$0xf0] }
 0x142   : > { %v647_v25 = vpack.c.bf16 %v639_v23, %v639_v23 }
 0x144   : > { %v671_v27 = vunpack.c.l.b16 %v647_v25  ;;  %v2271_v25 = vor.u32 %v2504_v20, %v2268_v22  ;;  %v2490_v20 = vld [vmem:[#allocation5 + $0x14] sm:$0xf0] }
 0x145   : > { %v623_v28 = vpop.f32.mrf.mxu1 }
 0x146   : > { %v3080_v29 = vpack.c.b16 %v671_v27, %v670_v19  ;;  %v711_v30 = vpack.c.b16 %v2556_v26, %v671_v27  ;;  %v624_v31 = vadd.f32 %v3058_v12, %v623_v28  ;;  %v2506_v19 = vld [vmem:[#allocation5 + $0x94] sm:$0xf0]  ;;  %v2394_v26 = vld [vmem:[#allocation5 + $0x188] sm:$0xf]  ;;  %v2536_v28 = vld [vmem:[#allocation5 + $0x18c] sm:$0xf]  ;;  %1305 = vmatpush.bf16.msra.mxu0 %v2271_v25 }
 0x147   : > { %v2267_v21 = vor.u32 %v2506_v19, %v2266_v18  ;;  %v2538_v27 = vld [vmem:[#allocation5 + $0x194] sm:$0xf0]  ;;  %v2399_v35 = vor.u32 %v2536_v28, %v2396_v32  ;;  %v2202_v19 = vld [vmem:[#allocation5 + $0x8] sm:$0xf] }
 0x148   : > { %727 = vst [vmem:[%s3071_s17 + $0x8] sm:$0xff] %v711_v30  ;;  %v640_v36 = vmax.f32 %v624_v31, 0.0  ;;  %1136 = vmatmul.bf16.vlgmr.msra.gmra.mxu2 %v3080_v29  ;;  %1194 = vmatmul.bf16.vlgmr.msrb.gmra.mxu0 %v3080_v29  ;;  %v2395_v31 = vor.u32 %v2538_v27, %v2394_v26  ;;  %v2330_v25 = vld [vmem:[#allocation5 + $0x108] sm:$0xf]  ;;  %v2203_v27 = vor.u32 %v2490_v20, %v2202_v19  ;;  %v2522_v28 = vld [vmem:[#allocation5 + $0x114] sm:$0xf0] }
 0x149   : > { %1247 = vmatpush.bf16.msrb.mxu2 %v2267_v21  ;;  %1334 = vmatpush.bf16.msra.mxu1 %v2399_v35  ;;  %v2488_v21 = vld [vmem:[#allocation5 + $0xc] sm:$0xf]  ;;  %v2331_v35 = vor.u32 %v2522_v28, %v2330_v25 }
 0x14a   : > { %v3086_v43 = vpack.c.bf16 %v640_v36, %v640_v36  ;;  %v2250_v36 = vld [vmem:[#allocation5 + $0x68] sm:$0xf]  ;;  %1276 = vmatpush.bf16.msrb.mxu3 %v2395_v31  ;;  %1306 = vmatpush.bf16.msra.mxu0 %v2255_v42  ;;  %v2564_v31 = vunpack.c.h.b16 %v3075_v24 }
 0x14b   : > { %v2251_v39 = vor.u32 %v2502_v37, %v2250_v36 }
 0x14c   : > { %v672_v51 = vunpack.c.l.b16 %v3086_v43  ;;  %v2378_v43 = vld [vmem:[#allocation5 + $0x168] sm:$0xf] }
 0x14d   : > { %v625_v56 = vpop.f32.mrf.mxu1  ;;  %1248 = vmatpush.bf16.msrb.mxu2 %v2251_v39 }
 0x14e   : > { %v712_v59 = vpack.c.b16 %v2559_v44, %v672_v51  ;;  %v626_v60 = vadd.f32 %v3058_v12, %v625_v56  ;;  %v2534_v44 = vld [vmem:[#allocation5 + $0x174] sm:$0xf0]  ;;  %v2239_v56 = vor.u32 %v2496_v53, %v2236_v54 }
 0x14f   : > { %v2379_v45 = vor.u32 %v2534_v44, %v2378_v43  ;;  %v2567_v44 = vunpack.c.l.b16 %v3093_v8 }
 0x150   : > { %728 = vst [vmem:[%s3071_s17 + $0x10] sm:$0xff] %v712_v59  ;;  %v641_v3 = vmax.f32 %v626_v60, 0.0  ;;  %v2528_v59 = vld [vmem:[#allocation5 + $0x14c] sm:$0xf]  ;;  %1307 = vmatpush.bf16.msra.mxu0 %v2239_v56 }
 0x151   : > { %1277 = vmatpush.bf16.msrb.mxu3 %v2379_v45  ;;  %1249 = vmatpush.bf16.msrb.mxu2 %v2235_v55  ;;  %v2367_v2 = vor.u32 %v2528_v59, %v2364_v62 }
 0x152   : > { %v649_v15 = vpack.c.bf16 %v641_v3, %v641_v3  ;;  %v2219_v3 = vor.u32 %v2494_v0, %v2218_v63 }
 0x154   : > { %v673_v23 = vunpack.c.l.b16 %v649_v15  ;;  %v2526_v15 = vld [vmem:[#allocation5 + $0x134] sm:$0xf0]  ;;  %1308 = vmatpush.bf16.msra.mxu0 %v2223_v13 }
 0x155   : > { %v628_v30 = vpop.f32.mrf.mxu1  ;;  %1278 = vmatpush.bf16.msrb.mxu3 %v2363_v61  ;;  %v2347_v18 = vor.u32 %v2526_v15, %v2346_v7  ;;  %1250 = vmatpush.bf16.msrb.mxu2 %v2219_v3 }
 0x156   : > { %v3098_v33 = vpack.c.b16 %v673_v23, %v672_v51  ;;  %v713_v34 = vpack.c.b16 %v2560_v16, %v673_v23  ;;  %v629_v14 = vadd.f32 %v3058_v12, %v628_v30  ;;  %v2383_v51 = vor.u32 %v2532_v46, %v2380_v47  ;;  %v2524_v16 = vld [vmem:[#allocation5 + $0x12c] sm:$0xf]  ;;  %v2204_v23 = vld [vmem:[#allocation5 + $0x18] sm:$0xf0] }
 0x157   : > { %v2351_v26 = vor.u32 %v2524_v16, %v2348_v17  ;;  %v2207_v32 = vor.u32 %v2488_v21, %v2204_v23 }
 0x158   : > { %729 = vst [vmem:[%s3071_s17 + $0x18] sm:$0xff] %v713_v34  ;;  %v642_v41 = vmax.f32 %v629_v14, 0.0  ;;  %1141 = vmatmul.bf16.gmra.mxu2 %v3098_v33  ;;  %1199 = vmatmul.bf16.gmra.mxu0 %v3098_v33  ;;  %v2520_v34 = vld [vmem:[#allocation5 + $0x10c] sm:$0xf]  ;;  %v2332_v14 = vld [vmem:[#allocation5 + $0x118] sm:$0xf0] }
 0x159   : > { %1335 = vmatpush.bf16.msra.mxu1 %v2383_v51  ;;  %1279 = vmatpush.bf16.msrb.mxu3 %v2347_v18  ;;  %v2335_v38 = vor.u32 %v2520_v34, %v2332_v14  ;;  %v2568_v51 = vunpack.c.h.b16 %v3093_v8 }
 0x15a   : > { %v650_v49 = vpack.c.bf16 %v642_v41, %v642_v41  ;;  %1251 = vmatpush.bf16.msrb.mxu2 %v2203_v27  ;;  %1309 = vmatpush.bf16.msra.mxu0 %v2207_v32 }
 0x15c   : > { %v674_v60 = vunpack.c.l.b16 %v650_v49 }
 0x15d   : > { %v630_v1 = vpop.f32.mrf.mxu1  ;;  %1336 = vmatpush.bf16.msra.mxu1 %v2367_v2  ;;  %1280 = vmatpush.bf16.msrb.mxu3 %v2331_v35 }
 0x15e   : > { %v714_v9 = vpack.c.b16 %v2563_v50, %v674_v60  ;;  %v631_v10 = vadd.f32 %v3058_v12, %v630_v1 }
 0x160   : > { %730 = vst [vmem:[%s3071_s17 + $0x20] sm:$0xff] %v714_v9  ;;  %v643_v22 = vmax.f32 %v631_v10, 0.0  ;;  %1281 = vmatmul.bf16.vlgmr.msrb.gmra.mxu3 %v3048_v4 }
 0x161   : > { %1337 = vmatpush.bf16.msra.mxu1 %v2351_v26 }
 0x162   : > { %v651_v30 = vpack.c.bf16 %v643_v22, %v643_v22 }
 0x164   : > { %v675_v36 = vunpack.c.l.b16 %v651_v30 }
 0x165   : > { %v633_v37 = vpop.f32.mrf.mxu1  ;;  %1338 = vmatpush.bf16.msra.mxu1 %v2335_v38 }
 0x166   : > { %v680_v39 = vpack.c.b16 %v675_v36, %v674_v60  ;;  %v715_v40 = vpack.c.b16 %v2564_v31, %v675_v36  ;;  %v634_v41 = vadd.f32 %v3058_v12, %v633_v37 }
 0x168   : > { %731 = vst [vmem:[%s3071_s17 + $0x28] sm:$0xff] %v715_v40  ;;  %v644_v42 = vmax.f32 %v634_v41, 0.0  ;;  %1146 = vmatmul.bf16.gmra.mxu2 %v680_v39  ;;  %1204 = vmatmul.bf16.gmra.mxu0 %v680_v39 }
 0x169   : > { %1339 = vmatmul.bf16.vlgmr.msra.gmra.mxu1 %v3048_v4 }
 0x16a   : > { %v652_v43 = vpack.c.bf16 %v644_v42, %v644_v42 }
 0x16c   : > { %v676_v45 = vunpack.c.l.b16 %v652_v43 }
 0x16d   : > { %v635_v46 = vpop.f32.mrf.mxu1 }
 0x16e   : > { %v716_v47 = vpack.c.b16 %v2567_v44, %v676_v45  ;;  %v636_v48 = vadd.f32 %v3058_v12, %v635_v46 }
 0x170   : > { %732 = vst [vmem:[%s3071_s17 + $0x30] sm:$0xff] %v716_v47  ;;  %v645_v49 = vmax.f32 %v636_v48, 0.0  ;;  %1286 = vmatmul.bf16.gmra.mxu3 %v3053_v11 }
 0x172   : > { %v653_v50 = vpack.c.bf16 %v645_v49, %v645_v49 }
 0x174   : > { %v677_v52 = vunpack.c.l.b16 %v653_v50 }
 0x175   : > { %v1224_v4 = vpop.f32.mrf.mxu1 }
 0x176   : > { %v681_v53 = vpack.c.b16 %v677_v52, %v676_v45  ;;  %v717_v54 = vpack.c.b16 %v2568_v51, %v677_v52 }
 0x178   : > { %733 = vst [vmem:[%s3071_s17 + $0x38] sm:$0xff] %v717_v54  ;;  %1151 = vmatmul.bf16.gmra.mxu2 %v681_v53  ;;  %1209 = vmatmul.bf16.gmra.mxu0 %v681_v53 }
 0x179   : > { %1344 = vmatmul.bf16.gmra.mxu1 %v3053_v11  ;;  %v1166_v11 = vpop.f32.mrf.mxu3 }
 0x17d   : > { %v1226_v12 = vpop.f32.mrf.mxu1 }
 0x180   : > { %1291 = vmatmul.bf16.gmra.mxu3 %v3075_v24 }
 0x188   : > { %1252 = vmatmul.bf16.vlgmr.msrb.gmra.mxu2 %v3080_v29  ;;  %1310 = vmatmul.bf16.vlgmr.msra.gmra.mxu0 %v3080_v29  ;;  %v1168_v29 = vpop.f32.mrf.mxu3 }
 0x189   : > { %1349 = vmatmul.bf16.gmra.mxu1 %v3075_v24  ;;  %v3130_v24 = vld [vmem:[%s3338_s7] sm:$0xf] }
 0x18a   : > { %v3133_v55 = vperm.slane %v3130_v24, 1  ;;  %v3137_v59 = vperm.slane %v3130_v24, 0 }
 0x190   : > { %1296 = vmatmul.bf16.gmra.mxu3 %v3093_v8  ;;  %v1171_v56 = vpop.f32.mrf.mxu3 }
 0x198   : > { %1257 = vmatmul.bf16.gmra.mxu2 %v3098_v33  ;;  %1315 = vmatmul.bf16.gmra.mxu0 %v3098_v33  ;;  %v1229_v33 = vpop.f32.mrf.mxu1  ;;  %v1173_v1 = vpop.f32.mrf.mxu3 }
 0x199   : > { %1354 = vmatmul.bf16.gmra.mxu1 %v3093_v8 }
 0x1a0   : > { %v1231_v63 = vpop.f32.mrf.mxu1  ;;  %v1176_v18 = vpop.f32.mrf.mxu3 }
 0x1a8   : > { %1262 = vmatmul.bf16.gmra.mxu2 %v680_v39  ;;  %1320 = vmatmul.bf16.gmra.mxu0 %v680_v39  ;;  %v1234_v17 = vpop.f32.mrf.mxu1  ;;  %v1178_v32 = vpop.f32.mrf.mxu3 }
 0x1b0   : > { %v1236_v31 = vpop.f32.mrf.mxu1  ;;  %v1181_v44 = vpop.f32.mrf.mxu3 }
 0x1b8   : > { %1267 = vmatmul.bf16.gmra.mxu2 %v681_v53  ;;  %1325 = vmatmul.bf16.gmra.mxu0 %v681_v53  ;;  %v1239_v42 = vpop.f32.mrf.mxu1 }
 0x1c0   : > { %v1241_v54 = vpop.f32.mrf.mxu1 }
 0x1c5   : > { %v1195_v57 = vpop.f32.mrf.mxu0 }
 0x1c6   : > { %v1196_v8 = vadd.f32 %v1195_v57, %v3133_v55 }
 0x1c8   : > { %v1225_v58 = vadd.f32 %v1224_v4, %v1196_v8 }
 0x1ca   : > { %v1368_v60 = vpack.c.bf16 %v1225_v58, %v1225_v58 }
 0x1cb   : > { %v1137_v61 = vpop.f32.mrf.mxu2 }
 0x1cc   : > { %v1138_v62 = vadd.f32 %v1137_v61, %v3137_v59  ;;  %1391 = vmatpush.bf16.xpose.msra.mxu2 %v1368_v60 }
 0x1cd   : > { %v1197_v0 = vpop.f32.mrf.mxu0 }
 0x1ce   : > { %v1167_v2 = vadd.f32 %v1166_v11, %v1138_v62  ;;  %v1198_v3 = vadd.f32 %v1197_v0, %v3133_v55  ;;  %v1183_v11 = vpop.f32.mrf.mxu3 }
 0x1d0   : > { %v1360_v5 = vpack.c.bf16 %v1167_v2, %v1167_v2  ;;  %v1227_v6 = vadd.f32 %v1226_v12, %v1198_v3 }
 0x1d2   : > { %v1369_v7 = vpack.c.bf16 %v1227_v6, %v1227_v6 }
 0x1d3   : > { %v1139_v9 = vpop.f32.mrf.mxu2  ;;  %1392 = vmatmul.bf16.vlgmr.msra.gmra.mxu2 %v1360_v5 }
 0x1d4   : > { %v1140_v10 = vadd.f32 %v1139_v9, %v3137_v59  ;;  %1404 = vmatpush.bf16.xpose.msra.mxu3 %v1369_v7 }
 0x1d5   : > { %v1200_v13 = vpop.f32.mrf.mxu0 }
 0x1d6   : > { %v1169_v15 = vadd.f32 %v1168_v29, %v1140_v10  ;;  %v1201_v16 = vadd.f32 %v1200_v13, %v3133_v55  ;;  %v3155_v10 = vperm.slane %v3130_v24, 3 }
 0x1d8   : > { %v1361_v19 = vpack.c.bf16 %v1169_v15, %v1169_v15  ;;  %v1230_v20 = vadd.f32 %v1229_v33, %v1201_v16 }
 0x1da   : > { %v1370_v21 = vpack.c.bf16 %v1230_v20, %v1230_v20 }
 0x1db   : > { %v1142_v22 = vpop.f32.mrf.mxu2  ;;  %1405 = vmatmul.bf16.vlgmr.msra.gmra.mxu3 %v1361_v19 }
 0x1dc   : > { %v1143_v23 = vadd.f32 %v1142_v22, %v3137_v59  ;;  %1417 = vmatpush.bf16.xpose.msrb.mxu2 %v1370_v21 }
 0x1dd   : > { %v1202_v25 = vpop.f32.mrf.mxu0 }
 0x1de   : > { %v1172_v26 = vadd.f32 %v1171_v56, %v1143_v23  ;;  %v1203_v27 = vadd.f32 %v1202_v25, %v3133_v55 }
 0x1e0   : > { %v1362_v28 = vpack.c.bf16 %v1172_v26, %v1172_v26  ;;  %v1232_v30 = vadd.f32 %v1231_v63, %v1203_v27 }
 0x1e2   : > { %v1371_v34 = vpack.c.bf16 %v1232_v30, %v1232_v30 }
 0x1e3   : > { %v1144_v14 = vpop.f32.mrf.mxu2  ;;  %1418 = vmatmul.bf16.vlgmr.msrb.gmra.mxu2 %v1362_v28  ;;  %v1282_v62 = vpop.f32.mrf.mxu3 }
 0x1e4   : > { %v1145_v35 = vadd.f32 %v1144_v14, %v3137_v59  ;;  %1430 = vmatpush.bf16.xpose.msrb.mxu3 %v1371_v34 }
 0x1e5   : > { %v1205_v36 = vpop.f32.mrf.mxu0 }
 0x1e6   : > { %v1174_v37 = vadd.f32 %v1173_v1, %v1145_v35  ;;  %v1206_v38 = vadd.f32 %v1205_v36, %v3133_v55  ;;  %v1340_v60 = vpop.f32.mrf.mxu1 }
 0x1e8   : > { %v1363_v39 = vpack.c.bf16 %v1174_v37, %v1174_v37  ;;  %v1235_v40 = vadd.f32 %v1234_v17, %v1206_v38  ;;  %v3158_v17 = vperm.slane %v3130_v24, 2 }
 0x1ea   : > { %v1372_v41 = vpack.c.bf16 %v1235_v40, %v1235_v40 }
 0x1eb   : > { %v1147_v43 = vpop.f32.mrf.mxu2  ;;  %1431 = vmatmul.bf16.vlgmr.msrb.gmra.mxu3 %v1363_v39  ;;  %v1284_v15 = vpop.f32.mrf.mxu3 }
 0x1ec   : > { %v1148_v45 = vadd.f32 %v1147_v43, %v3137_v59  ;;  %1443 = vmatpush.bf16.xpose.msra.mxu2 %v1372_v41 }
 0x1ed   : > { %v1207_v46 = vpop.f32.mrf.mxu0 }
 0x1ee   : > { %v1177_v47 = vadd.f32 %v1176_v18, %v1148_v45  ;;  %v1208_v48 = vadd.f32 %v1207_v46, %v3133_v55  ;;  %v1342_v13 = vpop.f32.mrf.mxu1 }
 0x1f0   : > { %v1364_v49 = vpack.c.bf16 %v1177_v47, %v1177_v47  ;;  %v1237_v50 = vadd.f32 %v1236_v31, %v1208_v48 }
 0x1f2   : > { %v1373_v51 = vpack.c.bf16 %v1237_v50, %v1237_v50 }
 0x1f3   : > { %v1149_v52 = vpop.f32.mrf.mxu2  ;;  %1444 = vmatmul.bf16.vlgmr.msra.gmra.mxu2 %v1364_v49  ;;  %v1287_v25 = vpop.f32.mrf.mxu3 }
 0x1f4   : > { %v1150_v53 = vadd.f32 %v1149_v52, %v3137_v59  ;;  %1456 = vmatpush.bf16.xpose.msra.mxu3 %v1373_v51 }
 0x1f5   : > { %v1210_v4 = vpop.f32.mrf.mxu0 }
 0x1f6   : > { %v1179_v12 = vadd.f32 %v1178_v32, %v1150_v53  ;;  %v1211_v29 = vadd.f32 %v1210_v4, %v3133_v55  ;;  %v1345_v23 = vpop.f32.mrf.mxu1 }
 0x1f8   : > { %v1365_v33 = vpack.c.bf16 %v1179_v12, %v1179_v12  ;;  %v1240_v56 = vadd.f32 %v1239_v42, %v1211_v29 }
 0x1fa   : > { %v1374_v57 = vpack.c.bf16 %v1240_v56, %v1240_v56 }
 0x1fb   : > { %v1152_v8 = vpop.f32.mrf.mxu2  ;;  %1457 = vmatmul.bf16.vlgmr.msra.gmra.mxu3 %v1365_v33 }
 0x1fc   : > { %v1153_v58 = vadd.f32 %v1152_v8, %v3137_v59  ;;  %1469 = vmatpush.bf16.xpose.msrb.mxu0 %v1374_v57 }
 0x1fd   : > { %v1212_v61 = vpop.f32.mrf.mxu0 }
 0x1fe   : > { %v1182_v63 = vadd.f32 %v1181_v44, %v1153_v58  ;;  %v1213_v0 = vadd.f32 %v1212_v61, %v3133_v55  ;;  %v1347_v42 = vpop.f32.mrf.mxu1  ;;  %v1289_v44 = vpop.f32.mrf.mxu3 }
 0x200   : > { %v1366_v1 = vpack.c.bf16 %v1182_v63, %v1182_v63  ;;  %v1242_v2 = vadd.f32 %v1241_v54, %v1213_v0 }
 0x202   : > { %v1375_v3 = vpack.c.bf16 %v1242_v2, %v1242_v2 }
 0x203   : > { %v1154_v5 = vpop.f32.mrf.mxu2  ;;  %1470 = vmatmul.bf16.vlgmr.msrb.gmra.mxu0 %v1366_v1 }
 0x204   : > { %v1155_v6 = vadd.f32 %v1154_v5, %v3137_v59  ;;  %1482 = vmatpush.bf16.xpose.msrb.mxu2 %v1375_v3 }
 0x205   : > { %v1311_v7 = vpop.f32.mrf.mxu0 }
 0x206   : > { %v1184_v9 = vadd.f32 %v1183_v11, %v1155_v6  ;;  %v1312_v55 = vadd.f32 %v1311_v7, %v3155_v10  ;;  %v1350_v57 = vpop.f32.mrf.mxu1 }
 0x208   : > { %v1367_v16 = vpack.c.bf16 %v1184_v9, %v1184_v9  ;;  %v1341_v59 = vadd.f32 %v1340_v60, %v1312_v55  ;;  %v1292_v60 = vpop.f32.mrf.mxu3 }
 0x20b   : > { %v1253_v18 = vpop.f32.mrf.mxu2  ;;  %1483 = vmatmul.bf16.vlgmr.msrb.gmra.mxu2 %v1367_v16 }
 0x20c   : > { %v1254_v19 = vadd.f32 %v1253_v18, %v3158_v17 }
 0x20d   : > { %v1313_v20 = vpop.f32.mrf.mxu0 }
 0x20e   : > { %v1283_v21 = vadd.f32 %v1282_v62, %v1254_v19  ;;  %v1314_v28 = vadd.f32 %v1313_v20, %v3155_v10  ;;  %v1352_v18 = vpop.f32.mrf.mxu1 }
 0x210   : > { %v1376_v22 = vpack.c.bf16 %v1341_v59, %v1283_v21  ;;  %v1343_v14 = vadd.f32 %v1342_v13, %v1314_v28  ;;  %v1294_v59 = vpop.f32.mrf.mxu3 }
 0x212   : > { %v1586_v26 = vunpack.c.l.b16 %v1376_v22  ;;  %v1587_v27 = vunpack.c.h.b16 %v1376_v22 }
 0x213   : > { %v1255_v30 = vpop.f32.mrf.mxu2 }
 0x214   : > { %v1588_v24 = vpack.c.b16 %v1586_v26, %v1586_v26  ;;  %v1589_v31 = vpack.c.b16 %v1587_v27, %v1587_v27  ;;  %v1256_v32 = vadd.f32 %v1255_v30, %v3158_v17 }
 0x215   : > { %v1316_v34 = vpop.f32.mrf.mxu0 }
 0x216   : > { %v1285_v35 = vadd.f32 %v1284_v15, %v1256_v32  ;;  %v1595_v36 = vsel %vm1593_vm1, %v1588_v24, 0  ;;  %v1598_v37 = vsel %vm1593_vm1, %v1589_v31, 0  ;;  %v1317_v41 = vadd.f32 %v1316_v34, %v3155_v10 }
 0x217   : > { %1607 = vmatpush.bf16.msrb.mxu3 %v1595_v36  ;;  %1620 = vmatpush.bf16.msra.mxu0 %v1598_v37  ;;  %v1355_v36 = vpop.f32.mrf.mxu1 }
 0x218   : > { %v1377_v38 = vpack.c.bf16 %v1343_v14, %v1285_v35  ;;  %v1346_v49 = vadd.f32 %v1345_v23, %v1317_v41  ;;  %v1297_v37 = vpop.f32.mrf.mxu3 }
 0x21a   : > { %v1627_v39 = vunpack.c.l.b16 %v1377_v38  ;;  %v1628_v40 = vunpack.c.h.b16 %v1377_v38 }
 0x21b   : > { %v1258_v43 = vpop.f32.mrf.mxu2 }
 0x21c   : > { %v1629_v45 = vpack.c.b16 %v1627_v39, %v1627_v39  ;;  %v1630_v46 = vpack.c.b16 %v1628_v40, %v1628_v40  ;;  %v1259_v47 = vadd.f32 %v1258_v43, %v3158_v17 }
 0x21d   : > { %v1318_v48 = vpop.f32.mrf.mxu0 }
 0x21e   : > { %v1288_v50 = vadd.f32 %v1287_v25, %v1259_v47  ;;  %v1635_v51 = vsel %vm1593_vm1, %v1629_v45, 0  ;;  %v1638_v52 = vsel %vm1593_vm1, %v1630_v46, 0  ;;  %v1319_v54 = vadd.f32 %v1318_v48, %v3155_v10 }
 0x21f   : > { %1647 = vmatpush.bf16.msrb.mxu1 %v1635_v51  ;;  %1660 = vmatpush.bf16.msra.mxu2 %v1638_v52 }
 0x220   : > { %v1378_v53 = vpack.c.bf16 %v1346_v49, %v1288_v50  ;;  %v1348_v8 = vadd.f32 %v1347_v42, %v1319_v54 }
 0x222   : > { %v1667_v4 = vunpack.c.l.b16 %v1378_v53  ;;  %v1668_v11 = vunpack.c.h.b16 %v1378_v53  ;;  %v1357_v53 = vpop.f32.mrf.mxu1 }
 0x223   : > { %v1260_v12 = vpop.f32.mrf.mxu2 }
 0x224   : > { %v1669_v29 = vpack.c.b16 %v1667_v4, %v1667_v4  ;;  %v1670_v33 = vpack.c.b16 %v1668_v11, %v1668_v11  ;;  %v1261_v56 = vadd.f32 %v1260_v12, %v3158_v17  ;;  %v1299_v4 = vpop.f32.mrf.mxu3 }
 0x225   : > { %v1321_v58 = vpop.f32.mrf.mxu0 }
 0x226   : > { %v1290_v61 = vadd.f32 %v1289_v44, %v1261_v56  ;;  %v1322_v62 = vadd.f32 %v1321_v58, %v3155_v10  ;;  %v1675_v63 = vsel %vm1593_vm1, %v1669_v29, 0  ;;  %v1678_v0 = vsel %vm1593_vm1, %v1670_v33, 0 }
 0x227   : > { %1687 = vmatpush.bf16.msra.mxu3 %v1675_v63  ;;  %1700 = vmatpush.bf16.msrb.mxu0 %v1678_v0 }
 0x228   : > { %v1379_v1 = vpack.c.bf16 %v1348_v8, %v1290_v61  ;;  %v1351_v13 = vadd.f32 %v1350_v57, %v1322_v62 }
 0x22a   : > { %v1707_v2 = vunpack.c.l.b16 %v1379_v1  ;;  %v1708_v3 = vunpack.c.h.b16 %v1379_v1 }
 0x22b   : > { %v1263_v5 = vpop.f32.mrf.mxu2 }
 0x22c   : > { %v1709_v6 = vpack.c.b16 %v1707_v2, %v1707_v2  ;;  %v1710_v7 = vpack.c.b16 %v1708_v3, %v1708_v3  ;;  %v1264_v9 = vadd.f32 %v1263_v5, %v3158_v17 }
 0x22d   : > { %v1323_v15 = vpop.f32.mrf.mxu0 }
 0x22e   : > { %v1293_v16 = vadd.f32 %v1292_v60, %v1264_v9  ;;  %v1324_v55 = vadd.f32 %v1323_v15, %v3155_v10  ;;  %v1715_v19 = vsel %vm1593_vm1, %v1709_v6, 0  ;;  %v1718_v20 = vsel %vm1593_vm1, %v1710_v7, 0 }
 0x22f   : > { %1727 = vmatpush.bf16.msra.mxu1 %v1715_v19  ;;  %1740 = vmatpush.bf16.msrb.mxu2 %v1718_v20 }
 0x230   : > { %v1380_v21 = vpack.c.bf16 %v1351_v13, %v1293_v16  ;;  %v1353_v24 = vadd.f32 %v1352_v18, %v1324_v55 }
 0x232   : > { %v1747_v22 = vunpack.c.l.b16 %v1380_v21  ;;  %v1748_v23 = vunpack.c.h.b16 %v1380_v21 }
 0x233   : > { %v1265_v25 = vpop.f32.mrf.mxu2 }
 0x234   : > { %v1749_v26 = vpack.c.b16 %v1747_v22, %v1747_v22  ;;  %v1750_v27 = vpack.c.b16 %v1748_v23, %v1748_v23  ;;  %v1266_v28 = vadd.f32 %v1265_v25, %v3158_v17 }
 0x235   : > { %v1326_v30 = vpop.f32.mrf.mxu0 }
 0x236   : > { %v1295_v31 = vadd.f32 %v1294_v59, %v1266_v28  ;;  %v1327_v32 = vadd.f32 %v1326_v30, %v3155_v10  ;;  %v3182_v34 = vsel %vm1593_vm1, %v1749_v26, 0  ;;  %v3185_v14 = vsel %vm1593_vm1, %v1750_v27, 0 }
 0x238   : > { %v1381_v35 = vpack.c.bf16 %v1353_v24, %v1295_v31  ;;  %v1356_v44 = vadd.f32 %v1355_v36, %v1327_v32 }
 0x23a   : > { %v1787_v38 = vunpack.c.l.b16 %v1381_v35  ;;  %v1788_v39 = vunpack.c.h.b16 %v1381_v35 }
 0x23b   : > { %v1268_v40 = vpop.f32.mrf.mxu2 }
 0x23c   : > { %v1789_v41 = vpack.c.b16 %v1787_v38, %v1787_v38  ;;  %v1790_v42 = vpack.c.b16 %v1788_v39, %v1788_v39  ;;  %v1269_v43 = vadd.f32 %v1268_v40, %v3158_v17 }
 0x23d   : > { %v1328_v48 = vpop.f32.mrf.mxu0 }
 0x23e   : > { %v1298_v45 = vadd.f32 %v1297_v37, %v1269_v43  ;;  %v3189_v46 = vsel %vm1593_vm1, %v1789_v41, 0  ;;  %v3192_v47 = vsel %vm1593_vm1, %v1790_v42, 0  ;;  %v1329_v52 = vadd.f32 %v1328_v48, %v3155_v10 }
 0x240   : > { %v1382_v49 = vpack.c.bf16 %v1356_v44, %v1298_v45  ;;  %v1358_v33 = vadd.f32 %v1357_v53, %v1329_v52 }
 0x242   : > { %v1827_v50 = vunpack.c.l.b16 %v1382_v49  ;;  %v1828_v51 = vunpack.c.h.b16 %v1382_v49 }
 0x243   : > { %v1270_v54 = vpop.f32.mrf.mxu2 }
 0x244   : > { %v1829_v11 = vpack.c.b16 %v1827_v50, %v1827_v50  ;;  %v1830_v12 = vpack.c.b16 %v1828_v51, %v1828_v51  ;;  %v1271_v29 = vadd.f32 %v1270_v54, %v3158_v17 }
 0x246   : > { %v1300_v56 = vadd.f32 %v1299_v4, %v1271_v29  ;;  %v3197_v57 = vsel %vm1593_vm1, %v1829_v11, 0  ;;  %v3200_v8 = vsel %vm1593_vm1, %v1830_v12, 0 }
 0x248   : > { %v1383_v58 = vpack.c.bf16 %v1358_v33, %v1300_v56 }
 0x24a   : > { %v1867_v60 = vunpack.c.l.b16 %v1383_v58  ;;  %v1868_v61 = vunpack.c.h.b16 %v1383_v58 }
 0x24c   : > { %v1869_v62 = vpack.c.b16 %v1867_v60, %v1867_v60  ;;  %v1870_v10 = vpack.c.b16 %v1868_v61, %v1868_v61 }
 0x24e   : > { %v3203_v63 = vsel %vm1593_vm1, %v1869_v62, 0  ;;  %v3206_v0 = vsel %vm1593_vm1, %v1870_v10, 0 }
 0x256   : > { %v1393_v17 = vpop.f32.mrf.mxu2 }
 0x257   : > { %v1489_v1 = vsel %vm1488_vm2, %v1393_v17, -inf }
 0x258   : > { %1490 = vmax.xlane.f32.xlu0 %v1489_v1 }
 0x25e   : > { %v1395_v2 = vpop.f32.mrf.mxu2  ;;  %v1406_v3 = vpop.f32.mrf.mxu3 }
 0x25f   : > { %v1492_v5 = vsel %vm1488_vm2, %v1406_v3, -inf }
 0x260   : > { %1493 = vmax.xlane.f32.xlu0 %v1492_v5 }
 0x266   : > { %v1408_v6 = vpop.f32.mrf.mxu3  ;;  %v1419_v7 = vpop.f32.mrf.mxu2 }
 0x267   : > { %v1495_v9 = vsel %vm1488_vm2, %v1419_v7, -inf }
 0x268   : > { %1496 = vmax.xlane.f32.xlu1 %v1495_v9 }
 0x26e   : > { %v1421_v13 = vpop.f32.mrf.mxu2  ;;  %v1432_v15 = vpop.f32.mrf.mxu3 }
 0x26f   : > { %v1498_v16 = vsel %vm1488_vm2, %v1432_v15, -inf }
 0x270   : > { %1499 = vmax.xlane.f32.xlu1 %v1498_v16 }
 0x276   : > { %v1434_v55 = vpop.f32.mrf.mxu3  ;;  %v1445_v18 = vpop.f32.mrf.mxu2 }
 0x277   : > { %v1501_v19 = vsel %vm1488_vm2, %v1445_v18, -inf }
 0x278   : > { %1502 = vmax.xlane.f32.xlu2 %v1501_v19 }
 0x27e   : > { %v1447_v20 = vpop.f32.mrf.mxu2  ;;  %v1458_v59 = vpop.f32.mrf.mxu3 }
 0x27f   : > { %v1504_v21 = vsel %vm1488_vm2, %v1458_v59, -inf }
 0x280   : > { %v1471_v22 = vpop.f32.mrf.mxu0  ;;  %1505 = vmax.xlane.f32.xlu2 %v1504_v21 }
 0x281   : > { %v1507_v23 = vsel %vm1488_vm2, %v1471_v22, -inf }
 0x282   : > { %1508 = vmax.xlane.f32.xlu0 %v1507_v23 }
 0x286   : > { %v1460_v25 = vpop.f32.mrf.mxu3 }
 0x288   : > { %v1473_v26 = vpop.f32.mrf.mxu0 }
 0x28e   : > { %v1484_v27 = vpop.f32.mrf.mxu2 }
 0x28f   : > { %v1510_v28 = vsel %vm1488_vm2, %v1484_v27, -inf }
 0x290   : > { %1511 = vmax.xlane.f32.xlu1 %v1510_v28 }
 0x296   : > { %v1486_v30 = vpop.f32.mrf.mxu2 }
 0x2cb   : > { %v1491_v24 = vpop.xlane.xlu0 %1490 }
 0x2cc   : > { %v1513_v31 = vsub.f32 %v1393_v17, %v1491_v24 }
 0x2ce   : > { %v1521_v32 = vmul.f32 1.442695, %v1513_v31 }
 0x2d0   : > { %2661 = vpow2.f32 %v1521_v32 }
 0x2d3   : > { %v1494_v35 = vpop.xlane.xlu0 %1493 }
 0x2d4   : > { %v1514_v36 = vsub.f32 %v1406_v3, %v1494_v35 }
 0x2d6   : > { %v2662_v37 = vpop.eup %2661  ;;  %v1523_v38 = vmul.f32 1.442695, %v1514_v36 }
 0x2d7   : > { %v1537_v39 = vsel %vm1488_vm2, %v2662_v37, 0.0 }
 0x2d8   : > { %2663 = vpow2.f32 %v1523_v38  ;;  %1538 = vadd.xlane.f32.xlu2 %v1537_v39 }
 0x2db   : > { %v1497_v40 = vpop.xlane.xlu1 %1496 }
 0x2dc   : > { %v1515_v41 = vsub.f32 %v1419_v7, %v1497_v40 }
 0x2de   : > { %v2664_v42 = vpop.eup %2663  ;;  %v1525_v43 = vmul.f32 1.442695, %v1515_v41 }
 0x2df   : > { %v1540_v44 = vsel %vm1488_vm2, %v2664_v42, 0.0 }
 0x2e0   : > { %2665 = vpow2.f32 %v1525_v43  ;;  %1541 = vadd.xlane.f32.xlu0 %v1540_v44 }
 0x2e3   : > { %v1500_v45 = vpop.xlane.xlu1 %1499 }
 0x2e4   : > { %v1516_v48 = vsub.f32 %v1432_v15, %v1500_v45 }
 0x2e6   : > { %v2666_v49 = vpop.eup %2665  ;;  %v1527_v50 = vmul.f32 1.442695, %v1516_v48 }
 0x2e7   : > { %v1543_v51 = vsel %vm1488_vm2, %v2666_v49, 0.0 }
 0x2e8   : > { %2667 = vpow2.f32 %v1527_v50  ;;  %1544 = vadd.xlane.f32.xlu1 %v1543_v51 }
 0x2eb   : > { %v1503_v52 = vpop.xlane.xlu2 %1502 }
 0x2ec   : > { %v1517_v53 = vsub.f32 %v1445_v18, %v1503_v52 }
 0x2ee   : > { %v2668_v54 = vpop.eup %2667  ;;  %v1529_v4 = vmul.f32 1.442695, %v1517_v53 }
 0x2ef   : > { %v1546_v11 = vsel %vm1488_vm2, %v2668_v54, 0.0 }
 0x2f0   : > { %2669 = vpow2.f32 %v1529_v4  ;;  %1547 = vadd.xlane.f32.xlu2 %v1546_v11 }
 0x2f3   : > { %v1506_v12 = vpop.xlane.xlu2 %1505 }
 0x2f4   : > { %v1518_v29 = vsub.f32 %v1458_v59, %v1506_v12 }
 0x2f5   : > { %v1509_v33 = vpop.xlane.xlu0 %1508 }
 0x2f6   : > { %v2670_v56 = vpop.eup %2669  ;;  %v1531_v58 = vmul.f32 1.442695, %v1518_v29  ;;  %v1519_v60 = vsub.f32 %v1471_v22, %v1509_v33 }
 0x2f7   : > { %v1549_v61 = vsel %vm1488_vm2, %v2670_v56, 0.0 }
 0x2f8   : > { %2671 = vpow2.f32 %v1531_v58  ;;  %v1533_v62 = vmul.f32 1.442695, %v1519_v60  ;;  %1550 = vadd.xlane.f32.xlu0 %v1549_v61 }
 0x2fa   : > { %2673 = vpow2.f32 %v1533_v62 }
 0x2fe   : > { %v2672_v10 = vpop.eup %2671 }
 0x2ff   : > { %v1552_v17 = vsel %vm1488_vm2, %v2672_v10, 0.0 }
 0x300   : > { %v3222_v1 = vpop.eup %2673  ;;  %1553 = vadd.xlane.f32.xlu1 %v1552_v17 }
 0x301   : > { %v1555_v2 = vsel %vm1488_vm2, %v3222_v1, 0.0 }
 0x302   : > { %1556 = vadd.xlane.f32.xlu2 %v1555_v2 }
 0x303   : > { %v1512_v3 = vpop.xlane.xlu1 %1511 }
 0x304   : > { %v1520_v5 = vsub.f32 %v1484_v27, %v1512_v3 }
 0x306   : > { %v1535_v6 = vmul.f32 1.442695, %v1520_v5 }
 0x308   : > { %2675 = vpow2.f32 %v1535_v6 }
 0x30e   : > { %v3226_v7 = vpop.eup %2675 }
 0x30f   : > { %v1558_v9 = vsel %vm1488_vm2, %v3226_v7, 0.0 }
 0x310   : > { %1559 = vadd.xlane.f32.xlu0 %v1558_v9 }
 0x34b   : > { %v1539_v13 = vpop.xlane.xlu2 %1538 }
 0x34c   : > { %2677 = vrcp.f32 %v1539_v13 }
 0x352   : > { %v2678_v15 = vpop.eup %2677 }
 0x353   : > { %v1569_v16 = vmul.f32 %v2678_v15, %v2662_v37  ;;  %v1542_v55 = vpop.xlane.xlu0 %1541 }
 0x354   : > { %2679 = vrcp.f32 %v1542_v55 }
 0x355   : > { %v1577_v18 = vpack.c.bf16 %v1569_v16, %v1569_v16 }
 0x357   : > { %2448 = vmatmul.msk.bf16.vlgmr.msrb.gmra.mxu3 %vm1488_vm2, %v1577_v18  ;;  %2449 = vmatmul.msk.bf16.vlgmr.msra.gmra.mxu0 %vm1488_vm2, %v1577_v18 }
 0x358   : > { %1767 = vmatpush.bf16.msrb.mxu3 %v3182_v34  ;;  %1780 = vmatpush.bf16.msra.mxu0 %v3185_v14 }
 0x35a   : > { %v2680_v19 = vpop.eup %2679 }
 0x35b   : > { %v1570_v20 = vmul.f32 %v2680_v19, %v2664_v42  ;;  %v1545_v59 = vpop.xlane.xlu1 %1544 }
 0x35c   : > { %2681 = vrcp.f32 %v1545_v59 }
 0x35d   : > { %v1578_v21 = vpack.c.bf16 %v1570_v20, %v1570_v20 }
 0x35f   : > { %2450 = vmatmul.msk.bf16.vlgmr.msrb.gmra.mxu1 %vm1488_vm2, %v1578_v21  ;;  %2451 = vmatmul.msk.bf16.vlgmr.msra.gmra.mxu2 %vm1488_vm2, %v1578_v21 }
 0x360   : > { %1807 = vmatpush.bf16.msrb.mxu1 %v3189_v46  ;;  %1820 = vmatpush.bf16.msra.mxu2 %v3192_v47 }
 0x362   : > { %v2682_v22 = vpop.eup %2681 }
 0x363   : > { %v1571_v23 = vmul.f32 %v2682_v22, %v2666_v49  ;;  %v1548_v25 = vpop.xlane.xlu2 %1547 }
 0x364   : > { %2683 = vrcp.f32 %v1548_v25 }
 0x365   : > { %v1579_v34 = vpack.c.bf16 %v1571_v23, %v1571_v23 }
 0x367   : > { %2452 = vmatmul.msk.bf16.vlgmr.msra.gmra.mxu3 %vm1488_vm2, %v1579_v34  ;;  %2453 = vmatmul.msk.bf16.vlgmr.msrb.gmra.mxu0 %vm1488_vm2, %v1579_v34 }
 0x368   : > { %1847 = vmatpush.bf16.msra.mxu3 %v3197_v57  ;;  %1860 = vmatpush.bf16.msrb.mxu0 %v3200_v8 }
 0x36a   : > { %v2684_v14 = vpop.eup %2683 }
 0x36b   : > { %v1572_v26 = vmul.f32 %v2684_v14, %v2668_v54  ;;  %v1551_v27 = vpop.xlane.xlu0 %1550 }
 0x36c   : > { %2685 = vrcp.f32 %v1551_v27 }
 0x36d   : > { %v1580_v46 = vpack.c.bf16 %v1572_v26, %v1572_v26 }
 0x36f   : > { %2454 = vmatmul.msk.bf16.vlgmr.msra.gmra.mxu1 %vm1488_vm2, %v1580_v46  ;;  %2455 = vmatmul.msk.bf16.vlgmr.msrb.gmra.mxu2 %vm1488_vm2, %v1580_v46 }
 0x370   : > { %1887 = vmatpush.bf16.msra.mxu1 %v3203_v63  ;;  %1900 = vmatpush.bf16.msrb.mxu2 %v3206_v0 }
 0x372   : > { %v2686_v47 = vpop.eup %2685 }
 0x373   : > { %v1573_v28 = vmul.f32 %v2686_v47, %v2670_v56  ;;  %v1554_v30 = vpop.xlane.xlu1 %1553 }
 0x374   : > { %2687 = vrcp.f32 %v1554_v30 }
 0x375   : > { %v1581_v57 = vpack.c.bf16 %v1573_v28, %v1573_v28  ;;  %v1557_v24 = vpop.xlane.xlu2 %1556 }
 0x376   : > { %2689 = vrcp.f32 %v1557_v24 }
 0x377   : > { %2456 = vmatmul.msk.bf16.vlgmr.msrb.gmra.mxu3 %vm1488_vm2, %v1581_v57  ;;  %2457 = vmatmul.msk.bf16.vlgmr.msra.gmra.mxu0 %vm1488_vm2, %v1581_v57 }
 0x37a   : > { %v2688_v8 = vpop.eup %2687 }
 0x37b   : > { %v1574_v31 = vmul.f32 %v2688_v8, %v2672_v10 }
 0x37c   : > { %v2690_v35 = vpop.eup %2689 }
 0x37d   : > { %v1582_v32 = vpack.c.bf16 %v1574_v31, %v1574_v31  ;;  %v1575_v63 = vmul.f32 %v2690_v35, %v3222_v1 }
 0x37f   : > { %2458 = vmatmul.msk.bf16.vlgmr.msrb.gmra.mxu1 %vm1488_vm2, %v1582_v32  ;;  %2459 = vmatmul.msk.bf16.vlgmr.msra.gmra.mxu2 %vm1488_vm2, %v1582_v32  ;;  %v1583_v36 = vpack.c.bf16 %v1575_v63, %v1575_v63 }
 0x383   : > { %v1560_v0 = vpop.xlane.xlu0 %1559 }
 0x384   : > { %2691 = vrcp.f32 %v1560_v0 }
 0x387   : > { %2460 = vmatmul.msk.bf16.vlgmr.msra.gmra.mxu3 %vm1488_vm2, %v1583_v36  ;;  %2461 = vmatmul.msk.bf16.vlgmr.msrb.gmra.mxu0 %vm1488_vm2, %v1583_v36 }
 0x38a   : > { %v2692_v37 = vpop.eup %2691 }
 0x38b   : > { %v1576_v38 = vmul.f32 %v2692_v37, %v3226_v7 }
 0x38d   : > { %v1584_v39 = vpack.c.bf16 %v1576_v38, %v1576_v38 }
 0x38f   : > { %2462 = vmatmul.msk.bf16.vlgmr.msra.gmra.mxu1 %vm1488_vm2, %v1584_v39  ;;  %2463 = vmatmul.msk.bf16.vlgmr.msrb.gmra.mxu2 %vm1488_vm2, %v1584_v39 }
 0x390   : > { %2780 = shalt.err (!%p2777_p9)
}
 0x391   : > { %s2879_s17 = smov 128   ;;  %s2880_s29 = smov 8  }
 0x392   : > { %2580 = dma.vmem_to_hbm [thread:$0]  (%p2971_p4), %s1944_s18, 1024, %s1946_s15, %s1923_s20, %s2879_s17, %s2879_s17, %s2880_s29  }
 0x393   : > { %s3356_s0 = sshll.u32 %s3064_s13, 6  ;;  %s1962_s16 = scalar_lea.hbm %s3340_s9, %s2551_s28 }
 0x394   : > { %s3279_s1 = scalar_lea.vmem [#allocation8], %s3356_s0  ;;  %s1965_s15 = sshll.u32 %s1962_s16, 4  ;;  %s1966_s15 = int_to_ptr.hbm [resolvable:$true] %s1965_s15 }
 0x395   : > { %s1963_s18 = sshll.u32 %s3279_s1, 4  ;;  %s1928_s20 = scalar_lea.sflag [#allocation9], %s3064_s13  ;;  %s1964_s18 = int_to_ptr.vmem [resolvable:$true] %s1963_s18 }
 0x396   : > { %s2795_s25 = sshra.s32 %s1966_s15, 4  ;;  %s2801_s28 = scalar_lea.hbm %s3340_s9, 128  ;;  %s2796_s25 = int_to_ptr.hbm [resolvable:$true] %s2795_s25 }
 0x397   : > { %s2797_s26 = scalar_lea.hbm %s2796_s25, 64  ;;  %p2802_p13 = scmp.lt.s32.totalorder %s2796_s25, %s3340_s9 }
 0x398   : > { %p2798_p10 = scmp.ne.s32.totalorder %s2796_s25, %s2797_s26  ;;  %p2803_p0 = scmp.lt.s32.totalorder %s2801_s28, %s2797_s26 }
 0x39a   : > { %p2799_p11 = pnand %p2798_p10, %p2971_p4  ;;  %p2804_p1 = por %p2803_p0, %p2802_p13 }
 0x39c   : > { %p2800_p12 = pneg %p2799_p11 }
 0x39e   : > { %p2805_p2 = pnand %p2804_p1, %p2800_p12 }
 0x3d4   : > { %v1622_v40 = vpop.f32.mrf.mxu0 }
 0x3da   : > { %v1609_v41 = vpop.f32.mrf.mxu3 }
 0x3db   : > { %v1906_v42 = vpack.c.bf16 %v1622_v40, %v1609_v41 }
 0x3dc   : > { %v1624_v43 = vpop.f32.mrf.mxu0  ;;  %v1649_v44 = vpop.f32.mrf.mxu1 }
 0x3dd   : > { %1914 = vst [vmem:[%s3279_s1] sm:$0xff] %v1906_v42 }
 0x3e2   : > { %v1611_v45 = vpop.f32.mrf.mxu3  ;;  %v1662_v48 = vpop.f32.mrf.mxu2 }
 0x3e3   : > { %v1907_v49 = vpack.c.bf16 %v1662_v48, %v1649_v44 }
 0x3e4   : > { %v1651_v50 = vpop.f32.mrf.mxu1  ;;  %v1702_v51 = vpop.f32.mrf.mxu0 }
 0x3e5   : > { %1915 = vst [vmem:[%s3279_s1 + $0x8] sm:$0xff] %v1907_v49 }
 0x3ea   : > { %v1664_v52 = vpop.f32.mrf.mxu2  ;;  %v1689_v53 = vpop.f32.mrf.mxu3 }
 0x3eb   : > { %v1908_v54 = vpack.c.bf16 %v1702_v51, %v1689_v53 }
 0x3ec   : > { %v1704_v4 = vpop.f32.mrf.mxu0  ;;  %v1729_v11 = vpop.f32.mrf.mxu1 }
 0x3ed   : > { %1916 = vst [vmem:[%s3279_s1 + $0x10] sm:$0xff] %v1908_v54 }
 0x3f2   : > { %v1691_v12 = vpop.f32.mrf.mxu3  ;;  %v1742_v29 = vpop.f32.mrf.mxu2 }
 0x3f3   : > { %v1909_v33 = vpack.c.bf16 %v1742_v29, %v1729_v11 }
 0x3f4   : > { %v1731_v56 = vpop.f32.mrf.mxu1  ;;  %v1782_v58 = vpop.f32.mrf.mxu0 }
 0x3f5   : > { %1917 = vst [vmem:[%s3279_s1 + $0x18] sm:$0xff] %v1909_v33 }
 0x3fa   : > { %v1744_v60 = vpop.f32.mrf.mxu2  ;;  %v1769_v61 = vpop.f32.mrf.mxu3 }
 0x3fb   : > { %v1910_v62 = vpack.c.bf16 %v1782_v58, %v1769_v61 }
 0x3fc   : > { %v1784_v10 = vpop.f32.mrf.mxu0  ;;  %v1809_v17 = vpop.f32.mrf.mxu1 }
 0x3fd   : > { %1918 = vst [vmem:[%s3279_s1 + $0x20] sm:$0xff] %v1910_v62 }
 0x402   : > { %v1771_v1 = vpop.f32.mrf.mxu3  ;;  %v1822_v2 = vpop.f32.mrf.mxu2 }
 0x403   : > { %v1911_v3 = vpack.c.bf16 %v1822_v2, %v1809_v17 }
 0x404   : > { %v1811_v5 = vpop.f32.mrf.mxu1  ;;  %v1862_v6 = vpop.f32.mrf.mxu0 }
 0x405   : > { %1919 = vst [vmem:[%s3279_s1 + $0x28] sm:$0xff] %v1911_v3 }
 0x40a   : > { %v1824_v7 = vpop.f32.mrf.mxu2  ;;  %v1849_v9 = vpop.f32.mrf.mxu3 }
 0x40b   : > { %v1912_v13 = vpack.c.bf16 %v1862_v6, %v1849_v9 }
 0x40c   : > { %v1864_v15 = vpop.f32.mrf.mxu0  ;;  %v1889_v16 = vpop.f32.mrf.mxu1 }
 0x40d   : > { %1920 = vst [vmem:[%s3279_s1 + $0x30] sm:$0xff] %v1912_v13 }
 0x412   : > { %v1851_v55 = vpop.f32.mrf.mxu3  ;;  %v1902_v18 = vpop.f32.mrf.mxu2 }
 0x413   : > { %v1913_v19 = vpack.c.bf16 %v1902_v18, %v1889_v16 }
 0x414   : > { %v1891_v20 = vpop.f32.mrf.mxu1 }
 0x415   : > { %1921 = vst [vmem:[%s3279_s1 + $0x38] sm:$0xff] %v1913_v19 }
 0x416   : > { %2808 = shalt.err (!%p2805_p2)
}
 0x417   : > { %2581 = dma.vmem_to_hbm [thread:$0]  (%p2971_p4), %s1964_s18, 1024, %s1966_s15, %s1928_s20, %s2879_s17, %s2879_s17, %s2880_s29  }
 0x41a   : > { %v1904_v59 = vpop.f32.mrf.mxu2 }
 0x41b PF: > { %p2602_p3 = scmp.ge.s32.totalorder %s2871_s14, 2  ;;  %s1980_s13 = sand.u32 1, %s2851_s30  }
 0x41c   : > { %s1981_s1 = scalar_lea.sflag [#allocation4], %s1980_s13 }
 0x41d   : > { %p2592_p5 = pnand %p2602_p3, %p2978_p8 }
 0x41f   : > { %p2593_p6 = pneg %p2592_p5 }
 0x421   : > { %2842 = dma.done.wait (%p2593_p6), %s1981_s1, 1024  }
 0x422   : > { %2844 = vsyncadd (%p2593_p6), %s1981_s1, 4294966272  ;;  %s1991_s4 = scalar_lea.sflag [#allocation9], %s1980_s13 }
 0x423   : > { %2846 = dma.done.wait (%p2593_p6), %s1991_s4, 1024  }
 0x424   : > { %2848 = vsyncadd (%p2593_p6), %s1991_s4, 4294966272  ;;  %s28_s14 = sadd.s32 1, %s2871_s14   ;;  %s3357_s12 = sld [smem:[#allocation14_spill]] }
 0x425   : > { %p25_p7 = scmp.ge.s32.totalorder %s28_s14, 4   ;;  %s3358_s13 = sld [smem:[#allocation15_spill]] }
 0x426   : > { %s3359_s30 = smov %s2855_s10  ;;  %s3360_s10 = smov %s2859_s11 }
 0x427   : > { %s3361_s11 = smov %s2984_s22  ;;  %27 = sbr.rel (!%p25_p7) target bundleno = 12 (0xc), region = 116 }
 0x42c   :  { %1997 = vsyncpa [#allocation3], 1 }
 0x42d   :  { %1999 = vsyncpa [#allocation3 + $0x1], 1 }
 0x42e   :  { %2000 = vsyncpa [#allocation6], 1 }
 0x42f   :  { %2001 = vsyncpa [#allocation4], 1 }
 0x430   :  { %2003 = vsyncpa [#allocation4 + $0x1], 1 }
 0x431   :  { %2004 = vsyncpa [#allocation9], 1 }
 0x432   :  { %2006 = vsyncpa [#allocation9 + $0x1], 1 }

// kernel: tpu_custom_call.1
= control target key start
LH: loop header
LB: loop body
LE: loop exit
PB: predicated region body
PF: predicated region fallthrough
CT: control target
= control target key end

     0   :  { %s3331_s0 = inlined_call_operand.vmem [shape: bf16[2,64,16], index: 0, kind: input, shape index: {}]   ;;  %s3332_s1 = inlined_call_operand.vmem [shape: bf16[2,64,128], index: 1, kind: input, shape index: {}]   ;;  %s3333_s2 = inlined_call_operand.vmem [shape: bf16[16,128], index: 2, kind: input, shape index: {}]   ;;  %s3334_s3 = inlined_call_operand.vmem [shape: f32[1,128], index: 3, kind: input, shape index: {}]   ;;  %s3335_s4 = inlined_call_operand.hbm [shape: bf16[128,128], index: 4, kind: input, shape index: {}]   ;;  %s3336_s5 = inlined_call_operand.vmem [shape: f32[1,128], index: 5, kind: input, shape index: {}]   ;;  %s3337_s6 = inlined_call_operand.hbm [shape: bf16[256,512], index: 6, kind: input, shape index: {}]   ;;  %s3338_s7 = inlined_call_operand.vmem [shape: f32[1,512], index: 7, kind: input, shape index: {}]   ;;  %s3339_s8 = inlined_call_operand.hbm [shape: bf16[2,64,256], index: 8, kind: output, shape index: {0}]   ;;  %s3340_s9 = inlined_call_operand.hbm [shape: bf16[2,64,256], index: 9, kind: output, shape index: {1}]  }
   0x1   :  { %3344 = sst [smem:[#allocation16_spill]] %s3331_s0 }
   0x2   :  { %3345 = sst [smem:[#allocation17_spill]] %s3332_s1 }
   0x3   :  { %3346 = sst [smem:[#allocation18_spill]] %s3335_s4 }
   0x4   :  { %15 = vsyncpa [#allocation3], 0 }
   0x5   :  { %16 = vsyncpa [#allocation6], 0 }
   0x6   :  { %17 = vsyncpa [#allocation4], 0 }
   0x7   :  { %19 = vsyncpa [#allocation4 + $0x1], 0 }
   0x8   :  { %20 = vsyncpa [#allocation9], 0 }
   0x9   :  { %22 = vsyncpa [#allocation9 + $0x1], 0  ;;  %s2931_s30 = smov 0   ;;  %s2933_s10 = smov 0  }
   0xa   :  { %s2935_s11 = smov 0   ;;  %s2937_s12 = smov 0  }
   0xb   :  { %s2939_s13 = smov 0   ;;  %s2941_s14 = smov 0  }
   0xc LB: > { %3347 = sst [smem:[#allocation14_spill]] %s2867_s13  ;;  %s2121_s15 = sadd.s32 4294967295, %s2871_s14   ;;  %s2871_s14 = sphi %s2941_s14, %s28_s14   ;;  %s2867_s13 = sphi %s2939_s13, %s3358_s13   ;;  %s2863_s12 = sphi %s2937_s12, %s3357_s12   ;;  %s2859_s11 = sphi %s2935_s11, %s3361_s11   ;;  %s2855_s10 = sphi %s2933_s10, %s3360_s10   ;;  %s2851_s30 = sphi %s2931_s30, %s3359_s30  }
   0xd   : > { %s2122_s16 = sadd.s32 4294967294, %s2871_s14   ;;  %s40_s17 = sadd.s32 1, %s2867_s13 }
   0xe   : > { %s231_s18 = sadd.s32 1, %s2859_s11  ;;  %p42_p0 = scmp.ge.s32.totalorder %s40_s17, 2 }
   0xf   : > { %p241_p1 = scmp.ne.s32.totalorder %s2859_s11, %s2855_s10  ;;  %p242_p2 = scmp.eq.s32.totalorder %s2121_s15, 1 }
  0x10   : > { %p247_p3 = scmp.ne.s32.totalorder %s2855_s10, %s2851_s30  ;;  %s3363_s17 = smov (%p42_p0, %s40_s17), 0 }
  0x11   : > { %3348 = sst [smem:[#allocation15_spill]] %s3363_s17  ;;  %p2971_p4 = por %p242_p2, %p241_p1 }
  0x12   : > { %p248_p5 = scmp.eq.s32.totalorder %s2122_s16, 1  ;;  %s226_s20 = ssub.s32 %s2867_s13, %s3363_s17 }
  0x13   : > { %p2123_p6 = scmp.ge.s32.totalorder %s2871_s14, 1  ;;  %p229_p7 = scmp.eq.s32.totalorder %s226_s20, 0 }
  0x14   : > { %p2978_p8 = por %p248_p5, %p247_p3  ;;  %p283_p9 = scmp.lt.s32.totalorder %s2871_s14, 3 }
  0x15   : > { %s2984_s22 = scalar_select %p229_p7, %s2859_s11, %s231_s18  }
  0x16   : > { %p2986_p10 = pnand %p2123_p6, %p283_p9  ;;  %p2990_p11 = scmp.eq.s32.totalorder %s2121_s15, 0 }
  0x17   : > { %s3353_s4 = sld [smem:[#allocation18_spill]]  ;;  %s2873_s28 = smov [#allocation2]  }
  0x18   : > { %p2584_p12 = pneg %p2986_p10  ;;  %s302_s29 = sshll.u32 %s2873_s28, 4  ;;  %s303_s29 = int_to_ptr.vmem [resolvable:$true] %s302_s29 }
  0x19   : > { %s317_s15 = sshll.u32 %s3337_s6, 4  ;;  %s2874_s20 = smov 64   ;;  %s318_s15 = int_to_ptr.hbm [resolvable:$true] %s317_s15 }
  0x1a   : > { %p2585_p13 = pnand %p2990_p11, %p2584_p12  ;;  %s2875_s17 = smov 4  }
  0x1b   : > { %s2876_s13 = smov [#allocation5]   ;;  %s2877_s26 = smov 256  }
  0x1c   : > { %s319_s25 = sshll.u32 %s2876_s13, 4  ;;  %364 = sbr.rel (%p2986_p10) target bundleno = 1051 (0x41b), region = 52  ;;  %s320_s25 = int_to_ptr.vmem [resolvable:$true] %s319_s25 }
  0x1d   : > { %s300_s27 = sshll.u32 %s3353_s4, 4  ;;  %s2878_s4 = smov 16   ;;  %s301_s27 = int_to_ptr.hbm [resolvable:$true] %s300_s27 }
  0x1e   : > { %2587 = dma.hbm_to_vmem [thread:$0]  (!%p2585_p13), %s301_s27, 1024, %s303_s29, [#allocation3], %s2874_s20, %s2874_s20, %s2875_s17  }
  0x1f   : > { %2590 = dma.hbm_to_vmem [thread:$0]  (!%p2585_p13), %s318_s15, 8192, %s320_s25, [#allocation6], %s2877_s26, %s2877_s26, %s2878_s4  }
  0x21   : > { %2834 = dma.done.wait (%p2990_p11), [#allocation3], 1024  }
  0x22   : > { %2836 = vsyncadd (%p2990_p11), [#allocation3], 4294966272 }
  0x23   : > { %2838 = dma.done.wait (%p2990_p11), [#allocation6], 8192  }
  0x24   : > { %2840 = vsyncadd (%p2990_p11), [#allocation6], 4294959104  ;;  %p425_p0 = scmp.lt.s32.totalorder %s2863_s12, 1  ;;  %s3354_s0 = sld [smem:[#allocation16_spill]]  ;;  %v2478_v0 = vld [vmem:[%s3333_s2] sm:$0xff]  ;;  %vm487_vm0 = vcmask 130048  }
  0x25   : > { %507 = vmatpush.bf16.msra.mxu0 %v2478_v0  ;;  %v2486_v3 = vld [vmem:[#allocation2 + $0x38] sm:$0xff]  ;;  %v2485_v4 = vld [vmem:[#allocation2 + $0x30] sm:$0xff]  ;;  %v2484_v5 = vld [vmem:[#allocation2 + $0x28] sm:$0xff]  ;;  %s3355_s1 = sld [smem:[#allocation17_spill]]  ;;  %vm1593_vm1 = vcmask 1043456   ;;  %vm1488_vm2 = vcmask 64512  }
  0x26   : > { %s3016_s13 = scalar_select %p425_p0, %s2863_s12, 1  ;;  %609 = vmatpush.bf16.msra.mxu1 %v2486_v3  ;;  %v2483_v6 = vld [vmem:[#allocation2 + $0x20] sm:$0xff]  ;;  %v2482_v9 = vld [vmem:[#allocation2 + $0x18] sm:$0xff]  ;;  %v2481_v10 = vld [vmem:[#allocation2 + $0x10] sm:$0xff] }
  0x27   : > { %v2480_v11 = vld [vmem:[#allocation2 + $0x8] sm:$0xff]  ;;  %v2479_v12 = vld [vmem:[#allocation2] sm:$0xff]  ;;  %v2436_v29 = vld [vmem:[#allocation5 + $0x1f0] sm:$0xf0]  ;;  %s2551_s28 = sshll.u32 %s2863_s12, 6 }
  0x28   : > { %s2472_s4 = sshll.u32 %s3016_s13, 5  ;;  %v3030_v14 = vld [vmem:[%s3334_s3] ss:$0 sm:$0xff]  ;;  %v2547_v28 = vld [vmem:[#allocation5 + $0x1e4] sm:$0xf]  ;;  %s3064_s13 = sand.u32 1, %s2855_s10  }
  0x29   : > { %v2543_v30 = vld [vmem:[#allocation5 + $0x1c4] sm:$0xf]  ;;  %v2439_v32 = vor.u32 %v2547_v28, %v2436_v29  ;;  %v2420_v33 = vld [vmem:[#allocation5 + $0x1d0] sm:$0xf0]  ;;  %v2306_v34 = vld [vmem:[#allocation5 + $0xe0] sm:$0xf]  ;;  %s1942_s16 = scalar_lea.hbm %s3339_s8, %s2551_s28 }
  0x2a   : > { %s432_s27 = scalar_lea.vmem %s3354_s0, %s2472_s4  ;;  %610 = vmatpush.bf16.msra.mxu1 %v2485_v4  ;;  %v2517_v35 = vld [vmem:[#allocation5 + $0xec] sm:$0xf0]  ;;  %v2515_v37 = vld [vmem:[#allocation5 + $0xe4] sm:$0xf]  ;;  %v2308_v38 = vld [vmem:[#allocation5 + $0xf0] sm:$0xf0]  ;;  %v2423_v40 = vor.u32 %v2543_v30, %v2420_v33 }
  0x2b   : > { %v2474_v1 = vld [vmem:[%s432_s27] sm:$0xff]  ;;  %v2475_v2 = vld [vmem:[%s432_s27 + $0x8] sm:$0xff]  ;;  %v2476_v7 = vld [vmem:[%s432_s27 + $0x10] sm:$0xff]  ;;  %v2307_v36 = vor.u32 %v2517_v35, %v2306_v34  ;;  %v2311_v41 = vor.u32 %v2515_v37, %v2308_v38  ;;  %s3045_s20 = scalar_lea.vmem %s3355_s1, %s2472_s4  ;;  %s3343_s4 = sshll.u32 %s3064_s13, 6 }
  0x2c   : > { %2156 = vmatmul.msk.bf16.vlgmr.msra.gmra.mxu0 %vm487_vm0, %v2474_v1  ;;  %v2477_v8 = vld [vmem:[%s432_s27 + $0x18] sm:$0xff]  ;;  %v2434_v39 = vld [vmem:[#allocation5 + $0x1e0] sm:$0xf]  ;;  %v2549_v42 = vld [vmem:[#allocation5 + $0x1ec] sm:$0xf0]  ;;  %s3071_s17 = scalar_lea.vmem [#allocation7], %s3343_s4 }
  0x2d   : > { %v2539_v43 = vld [vmem:[#allocation5 + $0x1a4] sm:$0xf]  ;;  %1128 = vmatpush.bf16.msra.mxu2 %v2307_v36  ;;  %v2435_v44 = vor.u32 %v2549_v42, %v2434_v39  ;;  %v2404_v45 = vld [vmem:[#allocation5 + $0x1b0] sm:$0xf0]  ;;  %v2290_v46 = vld [vmem:[#allocation5 + $0xc0] sm:$0xf]  ;;  %1186 = vmatpush.bf16.msrb.mxu0 %v2311_v41 }
  0x2e   : > { %611 = vmatpush.bf16.msra.mxu1 %v2484_v5  ;;  %v2513_v47 = vld [vmem:[#allocation5 + $0xcc] sm:$0xf0]  ;;  %v2511_v49 = vld [vmem:[#allocation5 + $0xc4] sm:$0xf]  ;;  %v2292_v50 = vld [vmem:[#allocation5 + $0xd0] sm:$0xf0]  ;;  %v2407_v56 = vor.u32 %v2539_v43, %v2404_v45 }
  0x2f   : > { %v2291_v48 = vor.u32 %v2513_v47, %v2290_v46  ;;  %v2418_v51 = vld [vmem:[#allocation5 + $0x1c0] sm:$0xf]  ;;  %1157 = vmatpush.bf16.msra.mxu3 %v2435_v44  ;;  %v2295_v52 = vor.u32 %v2511_v49, %v2292_v50  ;;  %v2545_v53 = vld [vmem:[#allocation5 + $0x1cc] sm:$0xf0]  ;;  %v2535_v54 = vld [vmem:[#allocation5 + $0x184] sm:$0xf] }
  0x30   : > { %v2388_v55 = vld [vmem:[#allocation5 + $0x190] sm:$0xf0]  ;;  %v2419_v57 = vor.u32 %v2545_v53, %v2418_v51  ;;  %v2274_v58 = vld [vmem:[#allocation5 + $0xa0] sm:$0xf]  ;;  %v2509_v59 = vld [vmem:[#allocation5 + $0xac] sm:$0xf0] }
  0x31   : > { %v2507_v60 = vld [vmem:[#allocation5 + $0xa4] sm:$0xf]  ;;  %1129 = vmatpush.bf16.msra.mxu2 %v2291_v48  ;;  %v2275_v62 = vor.u32 %v2509_v59, %v2274_v58  ;;  %v2276_v63 = vld [vmem:[#allocation5 + $0xb0] sm:$0xf0]  ;;  %v2402_v0 = vld [vmem:[#allocation5 + $0x1a0] sm:$0xf]  ;;  %1187 = vmatpush.bf16.msrb.mxu0 %v2295_v52 }
  0x32   : > { %612 = vmatpush.bf16.msra.mxu1 %v2483_v6  ;;  %v2541_v1 = vld [vmem:[#allocation5 + $0x1ac] sm:$0xf0]  ;;  %v2279_v3 = vor.u32 %v2507_v60, %v2276_v63  ;;  %v2391_v6 = vor.u32 %v2535_v54, %v2388_v55  ;;  %v2503_v28 = vld [vmem:[#allocation5 + $0x84] sm:$0xf]  ;;  %v2356_v34 = vld [vmem:[#allocation5 + $0x150] sm:$0xf0] }
  0x33   : > { %1158 = vmatpush.bf16.msra.mxu3 %v2419_v57  ;;  %v2403_v5 = vor.u32 %v2541_v1, %v2402_v0  ;;  %v2527_v33 = vld [vmem:[#allocation5 + $0x144] sm:$0xf]  ;;  %v2354_v35 = vld [vmem:[#allocation5 + $0x140] sm:$0xf]  ;;  %v2529_v36 = vld [vmem:[#allocation5 + $0x14c] sm:$0xf0] }
  0x34   : > { %v2242_v37 = vld [vmem:[#allocation5 + $0x60] sm:$0xf]  ;;  %v2501_v38 = vld [vmem:[#allocation5 + $0x6c] sm:$0xf0]  ;;  %v2499_v39 = vld [vmem:[#allocation5 + $0x64] sm:$0xf] }
  0x35   : > { %1130 = vmatpush.bf16.msra.mxu2 %v2275_v62  ;;  %1188 = vmatpush.bf16.msrb.mxu0 %v2279_v3  ;;  %v2243_v41 = vor.u32 %v2501_v38, %v2242_v37  ;;  %v2244_v42 = vld [vmem:[#allocation5 + $0x70] sm:$0xf0]  ;;  %v2523_v44 = vld [vmem:[#allocation5 + $0x124] sm:$0xf]  ;;  %v2338_v47 = vld [vmem:[#allocation5 + $0x120] sm:$0xf] }
  0x36   : > { %613 = vmatpush.bf16.msra.mxu1 %v2482_v9  ;;  %v2531_v9 = vld [vmem:[#allocation5 + $0x164] sm:$0xf]  ;;  %v2247_v43 = vor.u32 %v2499_v39, %v2244_v42  ;;  %v2340_v45 = vld [vmem:[#allocation5 + $0x130] sm:$0xf0]  ;;  %v2525_v48 = vld [vmem:[#allocation5 + $0x12c] sm:$0xf0] }
  0x37   : > { %1159 = vmatpush.bf16.msra.mxu3 %v2403_v5  ;;  %v2343_v46 = vor.u32 %v2523_v44, %v2340_v45  ;;  %v2226_v49 = vld [vmem:[#allocation5 + $0x40] sm:$0xf]  ;;  %v2497_v50 = vld [vmem:[#allocation5 + $0x4c] sm:$0xf0]  ;;  %v2339_v51 = vor.u32 %v2525_v48, %v2338_v47  ;;  %v2495_v53 = vld [vmem:[#allocation5 + $0x44] sm:$0xf] }
  0x38   : > { %v2227_v52 = vor.u32 %v2497_v50, %v2226_v49  ;;  %v2228_v54 = vld [vmem:[#allocation5 + $0x50] sm:$0xf0]  ;;  %v2322_v59 = vld [vmem:[#allocation5 + $0x100] sm:$0xf]  ;;  %v2521_v60 = vld [vmem:[#allocation5 + $0x10c] sm:$0xf0] }
  0x39   : > { %v2231_v55 = vor.u32 %v2495_v53, %v2228_v54  ;;  %v2324_v57 = vld [vmem:[#allocation5 + $0x110] sm:$0xf0]  ;;  %v2493_v62 = vld [vmem:[#allocation5 + $0x2c] sm:$0xf0]  ;;  %v2491_v63 = vld [vmem:[#allocation5 + $0x24] sm:$0xf]  ;;  %v2323_v0 = vor.u32 %v2521_v60, %v2322_v59 }
  0x3a   : > { %614 = vmatpush.bf16.msra.mxu1 %v2481_v10  ;;  %v2372_v10 = vld [vmem:[#allocation5 + $0x170] sm:$0xf0]  ;;  %v2194_v5 = vld [vmem:[#allocation5] sm:$0xf]  ;;  %v2442_v38 = vld [vmem:[#allocation5 + $0x1e8] sm:$0xf] }
  0x3b   : > { %v2550_v39 = vld [vmem:[#allocation5 + $0x1f4] sm:$0xf0]  ;;  %v2444_v42 = vld [vmem:[#allocation5 + $0x1f8] sm:$0xf0]  ;;  %v2512_v49 = vld [vmem:[#allocation5 + $0xcc] sm:$0xf] }
  0x3c   : > { %2157 = vmatmul.msk.bf16.gmra.mxu0 %vm487_vm0, %v2475_v2  ;;  %v2514_v47 = vld [vmem:[#allocation5 + $0xd4] sm:$0xf0]  ;;  %v2300_v50 = vld [vmem:[#allocation5 + $0xd8] sm:$0xf0]  ;;  %v2426_v53 = vld [vmem:[#allocation5 + $0x1c8] sm:$0xf] }
  0x3d   : > { %v2546_v54 = vld [vmem:[#allocation5 + $0x1d4] sm:$0xf0]  ;;  %s1943_s18 = sshll.u32 %s3071_s17, 4  ;;  %s1945_s15 = sshll.u32 %s1942_s16, 4  ;;  %s1944_s18 = int_to_ptr.vmem [resolvable:$true] %s1943_s18  ;;  %s1946_s15 = int_to_ptr.hbm [resolvable:$true] %s1945_s15 }
  0x3e   : > { %615 = vmatpush.bf16.msra.mxu1 %v2480_v11  ;;  %s2767_s25 = sshra.s32 %s1946_s15, 4  ;;  %s2773_s4 = scalar_lea.hbm %s3339_s8, 128  ;;  %s2768_s25 = int_to_ptr.hbm [resolvable:$true] %s2767_s25 }
  0x3f   : > { %s2769_s26 = scalar_lea.hbm %s2768_s25, 64  ;;  %p2774_p5 = scmp.lt.s32.totalorder %s2768_s25, %s3339_s8 }
  0x40   : > { %p2770_p1 = scmp.ne.s32.totalorder %s2768_s25, %s2769_s26  ;;  %p2775_p6 = scmp.lt.s32.totalorder %s2773_s4, %s2769_s26 }
  0x42   : > { %616 = vmatpush.bf16.msra.mxu1 %v2479_v12  ;;  %v2375_v12 = vor.u32 %v2531_v9, %v2372_v10  ;;  %v2196_v9 = vld [vmem:[#allocation5 + $0x10] sm:$0xf0]  ;;  %p2771_p2 = pnand %p2770_p1, %p2971_p4  ;;  %p2776_p7 = por %p2775_p6, %p2774_p5 }
  0x44   : > { %p2772_p3 = pneg %p2771_p2 }
  0x46   : > { %1215 = vmatpush.bf16.msrb.mxu1 %v2439_v32  ;;  %p2777_p9 = pnand %p2776_p7, %p2772_p3 }
  0x4a   : > { %1216 = vmatpush.bf16.msrb.mxu1 %v2423_v40  ;;  %v2355_v40 = vor.u32 %v2529_v36, %v2354_v35  ;;  %v2316_v35 = vld [vmem:[#allocation5 + $0xf8] sm:$0xf0] }
  0x4c   : > { %2158 = vmatmul.msk.bf16.gmra.mxu0 %vm487_vm0, %v2476_v7 }
  0x4e   : > { %1217 = vmatpush.bf16.msrb.mxu1 %v2407_v56  ;;  %v2519_v56 = vld [vmem:[#allocation5 + $0x104] sm:$0xf] }
  0x4f   : > { %v2327_v58 = vor.u32 %v2519_v56, %v2324_v57  ;;  %v2427_v57 = vor.u32 %v2546_v54, %v2426_v53  ;;  %v2496_v53 = vld [vmem:[#allocation5 + $0x4c] sm:$0xf]  ;;  %v2236_v54 = vld [vmem:[#allocation5 + $0x58] sm:$0xf0] }
  0x52   : > { %1218 = vmatpush.bf16.msrb.mxu1 %v2391_v6  ;;  %v2489_v6 = vld [vmem:[#allocation5 + $0xc] sm:$0xf0] }
  0x56   : > { %1219 = vmatpush.bf16.msrb.mxu1 %v2375_v12  ;;  %v3058_v12 = vld [vmem:[%s3336_s5] ss:$0 sm:$0xff] }
  0x5c   : > { %2159 = vmatmul.msk.bf16.gmra.mxu0 %vm487_vm0, %v2477_v8 }
  0xa9   : > { %v509_v13 = vpop.f32.mrf.mxu0 }
  0xaa   : > { %v510_v15 = vadd.f32 %v3030_v14, %v509_v13 }
  0xac   : > { %v529_v18 = vmax.f32 %v510_v15, 0.0 }
  0xb1   : > { %v511_v16 = vpop.f32.mrf.mxu0 }
  0xb2   : > { %v512_v17 = vadd.f32 %v3030_v14, %v511_v16 }
  0xb4   : > { %v530_v19 = vmax.f32 %v512_v17, 0.0 }
  0xb6   : > { %v537_v20 = vpack.c.bf16 %v530_v19, %v529_v18 }
  0xb8   : > { %617 = vmatmul.bf16.vlgmr.msra.gmra.mxu1 %v537_v20 }
  0xb9   : > { %v514_v21 = vpop.f32.mrf.mxu0 }
  0xba   : > { %v515_v22 = vadd.f32 %v3030_v14, %v514_v21  ;;  %v2386_v21 = vld [vmem:[#allocation5 + $0x180] sm:$0xf] }
  0xbc   : > { %v531_v25 = vmax.f32 %v515_v22, 0.0  ;;  %v2537_v22 = vld [vmem:[#allocation5 + $0x18c] sm:$0xf0] }
  0xc1   : > { %v516_v23 = vpop.f32.mrf.mxu0 }
  0xc2   : > { %v517_v24 = vadd.f32 %v3030_v14, %v516_v23  ;;  %v2387_v23 = vor.u32 %v2537_v22, %v2386_v21 }
  0xc4   : > { %v532_v26 = vmax.f32 %v517_v24, 0.0  ;;  %1160 = vmatpush.bf16.msra.mxu3 %v2387_v23  ;;  %v2370_v24 = vld [vmem:[#allocation5 + $0x160] sm:$0xf] }
  0xc6   : > { %v538_v27 = vpack.c.bf16 %v532_v26, %v531_v25  ;;  %v2533_v25 = vld [vmem:[#allocation5 + $0x16c] sm:$0xf0]  ;;  %v2258_v26 = vld [vmem:[#allocation5 + $0x80] sm:$0xf] }
  0xc7   : > { %v2371_v29 = vor.u32 %v2533_v25, %v2370_v24  ;;  %v3075_v24 = vld [vmem:[%s3045_s20 + $0x10] sm:$0xff]  }
  0xc8   : > { %622 = vmatmul.bf16.gmra.mxu1 %v538_v27  ;;  %v2505_v27 = vld [vmem:[#allocation5 + $0x8c] sm:$0xf0] }
  0xc9   : > { %v519_v31 = vpop.f32.mrf.mxu0  ;;  %v2259_v30 = vor.u32 %v2505_v27, %v2258_v26  ;;  %1161 = vmatpush.bf16.msra.mxu3 %v2371_v29 }
  0xca   : > { %v520_v61 = vadd.f32 %v3030_v14, %v519_v31  ;;  %v2260_v31 = vld [vmem:[#allocation5 + $0x90] sm:$0xf0] }
  0xcb   : > { %v2263_v32 = vor.u32 %v2503_v28, %v2260_v31  ;;  %1131 = vmatpush.bf16.msra.mxu2 %v2259_v30 }
  0xcc   : > { %v533_v7 = vmax.f32 %v520_v61, 0.0  ;;  %v2210_v61 = vld [vmem:[#allocation5 + $0x20] sm:$0xf] }
  0xcd   : > { %1189 = vmatpush.bf16.msrb.mxu0 %v2263_v32  ;;  %1162 = vmatpush.bf16.msra.mxu3 %v2355_v40  ;;  %v2211_v1 = vor.u32 %v2493_v62, %v2210_v61  ;;  %v2314_v32 = vld [vmem:[#allocation5 + $0xe8] sm:$0xf]  ;;  %v2443_v40 = vor.u32 %v2550_v39, %v2442_v38  ;;  %v2500_v38 = vld [vmem:[#allocation5 + $0x6c] sm:$0xf] }
  0xce   : > { %v2282_v62 = vld [vmem:[#allocation5 + $0xa8] sm:$0xf] }
  0xcf   : > { %1132 = vmatpush.bf16.msra.mxu2 %v2243_v41  ;;  %v2548_v41 = vld [vmem:[#allocation5 + $0x1ec] sm:$0xf] }
  0xd0   : > { %v2447_v45 = vor.u32 %v2548_v41, %v2444_v42 }
  0xd1   : > { %v521_v2 = vpop.f32.mrf.mxu0  ;;  %1190 = vmatpush.bf16.msrb.mxu0 %v2247_v43  ;;  %1163 = vmatpush.bf16.msra.mxu3 %v2339_v51 }
  0xd2   : > { %v522_v4 = vadd.f32 %v3030_v14, %v521_v2  ;;  %v2212_v2 = vld [vmem:[#allocation5 + $0x30] sm:$0xf0] }
  0xd3   : > { %1133 = vmatpush.bf16.msra.mxu2 %v2227_v52  ;;  %v2215_v3 = vor.u32 %v2491_v63, %v2212_v2  ;;  %v2303_v52 = vor.u32 %v2512_v49, %v2300_v50  ;;  %v2510_v63 = vld [vmem:[#allocation5 + $0xb4] sm:$0xf0]  ;;  %v2284_v2 = vld [vmem:[#allocation5 + $0xb8] sm:$0xf0]  ;;  %v2563_v50 = vunpack.c.l.b16 %v3075_v24 }
  0xd4   : > { %v534_v8 = vmax.f32 %v522_v4, 0.0  ;;  %v3048_v4 = vld [vmem:[%s3045_s20] sm:$0xff]  }
  0xd5   : > { %1191 = vmatpush.bf16.msrb.mxu0 %v2231_v55  ;;  %1164 = vmatpush.bf16.msra.mxu3 %v2323_v0  ;;  %v2556_v26 = vunpack.c.h.b16 %v3048_v4  ;;  %v2544_v55 = vld [vmem:[#allocation5 + $0x1cc] sm:$0xf] }
  0xd6   : > { %v539_v11 = vpack.c.bf16 %v534_v8, %v533_v7  ;;  %v2487_v7 = vld [vmem:[#allocation5 + $0x4] sm:$0xf]  ;;  %v2195_v8 = vor.u32 %v2489_v6, %v2194_v5  ;;  %v2508_v0 = vld [vmem:[#allocation5 + $0xac] sm:$0xf]  ;;  %v2410_v6 = vld [vmem:[#allocation5 + $0x1a8] sm:$0xf] }
  0xd7   : > { %1134 = vmatpush.bf16.msra.mxu2 %v2211_v1  ;;  %v2199_v10 = vor.u32 %v2487_v7, %v2196_v9  ;;  %v2283_v1 = vor.u32 %v2510_v63, %v2282_v62  ;;  %v2287_v5 = vor.u32 %v2508_v0, %v2284_v2  ;;  %v2542_v7 = vld [vmem:[#allocation5 + $0x1b4] sm:$0xf0]  ;;  %v2364_v62 = vld [vmem:[#allocation5 + $0x158] sm:$0xf0]  ;;  %v2218_v63 = vld [vmem:[#allocation5 + $0x28] sm:$0xf] }
  0xd8   : > { %627 = vmatmul.bf16.gmra.mxu1 %v539_v11  ;;  %1165 = vmatmul.bf16.vlgmr.msra.gmra.mxu3 %v3048_v4  ;;  %v3053_v11 = vld [vmem:[%s3045_s20 + $0x8] sm:$0xff]   ;;  %v2411_v9 = vor.u32 %v2542_v7, %v2410_v6  ;;  %v2494_v0 = vld [vmem:[#allocation5 + $0x34] sm:$0xf0]  ;;  %v2220_v6 = vld [vmem:[#allocation5 + $0x38] sm:$0xf0] }
  0xd9   : > { %v524_v13 = vpop.f32.mrf.mxu0  ;;  %1192 = vmatpush.bf16.msrb.mxu0 %v2215_v3  ;;  %v2559_v44 = vunpack.c.l.b16 %v3053_v11  ;;  %1273 = vmatpush.bf16.msrb.mxu3 %v2443_v40  ;;  %v2252_v40 = vld [vmem:[#allocation5 + $0x78] sm:$0xf0]  ;;  %v2346_v7 = vld [vmem:[#allocation5 + $0x128] sm:$0xf] }
  0xda   : > { %v525_v15 = vadd.f32 %v3030_v14, %v524_v13  ;;  %v2255_v42 = vor.u32 %v2500_v38, %v2252_v40 }
  0xdb   : > { %1135 = vmatpush.bf16.msra.mxu2 %v2195_v8  ;;  %v3093_v8 = vld [vmem:[%s3045_s20 + $0x18] sm:$0xff]   ;;  %s1923_s20 = scalar_lea.sflag [#allocation4], %s3064_s13 }
  0xdc   : > { %v535_v18 = vmax.f32 %v525_v15, 0.0 }
  0xdd   : > { %1193 = vmatpush.bf16.msrb.mxu0 %v2199_v10  ;;  %1274 = vmatpush.bf16.msrb.mxu3 %v2427_v57  ;;  %v2540_v10 = vld [vmem:[#allocation5 + $0x1ac] sm:$0xf]  ;;  %v2362_v57 = vld [vmem:[#allocation5 + $0x148] sm:$0xf] }
  0xe1   : > { %v526_v16 = vpop.f32.mrf.mxu0  ;;  %1275 = vmatpush.bf16.msrb.mxu3 %v2411_v9 }
  0xe2   : > { %v527_v17 = vadd.f32 %v3030_v14, %v526_v16  ;;  %v2359_v14 = vor.u32 %v2527_v33, %v2356_v34  ;;  %v2518_v33 = vld [vmem:[#allocation5 + $0xf4] sm:$0xf0]  ;;  %v2516_v34 = vld [vmem:[#allocation5 + $0xec] sm:$0xf] }
  0xe3   : > { %v2319_v37 = vor.u32 %v2516_v34, %v2316_v35 }
  0xe4   : > { %v536_v19 = vmax.f32 %v527_v17, 0.0  ;;  %1220 = vmatpush.bf16.msrb.mxu1 %v2359_v14  ;;  %v2315_v14 = vor.u32 %v2518_v33, %v2314_v32  ;;  %v2396_v32 = vld [vmem:[#allocation5 + $0x198] sm:$0xf0] }
  0xe5   : > { %1302 = vmatpush.bf16.msra.mxu0 %v2319_v37  ;;  %v2502_v37 = vld [vmem:[#allocation5 + $0x74] sm:$0xf0] }
  0xe6   : > { %v540_v20 = vpack.c.bf16 %v536_v19, %v535_v18  ;;  %v2555_v18 = vunpack.c.l.b16 %v3048_v4  ;;  %1244 = vmatpush.bf16.msrb.mxu2 %v2315_v14 }
  0xe8   : > { %632 = vmatmul.bf16.gmra.mxu1 %v540_v20  ;;  %1170 = vmatmul.bf16.gmra.mxu3 %v3053_v11 }
  0xe9   : > { %1221 = vmatpush.bf16.msrb.mxu1 %v2343_v46  ;;  %v2298_v46 = vld [vmem:[#allocation5 + $0xc8] sm:$0xf]  ;;  %1303 = vmatpush.bf16.msra.mxu0 %v2303_v52  ;;  %v2498_v52 = vld [vmem:[#allocation5 + $0x54] sm:$0xf0] }
  0xea   : > { %v2299_v48 = vor.u32 %v2514_v47, %v2298_v46  ;;  %v2532_v46 = vld [vmem:[#allocation5 + $0x16c] sm:$0xf]  ;;  %v2380_v47 = vld [vmem:[#allocation5 + $0x178] sm:$0xf0] }
  0xec   : > { %1245 = vmatpush.bf16.msrb.mxu2 %v2299_v48  ;;  %v2234_v48 = vld [vmem:[#allocation5 + $0x48] sm:$0xf] }
  0xed   : > { %1222 = vmatpush.bf16.msrb.mxu1 %v2327_v58  ;;  %v2428_v58 = vld [vmem:[#allocation5 + $0x1d8] sm:$0xf0]  ;;  %1304 = vmatpush.bf16.msra.mxu0 %v2287_v5  ;;  %v2492_v5 = vld [vmem:[#allocation5 + $0x2c] sm:$0xf] }
  0xee   : > { %v2431_v61 = vor.u32 %v2544_v55, %v2428_v58  ;;  %v2235_v55 = vor.u32 %v2498_v52, %v2234_v48  ;;  %v2530_v58 = vld [vmem:[#allocation5 + $0x154] sm:$0xf0] }
  0xf0   : > { %1246 = vmatpush.bf16.msrb.mxu2 %v2283_v1 }
  0xf1   : > { %1331 = vmatpush.bf16.msra.mxu1 %v2447_v45 }
  0xf5   : > { %1332 = vmatpush.bf16.msra.mxu1 %v2431_v61  ;;  %v2363_v61 = vor.u32 %v2530_v58, %v2362_v57 }
  0xf8   : > { %1223 = vmatmul.bf16.vlgmr.msrb.gmra.mxu1 %v3048_v4  ;;  %1175 = vmatmul.bf16.gmra.mxu3 %v3075_v24 }
 0x108   : > { %1228 = vmatmul.bf16.gmra.mxu1 %v3053_v11  ;;  %1180 = vmatmul.bf16.gmra.mxu3 %v3093_v8 }
 0x118   : > { %1233 = vmatmul.bf16.gmra.mxu1 %v3075_v24 }
 0x128   : > { %1238 = vmatmul.bf16.gmra.mxu1 %v3093_v8 }
 0x135   : > { %v618_v13 = vpop.f32.mrf.mxu1 }
 0x136   : > { %v619_v15 = vadd.f32 %v3058_v12, %v618_v13  ;;  %v2412_v13 = vld [vmem:[#allocation5 + $0x1b8] sm:$0xf0] }
 0x138   : > { %v638_v16 = vmax.f32 %v619_v15, 0.0 }
 0x13a   : > { %v646_v17 = vpack.c.bf16 %v638_v16, %v638_v16  ;;  %v2560_v16 = vunpack.c.h.b16 %v3053_v11 }
 0x13c   : > { %v670_v19 = vunpack.c.l.b16 %v646_v17  ;;  %v2415_v17 = vor.u32 %v2540_v10, %v2412_v13  ;;  %v2223_v13 = vor.u32 %v2492_v5, %v2220_v6 }
 0x13d   : > { %v620_v20 = vpop.f32.mrf.mxu1 }
 0x13e   : > { %v710_v21 = vpack.c.b16 %v2555_v18, %v670_v19  ;;  %v621_v22 = vadd.f32 %v3058_v12, %v620_v20  ;;  %v2266_v18 = vld [vmem:[#allocation5 + $0x88] sm:$0xf]  ;;  %v2504_v20 = vld [vmem:[#allocation5 + $0x8c] sm:$0xf]  ;;  %1333 = vmatpush.bf16.msra.mxu1 %v2415_v17  ;;  %v2348_v17 = vld [vmem:[#allocation5 + $0x138] sm:$0xf0] }
 0x140   : > { %726 = vst [vmem:[%s3071_s17] sm:$0xff] %v710_v21  ;;  %v639_v23 = vmax.f32 %v621_v22, 0.0  ;;  %v2268_v22 = vld [vmem:[#allocation5 + $0x98] sm:$0xf0] }
 0x142   : > { %v647_v25 = vpack.c.bf16 %v639_v23, %v639_v23 }
 0x144   : > { %v671_v27 = vunpack.c.l.b16 %v647_v25  ;;  %v2271_v25 = vor.u32 %v2504_v20, %v2268_v22  ;;  %v2490_v20 = vld [vmem:[#allocation5 + $0x14] sm:$0xf0] }
 0x145   : > { %v623_v28 = vpop.f32.mrf.mxu1 }
 0x146   : > { %v3080_v29 = vpack.c.b16 %v671_v27, %v670_v19  ;;  %v711_v30 = vpack.c.b16 %v2556_v26, %v671_v27  ;;  %v624_v31 = vadd.f32 %v3058_v12, %v623_v28  ;;  %v2506_v19 = vld [vmem:[#allocation5 + $0x94] sm:$0xf0]  ;;  %v2394_v26 = vld [vmem:[#allocation5 + $0x188] sm:$0xf]  ;;  %v2536_v28 = vld [vmem:[#allocation5 + $0x18c] sm:$0xf]  ;;  %1305 = vmatpush.bf16.msra.mxu0 %v2271_v25 }
 0x147   : > { %v2267_v21 = vor.u32 %v2506_v19, %v2266_v18  ;;  %v2538_v27 = vld [vmem:[#allocation5 + $0x194] sm:$0xf0]  ;;  %v2399_v35 = vor.u32 %v2536_v28, %v2396_v32  ;;  %v2202_v19 = vld [vmem:[#allocation5 + $0x8] sm:$0xf] }
 0x148   : > { %727 = vst [vmem:[%s3071_s17 + $0x8] sm:$0xff] %v711_v30  ;;  %v640_v36 = vmax.f32 %v624_v31, 0.0  ;;  %1136 = vmatmul.bf16.vlgmr.msra.gmra.mxu2 %v3080_v29  ;;  %1194 = vmatmul.bf16.vlgmr.msrb.gmra.mxu0 %v3080_v29  ;;  %v2395_v31 = vor.u32 %v2538_v27, %v2394_v26  ;;  %v2330_v25 = vld [vmem:[#allocation5 + $0x108] sm:$0xf]  ;;  %v2203_v27 = vor.u32 %v2490_v20, %v2202_v19  ;;  %v2522_v28 = vld [vmem:[#allocation5 + $0x114] sm:$0xf0] }
 0x149   : > { %1247 = vmatpush.bf16.msrb.mxu2 %v2267_v21  ;;  %1334 = vmatpush.bf16.msra.mxu1 %v2399_v35  ;;  %v2488_v21 = vld [vmem:[#allocation5 + $0xc] sm:$0xf]  ;;  %v2331_v35 = vor.u32 %v2522_v28, %v2330_v25 }
 0x14a   : > { %v3086_v43 = vpack.c.bf16 %v640_v36, %v640_v36  ;;  %v2250_v36 = vld [vmem:[#allocation5 + $0x68] sm:$0xf]  ;;  %1276 = vmatpush.bf16.msrb.mxu3 %v2395_v31  ;;  %1306 = vmatpush.bf16.msra.mxu0 %v2255_v42  ;;  %v2564_v31 = vunpack.c.h.b16 %v3075_v24 }
 0x14b   : > { %v2251_v39 = vor.u32 %v2502_v37, %v2250_v36 }
 0x14c   : > { %v672_v51 = vunpack.c.l.b16 %v3086_v43  ;;  %v2378_v43 = vld [vmem:[#allocation5 + $0x168] sm:$0xf] }
 0x14d   : > { %v625_v56 = vpop.f32.mrf.mxu1  ;;  %1248 = vmatpush.bf16.msrb.mxu2 %v2251_v39 }
 0x14e   : > { %v712_v59 = vpack.c.b16 %v2559_v44, %v672_v51  ;;  %v626_v60 = vadd.f32 %v3058_v12, %v625_v56  ;;  %v2534_v44 = vld [vmem:[#allocation5 + $0x174] sm:$0xf0]  ;;  %v2239_v56 = vor.u32 %v2496_v53, %v2236_v54 }
 0x14f   : > { %v2379_v45 = vor.u32 %v2534_v44, %v2378_v43  ;;  %v2567_v44 = vunpack.c.l.b16 %v3093_v8 }
 0x150   : > { %728 = vst [vmem:[%s3071_s17 + $0x10] sm:$0xff] %v712_v59  ;;  %v641_v3 = vmax.f32 %v626_v60, 0.0  ;;  %v2528_v59 = vld [vmem:[#allocation5 + $0x14c] sm:$0xf]  ;;  %1307 = vmatpush.bf16.msra.mxu0 %v2239_v56 }
 0x151   : > { %1277 = vmatpush.bf16.msrb.mxu3 %v2379_v45  ;;  %1249 = vmatpush.bf16.msrb.mxu2 %v2235_v55  ;;  %v2367_v2 = vor.u32 %v2528_v59, %v2364_v62 }
 0x152   : > { %v649_v15 = vpack.c.bf16 %v641_v3, %v641_v3  ;;  %v2219_v3 = vor.u32 %v2494_v0, %v2218_v63 }
 0x154   : > { %v673_v23 = vunpack.c.l.b16 %v649_v15  ;;  %v2526_v15 = vld [vmem:[#allocation5 + $0x134] sm:$0xf0]  ;;  %1308 = vmatpush.bf16.msra.mxu0 %v2223_v13 }
 0x155   : > { %v628_v30 = vpop.f32.mrf.mxu1  ;;  %1278 = vmatpush.bf16.msrb.mxu3 %v2363_v61  ;;  %v2347_v18 = vor.u32 %v2526_v15, %v2346_v7  ;;  %1250 = vmatpush.bf16.msrb.mxu2 %v2219_v3 }
 0x156   : > { %v3098_v33 = vpack.c.b16 %v673_v23, %v672_v51  ;;  %v713_v34 = vpack.c.b16 %v2560_v16, %v673_v23  ;;  %v629_v14 = vadd.f32 %v3058_v12, %v628_v30  ;;  %v2383_v51 = vor.u32 %v2532_v46, %v2380_v47  ;;  %v2524_v16 = vld [vmem:[#allocation5 + $0x12c] sm:$0xf]  ;;  %v2204_v23 = vld [vmem:[#allocation5 + $0x18] sm:$0xf0] }
 0x157   : > { %v2351_v26 = vor.u32 %v2524_v16, %v2348_v17  ;;  %v2207_v32 = vor.u32 %v2488_v21, %v2204_v23 }
 0x158   : > { %729 = vst [vmem:[%s3071_s17 + $0x18] sm:$0xff] %v713_v34  ;;  %v642_v41 = vmax.f32 %v629_v14, 0.0  ;;  %1141 = vmatmul.bf16.gmra.mxu2 %v3098_v33  ;;  %1199 = vmatmul.bf16.gmra.mxu0 %v3098_v33  ;;  %v2520_v34 = vld [vmem:[#allocation5 + $0x10c] sm:$0xf]  ;;  %v2332_v14 = vld [vmem:[#allocation5 + $0x118] sm:$0xf0] }
 0x159   : > { %1335 = vmatpush.bf16.msra.mxu1 %v2383_v51  ;;  %1279 = vmatpush.bf16.msrb.mxu3 %v2347_v18  ;;  %v2335_v38 = vor.u32 %v2520_v34, %v2332_v14  ;;  %v2568_v51 = vunpack.c.h.b16 %v3093_v8 }
 0x15a   : > { %v650_v49 = vpack.c.bf16 %v642_v41, %v642_v41  ;;  %1251 = vmatpush.bf16.msrb.mxu2 %v2203_v27  ;;  %1309 = vmatpush.bf16.msra.mxu0 %v2207_v32 }
 0x15c   : > { %v674_v60 = vunpack.c.l.b16 %v650_v49 }
 0x15d   : > { %v630_v1 = vpop.f32.mrf.mxu1  ;;  %1336 = vmatpush.bf16.msra.mxu1 %v2367_v2  ;;  %1280 = vmatpush.bf16.msrb.mxu3 %v2331_v35 }
 0x15e   : > { %v714_v9 = vpack.c.b16 %v2563_v50, %v674_v60  ;;  %v631_v10 = vadd.f32 %v3058_v12, %v630_v1 }
 0x160   : > { %730 = vst [vmem:[%s3071_s17 + $0x20] sm:$0xff] %v714_v9  ;;  %v643_v22 = vmax.f32 %v631_v10, 0.0  ;;  %1281 = vmatmul.bf16.vlgmr.msrb.gmra.mxu3 %v3048_v4 }
 0x161   : > { %1337 = vmatpush.bf16.msra.mxu1 %v2351_v26 }
 0x162   : > { %v651_v30 = vpack.c.bf16 %v643_v22, %v643_v22 }
 0x164   : > { %v675_v36 = vunpack.c.l.b16 %v651_v30 }
 0x165   : > { %v633_v37 = vpop.f32.mrf.mxu1  ;;  %1338 = vmatpush.bf16.msra.mxu1 %v2335_v38 }
 0x166   : > { %v680_v39 = vpack.c.b16 %v675_v36, %v674_v60  ;;  %v715_v40 = vpack.c.b16 %v2564_v31, %v675_v36  ;;  %v634_v41 = vadd.f32 %v3058_v12, %v633_v37 }
 0x168   : > { %731 = vst [vmem:[%s3071_s17 + $0x28] sm:$0xff] %v715_v40  ;;  %v644_v42 = vmax.f32 %v634_v41, 0.0  ;;  %1146 = vmatmul.bf16.gmra.mxu2 %v680_v39  ;;  %1204 = vmatmul.bf16.gmra.mxu0 %v680_v39 }
 0x169   : > { %1339 = vmatmul.bf16.vlgmr.msra.gmra.mxu1 %v3048_v4 }
 0x16a   : > { %v652_v43 = vpack.c.bf16 %v644_v42, %v644_v42 }
 0x16c   : > { %v676_v45 = vunpack.c.l.b16 %v652_v43 }
 0x16d   : > { %v635_v46 = vpop.f32.mrf.mxu1 }
 0x16e   : > { %v716_v47 = vpack.c.b16 %v2567_v44, %v676_v45  ;;  %v636_v48 = vadd.f32 %v3058_v12, %v635_v46 }
 0x170   : > { %732 = vst [vmem:[%s3071_s17 + $0x30] sm:$0xff] %v716_v47  ;;  %v645_v49 = vmax.f32 %v636_v48, 0.0  ;;  %1286 = vmatmul.bf16.gmra.mxu3 %v3053_v11 }
 0x172   : > { %v653_v50 = vpack.c.bf16 %v645_v49, %v645_v49 }
 0x174   : > { %v677_v52 = vunpack.c.l.b16 %v653_v50 }
 0x175   : > { %v1224_v4 = vpop.f32.mrf.mxu1 }
 0x176   : > { %v681_v53 = vpack.c.b16 %v677_v52, %v676_v45  ;;  %v717_v54 = vpack.c.b16 %v2568_v51, %v677_v52 }
 0x178   : > { %733 = vst [vmem:[%s3071_s17 + $0x38] sm:$0xff] %v717_v54  ;;  %1151 = vmatmul.bf16.gmra.mxu2 %v681_v53  ;;  %1209 = vmatmul.bf16.gmra.mxu0 %v681_v53 }
 0x179   : > { %1344 = vmatmul.bf16.gmra.mxu1 %v3053_v11  ;;  %v1166_v11 = vpop.f32.mrf.mxu3 }
 0x17d   : > { %v1226_v12 = vpop.f32.mrf.mxu1 }
 0x180   : > { %1291 = vmatmul.bf16.gmra.mxu3 %v3075_v24 }
 0x188   : > { %1252 = vmatmul.bf16.vlgmr.msrb.gmra.mxu2 %v3080_v29  ;;  %1310 = vmatmul.bf16.vlgmr.msra.gmra.mxu0 %v3080_v29  ;;  %v1168_v29 = vpop.f32.mrf.mxu3 }
 0x189   : > { %1349 = vmatmul.bf16.gmra.mxu1 %v3075_v24  ;;  %v3130_v24 = vld [vmem:[%s3338_s7] sm:$0xf] }
 0x18a   : > { %v3133_v55 = vperm.slane %v3130_v24, 1  ;;  %v3137_v59 = vperm.slane %v3130_v24, 0 }
 0x190   : > { %1296 = vmatmul.bf16.gmra.mxu3 %v3093_v8  ;;  %v1171_v56 = vpop.f32.mrf.mxu3 }
 0x198   : > { %1257 = vmatmul.bf16.gmra.mxu2 %v3098_v33  ;;  %1315 = vmatmul.bf16.gmra.mxu0 %v3098_v33  ;;  %v1229_v33 = vpop.f32.mrf.mxu1  ;;  %v1173_v1 = vpop.f32.mrf.mxu3 }
 0x199   : > { %1354 = vmatmul.bf16.gmra.mxu1 %v3093_v8 }
 0x1a0   : > { %v1231_v63 = vpop.f32.mrf.mxu1  ;;  %v1176_v18 = vpop.f32.mrf.mxu3 }
 0x1a8   : > { %1262 = vmatmul.bf16.gmra.mxu2 %v680_v39  ;;  %1320 = vmatmul.bf16.gmra.mxu0 %v680_v39  ;;  %v1234_v17 = vpop.f32.mrf.mxu1  ;;  %v1178_v32 = vpop.f32.mrf.mxu3 }
 0x1b0   : > { %v1236_v31 = vpop.f32.mrf.mxu1  ;;  %v1181_v44 = vpop.f32.mrf.mxu3 }
 0x1b8   : > { %1267 = vmatmul.bf16.gmra.mxu2 %v681_v53  ;;  %1325 = vmatmul.bf16.gmra.mxu0 %v681_v53  ;;  %v1239_v42 = vpop.f32.mrf.mxu1 }
 0x1c0   : > { %v1241_v54 = vpop.f32.mrf.mxu1 }
 0x1c5   : > { %v1195_v57 = vpop.f32.mrf.mxu0 }
 0x1c6   : > { %v1196_v8 = vadd.f32 %v1195_v57, %v3133_v55 }
 0x1c8   : > { %v1225_v58 = vadd.f32 %v1224_v4, %v1196_v8 }
 0x1ca   : > { %v1368_v60 = vpack.c.bf16 %v1225_v58, %v1225_v58 }
 0x1cb   : > { %v1137_v61 = vpop.f32.mrf.mxu2 }
 0x1cc   : > { %v1138_v62 = vadd.f32 %v1137_v61, %v3137_v59  ;;  %1391 = vmatpush.bf16.xpose.msra.mxu2 %v1368_v60 }
 0x1cd   : > { %v1197_v0 = vpop.f32.mrf.mxu0 }
 0x1ce   : > { %v1167_v2 = vadd.f32 %v1166_v11, %v1138_v62  ;;  %v1198_v3 = vadd.f32 %v1197_v0, %v3133_v55  ;;  %v1183_v11 = vpop.f32.mrf.mxu3 }
 0x1d0   : > { %v1360_v5 = vpack.c.bf16 %v1167_v2, %v1167_v2  ;;  %v1227_v6 = vadd.f32 %v1226_v12, %v1198_v3 }
 0x1d2   : > { %v1369_v7 = vpack.c.bf16 %v1227_v6, %v1227_v6 }
 0x1d3   : > { %v1139_v9 = vpop.f32.mrf.mxu2  ;;  %1392 = vmatmul.bf16.vlgmr.msra.gmra.mxu2 %v1360_v5 }
 0x1d4   : > { %v1140_v10 = vadd.f32 %v1139_v9, %v3137_v59  ;;  %1404 = vmatpush.bf16.xpose.msra.mxu3 %v1369_v7 }
 0x1d5   : > { %v1200_v13 = vpop.f32.mrf.mxu0 }
 0x1d6   : > { %v1169_v15 = vadd.f32 %v1168_v29, %v1140_v10  ;;  %v1201_v16 = vadd.f32 %v1200_v13, %v3133_v55  ;;  %v3155_v10 = vperm.slane %v3130_v24, 3 }
 0x1d8   : > { %v1361_v19 = vpack.c.bf16 %v1169_v15, %v1169_v15  ;;  %v1230_v20 = vadd.f32 %v1229_v33, %v1201_v16 }
 0x1da   : > { %v1370_v21 = vpack.c.bf16 %v1230_v20, %v1230_v20 }
 0x1db   : > { %v1142_v22 = vpop.f32.mrf.mxu2  ;;  %1405 = vmatmul.bf16.vlgmr.msra.gmra.mxu3 %v1361_v19 }
 0x1dc   : > { %v1143_v23 = vadd.f32 %v1142_v22, %v3137_v59  ;;  %1417 = vmatpush.bf16.xpose.msrb.mxu2 %v1370_v21 }
 0x1dd   : > { %v1202_v25 = vpop.f32.mrf.mxu0 }
 0x1de   : > { %v1172_v26 = vadd.f32 %v1171_v56, %v1143_v23  ;;  %v1203_v27 = vadd.f32 %v1202_v25, %v3133_v55 }
 0x1e0   : > { %v1362_v28 = vpack.c.bf16 %v1172_v26, %v1172_v26  ;;  %v1232_v30 = vadd.f32 %v1231_v63, %v1203_v27 }
 0x1e2   : > { %v1371_v34 = vpack.c.bf16 %v1232_v30, %v1232_v30 }
 0x1e3   : > { %v1144_v14 = vpop.f32.mrf.mxu2  ;;  %1418 = vmatmul.bf16.vlgmr.msrb.gmra.mxu2 %v1362_v28  ;;  %v1282_v62 = vpop.f32.mrf.mxu3 }
 0x1e4   : > { %v1145_v35 = vadd.f32 %v1144_v14, %v3137_v59  ;;  %1430 = vmatpush.bf16.xpose.msrb.mxu3 %v1371_v34 }
 0x1e5   : > { %v1205_v36 = vpop.f32.mrf.mxu0 }
 0x1e6   : > { %v1174_v37 = vadd.f32 %v1173_v1, %v1145_v35  ;;  %v1206_v38 = vadd.f32 %v1205_v36, %v3133_v55  ;;  %v1340_v60 = vpop.f32.mrf.mxu1 }
 0x1e8   : > { %v1363_v39 = vpack.c.bf16 %v1174_v37, %v1174_v37  ;;  %v1235_v40 = vadd.f32 %v1234_v17, %v1206_v38  ;;  %v3158_v17 = vperm.slane %v3130_v24, 2 }
 0x1ea   : > { %v1372_v41 = vpack.c.bf16 %v1235_v40, %v1235_v40 }
 0x1eb   : > { %v1147_v43 = vpop.f32.mrf.mxu2  ;;  %1431 = vmatmul.bf16.vlgmr.msrb.gmra.mxu3 %v1363_v39  ;;  %v1284_v15 = vpop.f32.mrf.mxu3 }
 0x1ec   : > { %v1148_v45 = vadd.f32 %v1147_v43, %v3137_v59  ;;  %1443 = vmatpush.bf16.xpose.msra.mxu2 %v1372_v41 }
 0x1ed   : > { %v1207_v46 = vpop.f32.mrf.mxu0 }
 0x1ee   : > { %v1177_v47 = vadd.f32 %v1176_v18, %v1148_v45  ;;  %v1208_v48 = vadd.f32 %v1207_v46, %v3133_v55  ;;  %v1342_v13 = vpop.f32.mrf.mxu1 }
 0x1f0   : > { %v1364_v49 = vpack.c.bf16 %v1177_v47, %v1177_v47  ;;  %v1237_v50 = vadd.f32 %v1236_v31, %v1208_v48 }
 0x1f2   : > { %v1373_v51 = vpack.c.bf16 %v1237_v50, %v1237_v50 }
 0x1f3   : > { %v1149_v52 = vpop.f32.mrf.mxu2  ;;  %1444 = vmatmul.bf16.vlgmr.msra.gmra.mxu2 %v1364_v49  ;;  %v1287_v25 = vpop.f32.mrf.mxu3 }
 0x1f4   : > { %v1150_v53 = vadd.f32 %v1149_v52, %v3137_v59  ;;  %1456 = vmatpush.bf16.xpose.msra.mxu3 %v1373_v51 }
 0x1f5   : > { %v1210_v4 = vpop.f32.mrf.mxu0 }
 0x1f6   : > { %v1179_v12 = vadd.f32 %v1178_v32, %v1150_v53  ;;  %v1211_v29 = vadd.f32 %v1210_v4, %v3133_v55  ;;  %v1345_v23 = vpop.f32.mrf.mxu1 }
 0x1f8   : > { %v1365_v33 = vpack.c.bf16 %v1179_v12, %v1179_v12  ;;  %v1240_v56 = vadd.f32 %v1239_v42, %v1211_v29 }
 0x1fa   : > { %v1374_v57 = vpack.c.bf16 %v1240_v56, %v1240_v56 }
 0x1fb   : > { %v1152_v8 = vpop.f32.mrf.mxu2  ;;  %1457 = vmatmul.bf16.vlgmr.msra.gmra.mxu3 %v1365_v33 }
 0x1fc   : > { %v1153_v58 = vadd.f32 %v1152_v8, %v3137_v59  ;;  %1469 = vmatpush.bf16.xpose.msrb.mxu0 %v1374_v57 }
 0x1fd   : > { %v1212_v61 = vpop.f32.mrf.mxu0 }
 0x1fe   : > { %v1182_v63 = vadd.f32 %v1181_v44, %v1153_v58  ;;  %v1213_v0 = vadd.f32 %v1212_v61, %v3133_v55  ;;  %v1347_v42 = vpop.f32.mrf.mxu1  ;;  %v1289_v44 = vpop.f32.mrf.mxu3 }
 0x200   : > { %v1366_v1 = vpack.c.bf16 %v1182_v63, %v1182_v63  ;;  %v1242_v2 = vadd.f32 %v1241_v54, %v1213_v0 }
 0x202   : > { %v1375_v3 = vpack.c.bf16 %v1242_v2, %v1242_v2 }
 0x203   : > { %v1154_v5 = vpop.f32.mrf.mxu2  ;;  %1470 = vmatmul.bf16.vlgmr.msrb.gmra.mxu0 %v1366_v1 }
 0x204   : > { %v1155_v6 = vadd.f32 %v1154_v5, %v3137_v59  ;;  %1482 = vmatpush.bf16.xpose.msrb.mxu2 %v1375_v3 }
 0x205   : > { %v1311_v7 = vpop.f32.mrf.mxu0 }
 0x206   : > { %v1184_v9 = vadd.f32 %v1183_v11, %v1155_v6  ;;  %v1312_v55 = vadd.f32 %v1311_v7, %v3155_v10  ;;  %v1350_v57 = vpop.f32.mrf.mxu1 }
 0x208   : > { %v1367_v16 = vpack.c.bf16 %v1184_v9, %v1184_v9  ;;  %v1341_v59 = vadd.f32 %v1340_v60, %v1312_v55  ;;  %v1292_v60 = vpop.f32.mrf.mxu3 }
 0x20b   : > { %v1253_v18 = vpop.f32.mrf.mxu2  ;;  %1483 = vmatmul.bf16.vlgmr.msrb.gmra.mxu2 %v1367_v16 }
 0x20c   : > { %v1254_v19 = vadd.f32 %v1253_v18, %v3158_v17 }
 0x20d   : > { %v1313_v20 = vpop.f32.mrf.mxu0 }
 0x20e   : > { %v1283_v21 = vadd.f32 %v1282_v62, %v1254_v19  ;;  %v1314_v28 = vadd.f32 %v1313_v20, %v3155_v10  ;;  %v1352_v18 = vpop.f32.mrf.mxu1 }
 0x210   : > { %v1376_v22 = vpack.c.bf16 %v1341_v59, %v1283_v21  ;;  %v1343_v14 = vadd.f32 %v1342_v13, %v1314_v28  ;;  %v1294_v59 = vpop.f32.mrf.mxu3 }
 0x212   : > { %v1586_v26 = vunpack.c.l.b16 %v1376_v22  ;;  %v1587_v27 = vunpack.c.h.b16 %v1376_v22 }
 0x213   : > { %v1255_v30 = vpop.f32.mrf.mxu2 }
 0x214   : > { %v1588_v24 = vpack.c.b16 %v1586_v26, %v1586_v26  ;;  %v1589_v31 = vpack.c.b16 %v1587_v27, %v1587_v27  ;;  %v1256_v32 = vadd.f32 %v1255_v30, %v3158_v17 }
 0x215   : > { %v1316_v34 = vpop.f32.mrf.mxu0 }
 0x216   : > { %v1285_v35 = vadd.f32 %v1284_v15, %v1256_v32  ;;  %v1595_v36 = vsel %vm1593_vm1, %v1588_v24, 0  ;;  %v1598_v37 = vsel %vm1593_vm1, %v1589_v31, 0  ;;  %v1317_v41 = vadd.f32 %v1316_v34, %v3155_v10 }
 0x217   : > { %1607 = vmatpush.bf16.msrb.mxu3 %v1595_v36  ;;  %1620 = vmatpush.bf16.msra.mxu0 %v1598_v37  ;;  %v1355_v36 = vpop.f32.mrf.mxu1 }
 0x218   : > { %v1377_v38 = vpack.c.bf16 %v1343_v14, %v1285_v35  ;;  %v1346_v49 = vadd.f32 %v1345_v23, %v1317_v41  ;;  %v1297_v37 = vpop.f32.mrf.mxu3 }
 0x21a   : > { %v1627_v39 = vunpack.c.l.b16 %v1377_v38  ;;  %v1628_v40 = vunpack.c.h.b16 %v1377_v38 }
 0x21b   : > { %v1258_v43 = vpop.f32.mrf.mxu2 }
 0x21c   : > { %v1629_v45 = vpack.c.b16 %v1627_v39, %v1627_v39  ;;  %v1630_v46 = vpack.c.b16 %v1628_v40, %v1628_v40  ;;  %v1259_v47 = vadd.f32 %v1258_v43, %v3158_v17 }
 0x21d   : > { %v1318_v48 = vpop.f32.mrf.mxu0 }
 0x21e   : > { %v1288_v50 = vadd.f32 %v1287_v25, %v1259_v47  ;;  %v1635_v51 = vsel %vm1593_vm1, %v1629_v45, 0  ;;  %v1638_v52 = vsel %vm1593_vm1, %v1630_v46, 0  ;;  %v1319_v54 = vadd.f32 %v1318_v48, %v3155_v10 }
 0x21f   : > { %1647 = vmatpush.bf16.msrb.mxu1 %v1635_v51  ;;  %1660 = vmatpush.bf16.msra.mxu2 %v1638_v52 }
 0x220   : > { %v1378_v53 = vpack.c.bf16 %v1346_v49, %v1288_v50  ;;  %v1348_v8 = vadd.f32 %v1347_v42, %v1319_v54 }
 0x222   : > { %v1667_v4 = vunpack.c.l.b16 %v1378_v53  ;;  %v1668_v11 = vunpack.c.h.b16 %v1378_v53  ;;  %v1357_v53 = vpop.f32.mrf.mxu1 }
 0x223   : > { %v1260_v12 = vpop.f32.mrf.mxu2 }
 0x224   : > { %v1669_v29 = vpack.c.b16 %v1667_v4, %v1667_v4  ;;  %v1670_v33 = vpack.c.b16 %v1668_v11, %v1668_v11  ;;  %v1261_v56 = vadd.f32 %v1260_v12, %v3158_v17  ;;  %v1299_v4 = vpop.f32.mrf.mxu3 }
 0x225   : > { %v1321_v58 = vpop.f32.mrf.mxu0 }
 0x226   : > { %v1290_v61 = vadd.f32 %v1289_v44, %v1261_v56  ;;  %v1322_v62 = vadd.f32 %v1321_v58, %v3155_v10  ;;  %v1675_v63 = vsel %vm1593_vm1, %v1669_v29, 0  ;;  %v1678_v0 = vsel %vm1593_vm1, %v1670_v33, 0 }
 0x227   : > { %1687 = vmatpush.bf16.msra.mxu3 %v1675_v63  ;;  %1700 = vmatpush.bf16.msrb.mxu0 %v1678_v0 }
 0x228   : > { %v1379_v1 = vpack.c.bf16 %v1348_v8, %v1290_v61  ;;  %v1351_v13 = vadd.f32 %v1350_v57, %v1322_v62 }
 0x22a   : > { %v1707_v2 = vunpack.c.l.b16 %v1379_v1  ;;  %v1708_v3 = vunpack.c.h.b16 %v1379_v1 }
 0x22b   : > { %v1263_v5 = vpop.f32.mrf.mxu2 }
 0x22c   : > { %v1709_v6 = vpack.c.b16 %v1707_v2, %v1707_v2  ;;  %v1710_v7 = vpack.c.b16 %v1708_v3, %v1708_v3  ;;  %v1264_v9 = vadd.f32 %v1263_v5, %v3158_v17 }
 0x22d   : > { %v1323_v15 = vpop.f32.mrf.mxu0 }
 0x22e   : > { %v1293_v16 = vadd.f32 %v1292_v60, %v1264_v9  ;;  %v1324_v55 = vadd.f32 %v1323_v15, %v3155_v10  ;;  %v1715_v19 = vsel %vm1593_vm1, %v1709_v6, 0  ;;  %v1718_v20 = vsel %vm1593_vm1, %v1710_v7, 0 }
 0x22f   : > { %1727 = vmatpush.bf16.msra.mxu1 %v1715_v19  ;;  %1740 = vmatpush.bf16.msrb.mxu2 %v1718_v20 }
 0x230   : > { %v1380_v21 = vpack.c.bf16 %v1351_v13, %v1293_v16  ;;  %v1353_v24 = vadd.f32 %v1352_v18, %v1324_v55 }
 0x232   : > { %v1747_v22 = vunpack.c.l.b16 %v1380_v21  ;;  %v1748_v23 = vunpack.c.h.b16 %v1380_v21 }
 0x233   : > { %v1265_v25 = vpop.f32.mrf.mxu2 }
 0x234   : > { %v1749_v26 = vpack.c.b16 %v1747_v22, %v1747_v22  ;;  %v1750_v27 = vpack.c.b16 %v1748_v23, %v1748_v23  ;;  %v1266_v28 = vadd.f32 %v1265_v25, %v3158_v17 }
 0x235   : > { %v1326_v30 = vpop.f32.mrf.mxu0 }
 0x236   : > { %v1295_v31 = vadd.f32 %v1294_v59, %v1266_v28  ;;  %v1327_v32 = vadd.f32 %v1326_v30, %v3155_v10  ;;  %v3182_v34 = vsel %vm1593_vm1, %v1749_v26, 0  ;;  %v3185_v14 = vsel %vm1593_vm1, %v1750_v27, 0 }
 0x238   : > { %v1381_v35 = vpack.c.bf16 %v1353_v24, %v1295_v31  ;;  %v1356_v44 = vadd.f32 %v1355_v36, %v1327_v32 }
 0x23a   : > { %v1787_v38 = vunpack.c.l.b16 %v1381_v35  ;;  %v1788_v39 = vunpack.c.h.b16 %v1381_v35 }
 0x23b   : > { %v1268_v40 = vpop.f32.mrf.mxu2 }
 0x23c   : > { %v1789_v41 = vpack.c.b16 %v1787_v38, %v1787_v38  ;;  %v1790_v42 = vpack.c.b16 %v1788_v39, %v1788_v39  ;;  %v1269_v43 = vadd.f32 %v1268_v40, %v3158_v17 }
 0x23d   : > { %v1328_v48 = vpop.f32.mrf.mxu0 }
 0x23e   : > { %v1298_v45 = vadd.f32 %v1297_v37, %v1269_v43  ;;  %v3189_v46 = vsel %vm1593_vm1, %v1789_v41, 0  ;;  %v3192_v47 = vsel %vm1593_vm1, %v1790_v42, 0  ;;  %v1329_v52 = vadd.f32 %v1328_v48, %v3155_v10 }
 0x240   : > { %v1382_v49 = vpack.c.bf16 %v1356_v44, %v1298_v45  ;;  %v1358_v33 = vadd.f32 %v1357_v53, %v1329_v52 }
 0x242   : > { %v1827_v50 = vunpack.c.l.b16 %v1382_v49  ;;  %v1828_v51 = vunpack.c.h.b16 %v1382_v49 }
 0x243   : > { %v1270_v54 = vpop.f32.mrf.mxu2 }
 0x244   : > { %v1829_v11 = vpack.c.b16 %v1827_v50, %v1827_v50  ;;  %v1830_v12 = vpack.c.b16 %v1828_v51, %v1828_v51  ;;  %v1271_v29 = vadd.f32 %v1270_v54, %v3158_v17 }
 0x246   : > { %v1300_v56 = vadd.f32 %v1299_v4, %v1271_v29  ;;  %v3197_v57 = vsel %vm1593_vm1, %v1829_v11, 0  ;;  %v3200_v8 = vsel %vm1593_vm1, %v1830_v12, 0 }
 0x248   : > { %v1383_v58 = vpack.c.bf16 %v1358_v33, %v1300_v56 }
 0x24a   : > { %v1867_v60 = vunpack.c.l.b16 %v1383_v58  ;;  %v1868_v61 = vunpack.c.h.b16 %v1383_v58 }
 0x24c   : > { %v1869_v62 = vpack.c.b16 %v1867_v60, %v1867_v60  ;;  %v1870_v10 = vpack.c.b16 %v1868_v61, %v1868_v61 }
 0x24e   : > { %v3203_v63 = vsel %vm1593_vm1, %v1869_v62, 0  ;;  %v3206_v0 = vsel %vm1593_vm1, %v1870_v10, 0 }
 0x256   : > { %v1393_v17 = vpop.f32.mrf.mxu2 }
 0x257   : > { %v1489_v1 = vsel %vm1488_vm2, %v1393_v17, -inf }
 0x258   : > { %1490 = vmax.xlane.f32.xlu0 %v1489_v1 }
 0x25e   : > { %v1395_v2 = vpop.f32.mrf.mxu2  ;;  %v1406_v3 = vpop.f32.mrf.mxu3 }
 0x25f   : > { %v1492_v5 = vsel %vm1488_vm2, %v1406_v3, -inf }
 0x260   : > { %1493 = vmax.xlane.f32.xlu0 %v1492_v5 }
 0x266   : > { %v1408_v6 = vpop.f32.mrf.mxu3  ;;  %v1419_v7 = vpop.f32.mrf.mxu2 }
 0x267   : > { %v1495_v9 = vsel %vm1488_vm2, %v1419_v7, -inf }
 0x268   : > { %1496 = vmax.xlane.f32.xlu1 %v1495_v9 }
 0x26e   : > { %v1421_v13 = vpop.f32.mrf.mxu2  ;;  %v1432_v15 = vpop.f32.mrf.mxu3 }
 0x26f   : > { %v1498_v16 = vsel %vm1488_vm2, %v1432_v15, -inf }
 0x270   : > { %1499 = vmax.xlane.f32.xlu1 %v1498_v16 }
 0x276   : > { %v1434_v55 = vpop.f32.mrf.mxu3  ;;  %v1445_v18 = vpop.f32.mrf.mxu2 }
 0x277   : > { %v1501_v19 = vsel %vm1488_vm2, %v1445_v18, -inf }
 0x278   : > { %1502 = vmax.xlane.f32.xlu2 %v1501_v19 }
 0x27e   : > { %v1447_v20 = vpop.f32.mrf.mxu2  ;;  %v1458_v59 = vpop.f32.mrf.mxu3 }
 0x27f   : > { %v1504_v21 = vsel %vm1488_vm2, %v1458_v59, -inf }
 0x280   : > { %v1471_v22 = vpop.f32.mrf.mxu0  ;;  %1505 = vmax.xlane.f32.xlu2 %v1504_v21 }
 0x281   : > { %v1507_v23 = vsel %vm1488_vm2, %v1471_v22, -inf }
 0x282   : > { %1508 = vmax.xlane.f32.xlu0 %v1507_v23 }
 0x286   : > { %v1460_v25 = vpop.f32.mrf.mxu3 }
 0x288   : > { %v1473_v26 = vpop.f32.mrf.mxu0 }
 0x28e   : > { %v1484_v27 = vpop.f32.mrf.mxu2 }
 0x28f   : > { %v1510_v28 = vsel %vm1488_vm2, %v1484_v27, -inf }
 0x290   : > { %1511 = vmax.xlane.f32.xlu1 %v1510_v28 }
 0x296   : > { %v1486_v30 = vpop.f32.mrf.mxu2 }
 0x2cb   : > { %v1491_v24 = vpop.xlane.xlu0 %1490 }
 0x2cc   : > { %v1513_v31 = vsub.f32 %v1393_v17, %v1491_v24 }
 0x2ce   : > { %v1521_v32 = vmul.f32 1.442695, %v1513_v31 }
 0x2d0   : > { %2661 = vpow2.f32 %v1521_v32 }
 0x2d3   : > { %v1494_v35 = vpop.xlane.xlu0 %1493 }
 0x2d4   : > { %v1514_v36 = vsub.f32 %v1406_v3, %v1494_v35 }
 0x2d6   : > { %v2662_v37 = vpop.eup %2661  ;;  %v1523_v38 = vmul.f32 1.442695, %v1514_v36 }
 0x2d7   : > { %v1537_v39 = vsel %vm1488_vm2, %v2662_v37, 0.0 }
 0x2d8   : > { %2663 = vpow2.f32 %v1523_v38  ;;  %1538 = vadd.xlane.f32.xlu2 %v1537_v39 }
 0x2db   : > { %v1497_v40 = vpop.xlane.xlu1 %1496 }
 0x2dc   : > { %v1515_v41 = vsub.f32 %v1419_v7, %v1497_v40 }
 0x2de   : > { %v2664_v42 = vpop.eup %2663  ;;  %v1525_v43 = vmul.f32 1.442695, %v1515_v41 }
 0x2df   : > { %v1540_v44 = vsel %vm1488_vm2, %v2664_v42, 0.0 }
 0x2e0   : > { %2665 = vpow2.f32 %v1525_v43  ;;  %1541 = vadd.xlane.f32.xlu0 %v1540_v44 }
 0x2e3   : > { %v1500_v45 = vpop.xlane.xlu1 %1499 }
 0x2e4   : > { %v1516_v48 = vsub.f32 %v1432_v15, %v1500_v45 }
 0x2e6   : > { %v2666_v49 = vpop.eup %2665  ;;  %v1527_v50 = vmul.f32 1.442695, %v1516_v48 }
 0x2e7   : > { %v1543_v51 = vsel %vm1488_vm2, %v2666_v49, 0.0 }
 0x2e8   : > { %2667 = vpow2.f32 %v1527_v50  ;;  %1544 = vadd.xlane.f32.xlu1 %v1543_v51 }
 0x2eb   : > { %v1503_v52 = vpop.xlane.xlu2 %1502 }
 0x2ec   : > { %v1517_v53 = vsub.f32 %v1445_v18, %v1503_v52 }
 0x2ee   : > { %v2668_v54 = vpop.eup %2667  ;;  %v1529_v4 = vmul.f32 1.442695, %v1517_v53 }
 0x2ef   : > { %v1546_v11 = vsel %vm1488_vm2, %v2668_v54, 0.0 }
 0x2f0   : > { %2669 = vpow2.f32 %v1529_v4  ;;  %1547 = vadd.xlane.f32.xlu2 %v1546_v11 }
 0x2f3   : > { %v1506_v12 = vpop.xlane.xlu2 %1505 }
 0x2f4   : > { %v1518_v29 = vsub.f32 %v1458_v59, %v1506_v12 }
 0x2f5   : > { %v1509_v33 = vpop.xlane.xlu0 %1508 }
 0x2f6   : > { %v2670_v56 = vpop.eup %2669  ;;  %v1531_v58 = vmul.f32 1.442695, %v1518_v29  ;;  %v1519_v60 = vsub.f32 %v1471_v22, %v1509_v33 }
 0x2f7   : > { %v1549_v61 = vsel %vm1488_vm2, %v2670_v56, 0.0 }
 0x2f8   : > { %2671 = vpow2.f32 %v1531_v58  ;;  %v1533_v62 = vmul.f32 1.442695, %v1519_v60  ;;  %1550 = vadd.xlane.f32.xlu0 %v1549_v61 }
 0x2fa   : > { %2673 = vpow2.f32 %v1533_v62 }
 0x2fe   : > { %v2672_v10 = vpop.eup %2671 }
 0x2ff   : > { %v1552_v17 = vsel %vm1488_vm2, %v2672_v10, 0.0 }
 0x300   : > { %v3222_v1 = vpop.eup %2673  ;;  %1553 = vadd.xlane.f32.xlu1 %v1552_v17 }
 0x301   : > { %v1555_v2 = vsel %vm1488_vm2, %v3222_v1, 0.0 }
 0x302   : > { %1556 = vadd.xlane.f32.xlu2 %v1555_v2 }
 0x303   : > { %v1512_v3 = vpop.xlane.xlu1 %1511 }
 0x304   : > { %v1520_v5 = vsub.f32 %v1484_v27, %v1512_v3 }
 0x306   : > { %v1535_v6 = vmul.f32 1.442695, %v1520_v5 }
 0x308   : > { %2675 = vpow2.f32 %v1535_v6 }
 0x30e   : > { %v3226_v7 = vpop.eup %2675 }
 0x30f   : > { %v1558_v9 = vsel %vm1488_vm2, %v3226_v7, 0.0 }
 0x310   : > { %1559 = vadd.xlane.f32.xlu0 %v1558_v9 }
 0x34b   : > { %v1539_v13 = vpop.xlane.xlu2 %1538 }
 0x34c   : > { %2677 = vrcp.f32 %v1539_v13 }
 0x352   : > { %v2678_v15 = vpop.eup %2677 }
 0x353   : > { %v1569_v16 = vmul.f32 %v2678_v15, %v2662_v37  ;;  %v1542_v55 = vpop.xlane.xlu0 %1541 }
 0x354   : > { %2679 = vrcp.f32 %v1542_v55 }
 0x355   : > { %v1577_v18 = vpack.c.bf16 %v1569_v16, %v1569_v16 }
 0x357   : > { %2448 = vmatmul.msk.bf16.vlgmr.msrb.gmra.mxu3 %vm1488_vm2, %v1577_v18  ;;  %2449 = vmatmul.msk.bf16.vlgmr.msra.gmra.mxu0 %vm1488_vm2, %v1577_v18 }
 0x358   : > { %1767 = vmatpush.bf16.msrb.mxu3 %v3182_v34  ;;  %1780 = vmatpush.bf16.msra.mxu0 %v3185_v14 }
 0x35a   : > { %v2680_v19 = vpop.eup %2679 }
 0x35b   : > { %v1570_v20 = vmul.f32 %v2680_v19, %v2664_v42  ;;  %v1545_v59 = vpop.xlane.xlu1 %1544 }
 0x35c   : > { %2681 = vrcp.f32 %v1545_v59 }
 0x35d   : > { %v1578_v21 = vpack.c.bf16 %v1570_v20, %v1570_v20 }
 0x35f   : > { %2450 = vmatmul.msk.bf16.vlgmr.msrb.gmra.mxu1 %vm1488_vm2, %v1578_v21  ;;  %2451 = vmatmul.msk.bf16.vlgmr.msra.gmra.mxu2 %vm1488_vm2, %v1578_v21 }
 0x360   : > { %1807 = vmatpush.bf16.msrb.mxu1 %v3189_v46  ;;  %1820 = vmatpush.bf16.msra.mxu2 %v3192_v47 }
 0x362   : > { %v2682_v22 = vpop.eup %2681 }
 0x363   : > { %v1571_v23 = vmul.f32 %v2682_v22, %v2666_v49  ;;  %v1548_v25 = vpop.xlane.xlu2 %1547 }
 0x364   : > { %2683 = vrcp.f32 %v1548_v25 }
 0x365   : > { %v1579_v34 = vpack.c.bf16 %v1571_v23, %v1571_v23 }
 0x367   : > { %2452 = vmatmul.msk.bf16.vlgmr.msra.gmra.mxu3 %vm1488_vm2, %v1579_v34  ;;  %2453 = vmatmul.msk.bf16.vlgmr.msrb.gmra.mxu0 %vm1488_vm2, %v1579_v34 }
 0x368   : > { %1847 = vmatpush.bf16.msra.mxu3 %v3197_v57  ;;  %1860 = vmatpush.bf16.msrb.mxu0 %v3200_v8 }
 0x36a   : > { %v2684_v14 = vpop.eup %2683 }
 0x36b   : > { %v1572_v26 = vmul.f32 %v2684_v14, %v2668_v54  ;;  %v1551_v27 = vpop.xlane.xlu0 %1550 }
 0x36c   : > { %2685 = vrcp.f32 %v1551_v27 }
 0x36d   : > { %v1580_v46 = vpack.c.bf16 %v1572_v26, %v1572_v26 }
 0x36f   : > { %2454 = vmatmul.msk.bf16.vlgmr.msra.gmra.mxu1 %vm1488_vm2, %v1580_v46  ;;  %2455 = vmatmul.msk.bf16.vlgmr.msrb.gmra.mxu2 %vm1488_vm2, %v1580_v46 }
 0x370   : > { %1887 = vmatpush.bf16.msra.mxu1 %v3203_v63  ;;  %1900 = vmatpush.bf16.msrb.mxu2 %v3206_v0 }
 0x372   : > { %v2686_v47 = vpop.eup %2685 }
 0x373   : > { %v1573_v28 = vmul.f32 %v2686_v47, %v2670_v56  ;;  %v1554_v30 = vpop.xlane.xlu1 %1553 }
 0x374   : > { %2687 = vrcp.f32 %v1554_v30 }
 0x375   : > { %v1581_v57 = vpack.c.bf16 %v1573_v28, %v1573_v28  ;;  %v1557_v24 = vpop.xlane.xlu2 %1556 }
 0x376   : > { %2689 = vrcp.f32 %v1557_v24 }
 0x377   : > { %2456 = vmatmul.msk.bf16.vlgmr.msrb.gmra.mxu3 %vm1488_vm2, %v1581_v57  ;;  %2457 = vmatmul.msk.bf16.vlgmr.msra.gmra.mxu0 %vm1488_vm2, %v1581_v57 }
 0x37a   : > { %v2688_v8 = vpop.eup %2687 }
 0x37b   : > { %v1574_v31 = vmul.f32 %v2688_v8, %v2672_v10 }
 0x37c   : > { %v2690_v35 = vpop.eup %2689 }
 0x37d   : > { %v1582_v32 = vpack.c.bf16 %v1574_v31, %v1574_v31  ;;  %v1575_v63 = vmul.f32 %v2690_v35, %v3222_v1 }
 0x37f   : > { %2458 = vmatmul.msk.bf16.vlgmr.msrb.gmra.mxu1 %vm1488_vm2, %v1582_v32  ;;  %2459 = vmatmul.msk.bf16.vlgmr.msra.gmra.mxu2 %vm1488_vm2, %v1582_v32  ;;  %v1583_v36 = vpack.c.bf16 %v1575_v63, %v1575_v63 }
 0x383   : > { %v1560_v0 = vpop.xlane.xlu0 %1559 }
 0x384   : > { %2691 = vrcp.f32 %v1560_v0 }
 0x387   : > { %2460 = vmatmul.msk.bf16.vlgmr.msra.gmra.mxu3 %vm1488_vm2, %v1583_v36  ;;  %2461 = vmatmul.msk.bf16.vlgmr.msrb.gmra.mxu0 %vm1488_vm2, %v1583_v36 }
 0x38a   : > { %v2692_v37 = vpop.eup %2691 }
 0x38b   : > { %v1576_v38 = vmul.f32 %v2692_v37, %v3226_v7 }
 0x38d   : > { %v1584_v39 = vpack.c.bf16 %v1576_v38, %v1576_v38 }
 0x38f   : > { %2462 = vmatmul.msk.bf16.vlgmr.msra.gmra.mxu1 %vm1488_vm2, %v1584_v39  ;;  %2463 = vmatmul.msk.bf16.vlgmr.msrb.gmra.mxu2 %vm1488_vm2, %v1584_v39 }
 0x390   : > { %2780 = shalt.err (!%p2777_p9)
}
 0x391   : > { %s2879_s17 = smov 128   ;;  %s2880_s29 = smov 8  }
 0x392   : > { %2580 = dma.vmem_to_hbm [thread:$0]  (%p2971_p4), %s1944_s18, 1024, %s1946_s15, %s1923_s20, %s2879_s17, %s2879_s17, %s2880_s29  }
 0x393   : > { %s3356_s0 = sshll.u32 %s3064_s13, 6  ;;  %s1962_s16 = scalar_lea.hbm %s3340_s9, %s2551_s28 }
 0x394   : > { %s3279_s1 = scalar_lea.vmem [#allocation8], %s3356_s0  ;;  %s1965_s15 = sshll.u32 %s1962_s16, 4  ;;  %s1966_s15 = int_to_ptr.hbm [resolvable:$true] %s1965_s15 }
 0x395   : > { %s1963_s18 = sshll.u32 %s3279_s1, 4  ;;  %s1928_s20 = scalar_lea.sflag [#allocation9], %s3064_s13  ;;  %s1964_s18 = int_to_ptr.vmem [resolvable:$true] %s1963_s18 }
 0x396   : > { %s2795_s25 = sshra.s32 %s1966_s15, 4  ;;  %s2801_s28 = scalar_lea.hbm %s3340_s9, 128  ;;  %s2796_s25 = int_to_ptr.hbm [resolvable:$true] %s2795_s25 }
 0x397   : > { %s2797_s26 = scalar_lea.hbm %s2796_s25, 64  ;;  %p2802_p13 = scmp.lt.s32.totalorder %s2796_s25, %s3340_s9 }
 0x398   : > { %p2798_p10 = scmp.ne.s32.totalorder %s2796_s25, %s2797_s26  ;;  %p2803_p0 = scmp.lt.s32.totalorder %s2801_s28, %s2797_s26 }
 0x39a   : > { %p2799_p11 = pnand %p2798_p10, %p2971_p4  ;;  %p2804_p1 = por %p2803_p0, %p2802_p13 }
 0x39c   : > { %p2800_p12 = pneg %p2799_p11 }
 0x39e   : > { %p2805_p2 = pnand %p2804_p1, %p2800_p12 }
 0x3d4   : > { %v1622_v40 = vpop.f32.mrf.mxu0 }
 0x3da   : > { %v1609_v41 = vpop.f32.mrf.mxu3 }
 0x3db   : > { %v1906_v42 = vpack.c.bf16 %v1622_v40, %v1609_v41 }
 0x3dc   : > { %v1624_v43 = vpop.f32.mrf.mxu0  ;;  %v1649_v44 = vpop.f32.mrf.mxu1 }
 0x3dd   : > { %1914 = vst [vmem:[%s3279_s1] sm:$0xff] %v1906_v42 }
 0x3e2   : > { %v1611_v45 = vpop.f32.mrf.mxu3  ;;  %v1662_v48 = vpop.f32.mrf.mxu2 }
 0x3e3   : > { %v1907_v49 = vpack.c.bf16 %v1662_v48, %v1649_v44 }
 0x3e4   : > { %v1651_v50 = vpop.f32.mrf.mxu1  ;;  %v1702_v51 = vpop.f32.mrf.mxu0 }
 0x3e5   : > { %1915 = vst [vmem:[%s3279_s1 + $0x8] sm:$0xff] %v1907_v49 }
 0x3ea   : > { %v1664_v52 = vpop.f32.mrf.mxu2  ;;  %v1689_v53 = vpop.f32.mrf.mxu3 }
 0x3eb   : > { %v1908_v54 = vpack.c.bf16 %v1702_v51, %v1689_v53 }
 0x3ec   : > { %v1704_v4 = vpop.f32.mrf.mxu0  ;;  %v1729_v11 = vpop.f32.mrf.mxu1 }
 0x3ed   : > { %1916 = vst [vmem:[%s3279_s1 + $0x10] sm:$0xff] %v1908_v54 }
 0x3f2   : > { %v1691_v12 = vpop.f32.mrf.mxu3  ;;  %v1742_v29 = vpop.f32.mrf.mxu2 }
 0x3f3   : > { %v1909_v33 = vpack.c.bf16 %v1742_v29, %v1729_v11 }
 0x3f4   : > { %v1731_v56 = vpop.f32.mrf.mxu1  ;;  %v1782_v58 = vpop.f32.mrf.mxu0 }
 0x3f5   : > { %1917 = vst [vmem:[%s3279_s1 + $0x18] sm:$0xff] %v1909_v33 }
 0x3fa   : > { %v1744_v60 = vpop.f32.mrf.mxu2  ;;  %v1769_v61 = vpop.f32.mrf.mxu3 }
 0x3fb   : > { %v1910_v62 = vpack.c.bf16 %v1782_v58, %v1769_v61 }
 0x3fc   : > { %v1784_v10 = vpop.f32.mrf.mxu0  ;;  %v1809_v17 = vpop.f32.mrf.mxu1 }
 0x3fd   : > { %1918 = vst [vmem:[%s3279_s1 + $0x20] sm:$0xff] %v1910_v62 }
 0x402   : > { %v1771_v1 = vpop.f32.mrf.mxu3  ;;  %v1822_v2 = vpop.f32.mrf.mxu2 }
 0x403   : > { %v1911_v3 = vpack.c.bf16 %v1822_v2, %v1809_v17 }
 0x404   : > { %v1811_v5 = vpop.f32.mrf.mxu1  ;;  %v1862_v6 = vpop.f32.mrf.mxu0 }
 0x405   : > { %1919 = vst [vmem:[%s3279_s1 + $0x28] sm:$0xff] %v1911_v3 }
 0x40a   : > { %v1824_v7 = vpop.f32.mrf.mxu2  ;;  %v1849_v9 = vpop.f32.mrf.mxu3 }
 0x40b   : > { %v1912_v13 = vpack.c.bf16 %v1862_v6, %v1849_v9 }
 0x40c   : > { %v1864_v15 = vpop.f32.mrf.mxu0  ;;  %v1889_v16 = vpop.f32.mrf.mxu1 }
 0x40d   : > { %1920 = vst [vmem:[%s3279_s1 + $0x30] sm:$0xff] %v1912_v13 }
 0x412   : > { %v1851_v55 = vpop.f32.mrf.mxu3  ;;  %v1902_v18 = vpop.f32.mrf.mxu2 }
 0x413   : > { %v1913_v19 = vpack.c.bf16 %v1902_v18, %v1889_v16 }
 0x414   : > { %v1891_v20 = vpop.f32.mrf.mxu1 }
 0x415   : > { %1921 = vst [vmem:[%s3279_s1 + $0x38] sm:$0xff] %v1913_v19 }
 0x416   : > { %2808 = shalt.err (!%p2805_p2)
}
 0x417   : > { %2581 = dma.vmem_to_hbm [thread:$0]  (%p2971_p4), %s1964_s18, 1024, %s1966_s15, %s1928_s20, %s2879_s17, %s2879_s17, %s2880_s29  }
 0x41a   : > { %v1904_v59 = vpop.f32.mrf.mxu2 }
 0x41b PF: > { %p2602_p3 = scmp.ge.s32.totalorder %s2871_s14, 2  ;;  %s1980_s13 = sand.u32 1, %s2851_s30  }
 0x41c   : > { %s1981_s1 = scalar_lea.sflag [#allocation4], %s1980_s13 }
 0x41d   : > { %p2592_p5 = pnand %p2602_p3, %p2978_p8 }
 0x41f   : > { %p2593_p6 = pneg %p2592_p5 }
 0x421   : > { %2842 = dma.done.wait (%p2593_p6), %s1981_s1, 1024  }
 0x422   : > { %2844 = vsyncadd (%p2593_p6), %s1981_s1, 4294966272  ;;  %s1991_s4 = scalar_lea.sflag [#allocation9], %s1980_s13 }
 0x423   : > { %2846 = dma.done.wait (%p2593_p6), %s1991_s4, 1024  }
 0x424   : > { %2848 = vsyncadd (%p2593_p6), %s1991_s4, 4294966272  ;;  %s28_s14 = sadd.s32 1, %s2871_s14   ;;  %s3357_s12 = sld [smem:[#allocation14_spill]] }
 0x425   : > { %p25_p7 = scmp.ge.s32.totalorder %s28_s14, 4   ;;  %s3358_s13 = sld [smem:[#allocation15_spill]] }
 0x426   : > { %s3359_s30 = smov %s2855_s10  ;;  %s3360_s10 = smov %s2859_s11 }
 0x427   : > { %s3361_s11 = smov %s2984_s22  ;;  %27 = sbr.rel (!%p25_p7) target bundleno = 12 (0xc), region = 116 }
 0x42c   :  { %1997 = vsyncpa [#allocation3], 1 }
 0x42d   :  { %1999 = vsyncpa [#allocation3 + $0x1], 1 }
 0x42e   :  { %2000 = vsyncpa [#allocation6], 1 }
 0x42f   :  { %2001 = vsyncpa [#allocation4], 1 }
 0x430   :  { %2003 = vsyncpa [#allocation4 + $0x1], 1 }
 0x431   :  { %2004 = vsyncpa [#allocation9], 1 }
 0x432   :  { %2006 = vsyncpa [#allocation9 + $0x1], 1 }

</bundles_post_ra>
